<compile_context>
chip_gen: v7x
topology: tpu7x:2x2x1
jax: 0.10.0
libtpu: 0.0.40
codegen_flags: <defaults>
</compile_context>

<pallas_src>
import functools

import numpy as np
import jax
import jax.numpy as jnp
from jax import lax
from jax.experimental import pallas as pl
from jax.experimental.pallas import tpu as pltpu


def _round_up(x, m):
    return ((x + m - 1) // m) * m


# ----------------------------- Pallas kernel ------------------------------- #
# Refs (lane-padded to multiples of 128):
#   p_ref      (TM, Dp_pad)              bf16  im2col patches
#   noise_ref  (TM, Cout_pad)            bf16  uniform noise (pad lanes = 0)
#   dinv_ref   (Dp_pad, K_pad)           f32   D^-1 columns (pad = 0)
#   fused_ref  (Dp_pad, K_pad+Cout_pad)  bf16  [ u | wconv ] fused RHS
#   par_ref    (8, P_lanes)              f32   packed parameter rows:
#       row 0: logbias + logmix - lbtot   (pad = -1e30)
#       row 1: 1 / (1 + v^T D^-1 v)       (pad = 0)
#       row 2: bconv                      (pad = 0)
#       row 3: exp(s_logvar)              (pad = 0)
#       row 4: exp(b_logvar) * C / 2      (pad = 0)
#   out_ref    (TM, Cout_pad)            f32   lanes [0,Cout) = a,
#                                              lane Cout = loglik - lbtot
def _rank1_density_kernel(p_ref, noise_ref, dinv_ref, fused_ref, par_ref,
                          out_ref, *, k_pad, cout_pad, cout):
    p_bf = p_ref[...]                                   # (TM, Dp_pad) bf16
    p_f32 = p_bf.astype(jnp.float32)

    coef  = par_ref[0:1, :k_pad]                        # logbias+logmix-lbtot
    inv1p = par_ref[1:2, :k_pad]
    bconv = par_ref[2:3, :cout_pad]
    svar  = par_ref[3:4, :cout_pad]
    bhalf = par_ref[4:5, :cout_pad]

    # One fused MXU pass for both the rank-1 projection (u) and the conv weight.
    fused = jnp.dot(p_bf, fused_ref[...], preferred_element_type=jnp.float32)
    e2    = fused[:, :k_pad]                            # (TM, K_pad)
    a_lin = fused[:, k_pad:]                            # (TM, Cout_pad)

    # x^2 energy path: keep it fully in f32 (cancellation-sensitive).
    e1 = jnp.dot(p_f32 * p_f32, dinv_ref[...],
                 preferred_element_type=jnp.float32)    # (TM, K_pad)

    energy = 0.5 * (e1 - e2 * e2 * inv1p)               # pad lanes -> 0
    llk = coef - energy                                 # pad lanes -> -1e30
    m = jnp.max(llk, axis=-1, keepdims=True)
    ll_shift = m + jnp.log(jnp.sum(jnp.exp(llk - m), axis=-1, keepdims=True))
    norm_energy = -ll_shift                             # = lbtot - loglikelihood

    noise_var = jnp.maximum(svar * norm_energy + bhalf, 0.0)
    a = a_lin + bconv + jnp.sqrt(noise_var + 1e-16) * noise_ref[...].astype(jnp.float32)

    # Fold the per-position (shifted) log-likelihood into spare lane `cout`
    # -> single lane-dense output store per grid step.
    lane = lax.broadcasted_iota(jnp.int32, a.shape, 1)
    out_ref[...] = jnp.where(lane == cout, ll_shift, a)


# ----------------------------- glue / wrapper ------------------------------ #
def _extract_patches(x, k, stride, padding):
    B, C, H, W = x.shape
    if padding:
        x = jnp.pad(x, ((0, 0), (0, 0), (padding, padding), (padding, padding)))
    Hp, Wp = x.shape[2], x.shape[3]
    Ho = (Hp - k) // stride + 1
    Wo = (Wp - k) // stride + 1
    cols = []
    for kh in range(k):
        for kw in range(k):
            cols.append(x[:, :, kh:kh + stride * Ho:stride, kw:kw + stride * Wo:stride])
    patches = jnp.stack(cols, axis=2)                        # (B, C, k*k, Ho, Wo)
    patches = patches.transpose(0, 3, 4, 1, 2).reshape(B * Ho * Wo, C * k * k)
    return patches, Ho, Wo


def rank1_density_conv2d(x, params, noise, stride=1, padding=0, tm=512):
    """Returns (a, loglikelihood.mean(dim=[1,2])) matching the PyTorch forward.

    tm: row-tile size (multiple of 16); sweep 512..2048 on real workloads.
    """
    assert tm % 16 == 0
    B, C, H, W = x.shape
    wconv4 = params["wconv"]                  # (Cout, C, k, k)
    Cout, k = wconv4.shape[0], wconv4.shape[-1]
    K = params["v"].shape[0]
    Dp = C * k * k

    Dp_pad = _round_up(Dp, 128)
    K_pad = _round_up(K, 128)
    Cout_pad = _round_up(Cout + 1, 128)       # +1 spare lane for the log-lik column
    P_lanes = max(K_pad, Cout_pad)

    # TODO(synk): im2col is still host-side; for large C*H*W move patch
    # extraction into the kernel to avoid the k^2 HBM duplication.
    patches, Ho, Wo = _extract_patches(x, k, stride, padding)      # (N, Dp) f32
    N = patches.shape[0]
    noise_flat = noise.transpose(0, 2, 3, 1).reshape(N, Cout)

    # derived mixture parameters (cheap glue, plain JAX)
    v = params["v"].reshape(K, Dp).astype(jnp.float32)
    ld = params["log_diag"].reshape(K, Dp).astype(jnp.float32)
    d_inv = jnp.exp(-ld)
    u = v * d_inv
    vdv = jnp.sum(v * u, axis=1)                                   # (K,)
    logmix = jax.nn.log_softmax(params["mixture_logits"].astype(jnp.float32))
    logbias = -0.5 * (Dp * jnp.log(2.0 * jnp.pi) - jnp.sum(ld, axis=1) - jnp.log1p(vdv))
    coef = logbias + logmix                                        # (K,)
    lbtot = jax.scipy.special.logsumexp(coef)                      # scalar, re-added on host

    # ---- lane-padded resident weights ----
    dinv_p = jnp.zeros((Dp_pad, K_pad), jnp.float32).at[:Dp, :K].set(d_inv.T)
    fused = jnp.zeros((Dp_pad, K_pad + Cout_pad), jnp.float32)
    fused = fused.at[:Dp, :K].set(u.T)
    fused = fused.at[:Dp, K_pad:K_pad + Cout].set(
        wconv4.reshape(Cout, Dp).T.astype(jnp.float32))
    fused = fused.astype(jnp.bfloat16)

    # ---- single packed (8, 128) parameter tile ----
    par = jnp.zeros((8, P_lanes), jnp.float32)
    par = par.at[0, :].set(-1e30)
    par = par.at[0, :K].set(coef - lbtot)
    par = par.at[1, :K].set(1.0 / (1.0 + vdv))
    par = par.at[2, :Cout].set(params["bconv"].astype(jnp.float32).reshape(Cout))
    par = par.at[3, :Cout].set(jnp.exp(params["s_logvar"].astype(jnp.float32)).reshape(Cout))
    par = par.at[4, :Cout].set(
        (jnp.exp(params["b_logvar"].astype(jnp.float32)) * (C / 2.0)).reshape(Cout))

    # ---- lane-padded bf16 streamed operands ----
    # TODO(synk): noise could be generated in-kernel (pltpu.prng_*) to remove
    # this HBM stream entirely, but that changes the RNG stream vs the reference.
    N_pad = _round_up(N, tm)
    patches_p = jnp.zeros((N_pad, Dp_pad), jnp.bfloat16).at[:N, :Dp].set(
        patches.astype(jnp.bfloat16))
    noise_p = jnp.zeros((N_pad, Cout_pad), jnp.bfloat16).at[:N, :Cout].set(
        noise_flat.astype(jnp.bfloat16))

    kernel = functools.partial(_rank1_density_kernel,
                               k_pad=K_pad, cout_pad=Cout_pad, cout=Cout)

    out_flat = pl.pallas_call(
        kernel,
        out_shape=jax.ShapeDtypeStruct((N_pad, Cout_pad), jnp.float32),
        grid=(N_pad // tm,),
        in_specs=[
            pl.BlockSpec((tm, Dp_pad), lambda i: (i, 0)),          # patches (bf16)
            pl.BlockSpec((tm, Cout_pad), lambda i: (i, 0)),        # noise   (bf16)
            pl.BlockSpec((Dp_pad, K_pad), lambda i: (0, 0)),       # d_inv   (f32, resident)
            pl.BlockSpec((Dp_pad, K_pad + Cout_pad), lambda i: (0, 0)),  # [u|wconv] bf16
            pl.BlockSpec((8, P_lanes), lambda i: (0, 0)),          # packed params
        ],
        out_specs=pl.BlockSpec((tm, Cout_pad), lambda i: (i, 0)),
        compiler_params=pltpu.CompilerParams(
            dimension_semantics=("parallel",),
            # working set is a few MiB even at tm=2048; explicit limit keeps the
            # same tiling safe on v5e (16 MiB scoped default) and v7x (64 MiB VMEM)
            vmem_limit_bytes=32 * 1024 * 1024),
    )(patches_p, noise_p, dinv_p, fused, par)

    a = out_flat[:N, :Cout].reshape(B, Ho, Wo, Cout).transpose(0, 3, 1, 2)   # NCHW
    ll = out_flat[:N, Cout] + lbtot                                          # un-shift
    return a, ll.reshape(B, Ho, Wo).mean(axis=(1, 2))


# ------------------------ deterministic parameter init ---------------------- #
def init_params(key, in_channels, out_channels, kernel_size,
                posterior_std_init=0.001, n_mixture_p=0.1):
    k = kernel_size
    Dp = in_channels * k * k
    K = in_channels if in_channels == 3 else max(int(n_mixture_p * in_channels), 1)
    k0, k1, k2 = jax.random.split(key, 3)

    # kaiming_normal_ (fan_in mode): std = sqrt(2 / fan_in)
    wconv = jax.random.normal(k0, (out_channels, in_channels, k, k), jnp.float32) * np.sqrt(2.0 / Dp)
    bound = 1.0 / np.sqrt(Dp)
    bconv = jax.random.uniform(k1, (out_channels,), jnp.float32, -bound, bound)

    s_logvar = jnp.full((out_channels,), 2.0 * np.log(posterior_std_init), jnp.float32)
    b_logvar = jnp.full((out_channels,), 2.0 * np.log(posterior_std_init), jnp.float32)

    mixture_logits = jnp.zeros((K,), jnp.float32)
    # orthogonal_ on v (rows orthonormal), via QR
    A = jax.random.normal(k2, (Dp, K), jnp.float32)
    Q, _ = jnp.linalg.qr(A)
    v = Q.T.reshape(K, in_channels, k, k)
    log_diag = jnp.zeros((K, in_channels, k, k), jnp.float32)

    return dict(wconv=wconv, bconv=bconv, s_logvar=s_logvar, b_logvar=b_logvar,
                mixture_logits=mixture_logits, v=v, log_diag=log_diag)


# ------------------------------ numpy reference ----------------------------- #
def _np_patches(x, k, stride, padding):
    B, C, H, W = x.shape
    if padding:
        x = np.pad(x, ((0, 0), (0, 0), (padding, padding), (padding, padding)))
    Hp, Wp = x.shape[2], x.shape[3]
    Ho = (Hp - k) // stride + 1
    Wo = (Wp - k) // stride + 1
    cols = []
    for kh in range(k):
        for kw in range(k):
            cols.append(x[:, :, kh:kh + stride * Ho:stride, kw:kw + stride * Wo:stride])
    p = np.stack(cols, axis=2)
    return p.transpose(0, 3, 4, 1, 2).reshape(B * Ho * Wo, C * k * k), Ho, Wo


def reference_forward(x, params, noise, stride, padding):
    x = np.asarray(x, np.float64)
    B, C = x.shape[0], x.shape[1]
    v4 = np.asarray(params["v"], np.float64)
    K, k = v4.shape[0], v4.shape[-1]
    Dp = C * k * k
    P, Ho, Wo = _np_patches(x, k, stride, padding)
    v = v4.reshape(K, Dp)
    ld = np.asarray(params["log_diag"], np.float64).reshape(K, Dp)
    d_inv = np.exp(-ld)
    u = v * d_inv
    vdv = (v * u).sum(1)
    e1 = (P ** 2) @ d_inv.T
    e2 = P @ u.T
    energy = 0.5 * (e1 - e2 ** 2 / (1.0 + vdv)[None, :])
    logbias = -0.5 * (Dp * np.log(2.0 * np.pi) - ld.sum(1) - np.log(1.0 + vdv))
    logits = np.asarray(params["mixture_logits"], np.float64)
    logmix = logits - logits.max() - np.log(np.exp(logits - logits.max()).sum())
    llk = logbias[None, :] + logmix[None, :] - energy
    m = llk.max(axis=1, keepdims=True)
    ll = (m + np.log(np.exp(llk - m).sum(axis=1, keepdims=True)))[:, 0]
    c = logbias + logmix
    lbtot = c.max() + np.log(np.exp(c - c.max()).sum())
    norm_e = lbtot - ll
    Wc = np.asarray(params["wconv"], np.float64).reshape(-1, Dp)
    Cout = Wc.shape[0]
    a = P @ Wc.T + np.asarray(params["bconv"], np.float64)[None, :]
    svar = np.exp(np.asarray(params["s_logvar"], np.float64))[None, :]
    bhalf = np.exp(np.asarray(params["b_logvar"], np.float64))[None, :] * C / 2.0
    nvar = svar * norm_e[:, None] + bhalf
    noise_flat = np.asarray(noise, np.float64).transpose(0, 2, 3, 1).reshape(-1, Cout)
    a_out = a + np.sqrt(nvar + 1e-16) * noise_flat
    a_out = a_out.reshape(B, Ho, Wo, Cout).transpose(0, 3, 1, 2)
    ll_mean = ll.reshape(B, Ho, Wo).mean(axis=(1, 2))
    return a_out, ll_mean


# ----------------------------------- main ----------------------------------- #
if __name__ == "__main__":
    key = jax.random.PRNGKey(0)
    B, C, H, W = 2, 3, 16, 16
    Cout, k, stride, padding = 8, 3, 1, 0

    k_param, k_x, k_noise = jax.random.split(key, 3)
    params = init_params(k_param, C, Cout, k)
    x = jax.random.normal(k_x, (B, C, H, W), jnp.float32)

    Ho = (H + 2 * padding - k) // stride + 1
    Wo = (W + 2 * padding - k) // stride + 1
    # TODO(synk): torch.rand_like uses PyTorch's RNG stream; here the uniform
    # noise is generated deterministically with jax.random and fed to the kernel.
    noise = jax.random.uniform(k_noise, (B, Cout, Ho, Wo), jnp.float32)

    a, ll_mean = rank1_density_conv2d(x, params, noise, stride=stride, padding=padding)
    jax.block_until_ready((a, ll_mean))

    a_ref, ll_ref = reference_forward(np.asarray(x),
                                      {n: np.asarray(p) for n, p in params.items()},
                                      np.asarray(noise), stride, padding)
    # bf16-streamed patches/weights -> slightly looser tolerance than pure-f32.
    np.testing.assert_allclose(np.asarray(a), a_ref, rtol=0, atol=1e-1)
    np.testing.assert_allclose(np.asarray(ll_mean), ll_ref, rtol=0, atol=5e-1)
    print("KERNEL_OK")
</pallas_src>

<mosaic_0001>
module attributes {stable_mosaic.version = 11 : i64} {
  func.func @_rank1_density_kernel(%arg0: i32, %arg1: memref<512x128xbf16, #tpu.memory_space<vmem>>, %arg2: memref<512x128xbf16, #tpu.memory_space<vmem>>, %arg3: memref<128x128xf32, #tpu.memory_space<vmem>>, %arg4: memref<128x256xbf16, #tpu.memory_space<vmem>>, %arg5: memref<8x128xf32, #tpu.memory_space<vmem>>, %arg6: memref<512x128xf32, #tpu.memory_space<vmem>>) attributes {dimension_semantics = [#tpu.dimension_semantics<parallel>], iteration_bounds = array<i64: 1>, scalar_prefetch = 0 : i64, scratch_operands = 0 : i64, tpu.core_type = #tpu.core_type<tc>, window_params = [{transform_indices = @transform_0, window_bounds = array<i64: 512, 128>}, {transform_indices = @transform_1, window_bounds = array<i64: 512, 128>}, {pipeline_mode = #tpu.pipeline_mode<synchronous>, transform_indices = @transform_2, window_bounds = array<i64: 128, 128>}, {pipeline_mode = #tpu.pipeline_mode<synchronous>, transform_indices = @transform_3, window_bounds = array<i64: 128, 256>}, {pipeline_mode = #tpu.pipeline_mode<synchronous>, transform_indices = @transform_4, window_bounds = array<i64: 8, 128>}, {transform_indices = @transform_5, window_bounds = array<i64: 512, 128>}]} {
    %c0 = arith.constant 0 : index
    %c0_0 = arith.constant 0 : index
    %0 = vector.load %arg1[%c0, %c0_0] : memref<512x128xbf16, #tpu.memory_space<vmem>>, vector<512x128xbf16>
    %1 = arith.extf %0 : vector<512x128xbf16> to vector<512x128xf32>
    %c0_1 = arith.constant 0 : index
    %c0_2 = arith.constant 0 : index
    %2 = vector.load %arg5[%c0_1, %c0_2] : memref<8x128xf32, #tpu.memory_space<vmem>>, vector<1x128xf32>
    %c1 = arith.constant 1 : index
    %c0_3 = arith.constant 0 : index
    %3 = vector.load %arg5[%c1, %c0_3] : memref<8x128xf32, #tpu.memory_space<vmem>>, vector<1x128xf32>
    %c2 = arith.constant 2 : index
    %c0_4 = arith.constant 0 : index
    %4 = vector.load %arg5[%c2, %c0_4] : memref<8x128xf32, #tpu.memory_space<vmem>>, vector<1x128xf32>
    %c3 = arith.constant 3 : index
    %c0_5 = arith.constant 0 : index
    %5 = vector.load %arg5[%c3, %c0_5] : memref<8x128xf32, #tpu.memory_space<vmem>>, vector<1x128xf32>
    %c4 = arith.constant 4 : index
    %c0_6 = arith.constant 0 : index
    %6 = vector.load %arg5[%c4, %c0_6] : memref<8x128xf32, #tpu.memory_space<vmem>>, vector<1x128xf32>
    %c0_7 = arith.constant 0 : index
    %c0_8 = arith.constant 0 : index
    %7 = vector.load %arg4[%c0_7, %c0_8] : memref<128x256xbf16, #tpu.memory_space<vmem>>, vector<128x256xbf16>
    %cst = arith.constant dense<0.000000e+00> : vector<512x256xf32>
    %8 = tpu.matmul %0, %7, %cst {dimension_numbers = #tpu.dot_dimension_numbers<[1], [0], [0], [1], [0, 0, 1, 1], [], []>} : vector<512x128xbf16>, vector<128x256xbf16>, vector<512x256xf32> -> vector<512x256xf32>
    %9 = vector.extract_strided_slice %8 {offsets = [0, 0], sizes = [512, 128], strides = [1, 1]} : vector<512x256xf32> to vector<512x128xf32>
    %10 = vector.extract_strided_slice %8 {offsets = [0, 128], sizes = [512, 128], strides = [1, 1]} : vector<512x256xf32> to vector<512x128xf32>
    %11 = arith.mulf %1, %1 : vector<512x128xf32>
    %c0_9 = arith.constant 0 : index
    %c0_10 = arith.constant 0 : index
    %12 = vector.load %arg3[%c0_9, %c0_10] : memref<128x128xf32, #tpu.memory_space<vmem>>, vector<128x128xf32>
    %cst_11 = arith.constant dense<0.000000e+00> : vector<512x128xf32>
    %13 = tpu.matmul %11, %12, %cst_11 {dimension_numbers = #tpu.dot_dimension_numbers<[1], [0], [0], [1], [0, 0, 1, 1], [], []>} : vector<512x128xf32>, vector<128x128xf32>, vector<512x128xf32> -> vector<512x128xf32>
    %14 = arith.mulf %9, %9 : vector<512x128xf32>
    %15 = vector.broadcast %3 : vector<1x128xf32> to vector<512x128xf32>
    %16 = arith.mulf %14, %15 : vector<512x128xf32>
    %17 = arith.subf %13, %16 : vector<512x128xf32>
    %cst_12 = arith.constant 5.000000e-01 : f32
    %18 = vector.broadcast %cst_12 : f32 to vector<512x128xf32>
    %19 = arith.mulf %18, %17 : vector<512x128xf32>
    %20 = vector.broadcast %2 : vector<1x128xf32> to vector<512x128xf32>
    %21 = arith.subf %20, %19 : vector<512x128xf32>
    %cst_13 = arith.constant dense<0xFF800000> : vector<512xf32>
    %22 = vector.multi_reduction <maximumf>, %21, %cst_13 [1] : vector<512x128xf32> to vector<512xf32>
    %23 = vector.shape_cast %22 : vector<512xf32> to vector<512x1xf32>
    %24 = vector.broadcast %23 : vector<512x1xf32> to vector<512x128xf32>
    %25 = arith.subf %21, %24 : vector<512x128xf32>
    %26 = math.exp %25 : vector<512x128xf32>
    %cst_14 = arith.constant dense<0.000000e+00> : vector<512xf32>
    %27 = vector.multi_reduction <add>, %26, %cst_14 [1] : vector<512x128xf32> to vector<512xf32>
    %28 = vector.shape_cast %27 : vector<512xf32> to vector<512x1xf32>
    %29 = math.log %28 : vector<512x1xf32>
    %30 = arith.addf %23, %29 : vector<512x1xf32>
    %cst_15 = arith.constant 0.000000e+00 : f32
    %31 = vector.broadcast %cst_15 : f32 to vector<512x1xf32>
    %32 = arith.subf %31, %30 : vector<512x1xf32>
    %33 = vector.broadcast %5 : vector<1x128xf32> to vector<512x128xf32>
    %34 = vector.broadcast %32 : vector<512x1xf32> to vector<512x128xf32>
    %35 = arith.mulf %33, %34 : vector<512x128xf32>
    %36 = vector.broadcast %6 : vector<1x128xf32> to vector<512x128xf32>
    %37 = arith.addf %35, %36 : vector<512x128xf32>
    %cst_16 = arith.constant 0.000000e+00 : f32
    %38 = vector.broadcast %cst_16 : f32 to vector<512x128xf32>
    %39 = arith.maximumf %37, %38 : vector<512x128xf32>
    %40 = vector.broadcast %4 : vector<1x128xf32> to vector<512x128xf32>
    %41 = arith.addf %10, %40 : vector<512x128xf32>
    %cst_17 = arith.constant 1.000000e-16 : f32
    %42 = vector.broadcast %cst_17 : f32 to vector<512x128xf32>
    %43 = arith.addf %39, %42 : vector<512x128xf32>
    %44 = math.sqrt %43 : vector<512x128xf32>
    %c0_18 = arith.constant 0 : index
    %c0_19 = arith.constant 0 : index
    %45 = vector.load %arg2[%c0_18, %c0_19] : memref<512x128xbf16, #tpu.memory_space<vmem>>, vector<512x128xbf16>
    %46 = arith.extf %45 : vector<512x128xbf16> to vector<512x128xf32>
    %47 = arith.mulf %44, %46 : vector<512x128xf32>
    %48 = arith.addf %41, %47 : vector<512x128xf32>
    %49 = tpu.iota {dimensions = array<i32: 1>} : vector<512x128xi32>
    %c8_i32 = arith.constant 8 : i32
    %50 = vector.broadcast %c8_i32 : i32 to vector<512x128xi32>
    %51 = arith.cmpi eq, %49, %50 : vector<512x128xi32>
    %52 = vector.shape_cast %30 : vector<512x1xf32> to vector<512x1xf32>
    %53 = vector.broadcast %52 : vector<512x1xf32> to vector<512x128xf32>
    %54 = arith.select %51, %53, %48 : vector<512x128xi1>, vector<512x128xf32>
    %c0_20 = arith.constant 0 : index
    %c0_21 = arith.constant 0 : index
    %55 = vector.load %arg6[%c0_20, %c0_21] : memref<512x128xf32, #tpu.memory_space<vmem>>, vector<512x128xf32>
    tpu.vector_store %arg6[%c0_20, %c0_21], %54 {strides = array<i32>} : memref<512x128xf32, #tpu.memory_space<vmem>>, vector<512x128xf32>,
    return
  }
  func.func @transform_0(%arg0: i32) -> (i32, i32) {
    %c0_i32 = arith.constant 0 : i32
    %c0_i32_0 = arith.constant 0 : i32
    return %arg0, %c0_i32 : i32, i32
  }
  func.func @transform_1(%arg0: i32) -> (i32, i32) {
    %c0_i32 = arith.constant 0 : i32
    %c0_i32_0 = arith.constant 0 : i32
    return %arg0, %c0_i32 : i32, i32
  }
  func.func @transform_2(%arg0: i32) -> (i32, i32) {
    %c0_i32 = arith.constant 0 : i32
    %c0_i32_0 = arith.constant 0 : i32
    %c0_i32_1 = arith.constant 0 : i32
    return %c0_i32, %c0_i32_0 : i32, i32
  }
  func.func @transform_3(%arg0: i32) -> (i32, i32) {
    %c0_i32 = arith.constant 0 : i32
    %c0_i32_0 = arith.constant 0 : i32
    %c0_i32_1 = arith.constant 0 : i32
    return %c0_i32, %c0_i32_0 : i32, i32
  }
  func.func @transform_4(%arg0: i32) -> (i32, i32) {
    %c0_i32 = arith.constant 0 : i32
    %c0_i32_0 = arith.constant 0 : i32
    %c0_i32_1 = arith.constant 0 : i32
    return %c0_i32, %c0_i32_0 : i32, i32
  }
  func.func @transform_5(%arg0: i32) -> (i32, i32) {
    %c0_i32 = arith.constant 0 : i32
    %c0_i32_0 = arith.constant 0 : i32
    return %arg0, %c0_i32 : i32, i32
  }
}

</mosaic_0001>

<bundles_post_ra>
// kernel: tpu_custom_call.1
= control target key start
LH: loop header
LB: loop body
LE: loop exit
PB: predicated region body
PF: predicated region fallthrough
CT: control target
= control target key end

     0   :  { %10 = vsyncpa [#allocation3], 0  ;;  %s7503_s0 = inlined_call_operand.hbm [shape: bf16[512,128], index: 0, kind: input, shape index: {}]   ;;  %s7504_s1 = inlined_call_operand.hbm [shape: bf16[512,128], index: 1, kind: input, shape index: {}]   ;;  %s7505_s2 = inlined_call_operand.hbm [shape: f32[128,128], index: 2, kind: input, shape index: {}]   ;;  %s7506_s3 = inlined_call_operand.hbm [shape: bf16[128,256], index: 3, kind: input, shape index: {}]   ;;  %s7507_s4 = inlined_call_operand.vmem [shape: f32[8,128], index: 4, kind: input, shape index: {}]   ;;  %s7508_s5 = inlined_call_operand.hbm [shape: f32[512,128], index: 5, kind: output, shape index: {}]  }
   0x1   :  { %11 = vsyncpa [#allocation6], 0 }
   0x2   :  { %12 = vsyncpa [#allocation9], 0 }
   0x3   :  { %13 = vsyncpa [#allocation4], 0  ;;  %s4608_s18 = smov [#allocation5]   ;;  %s4609_s20 = smov [#allocation2]  }
   0x4   :  { %s31_s19 = sshll.u32 %s4608_s18, 4  ;;  %s19_s21 = sshll.u32 %s4609_s20, 4  ;;  %s32_s19 = int_to_ptr.vmem [resolvable:$true] %s31_s19  ;;  %s4648_s21 = int_to_ptr.vmem [resolvable:$true] %s19_s21 }
   0x5   :  { %s4490_s24 = scalar_lea.hbm %s7504_s1, 4096 }
   0x6   :  { %p4491_p0 = scmp.ne.s32.totalorder %s7504_s1, %s4490_s24  ;;  %p4494_p1 = scmp.lt.u32.totalorder %s4490_s24, %s7504_s1 }
   0x8   :  { %p4496_p2 = pnand %p4494_p1, %p4491_p0 }
   0xa   :  { %4499 = shalt.err (!%p4496_p2)
}
   0xb   :  { %s4500_s29 = scalar_lea.vmem %s32_s19, 4096  ;;  %p4505_p4 = scmp.lt.s32.totalorder %s32_s19, %s32_s19 }
   0xc   :  { %p4501_p3 = scmp.ne.s32.totalorder %s32_s19, %s4500_s29  ;;  %p4506_p5 = scmp.lt.s32.totalorder %s4500_s29, %s4500_s29 }
   0xe   :  { %p4507_p6 = por %p4506_p5, %p4505_p4 }
  0x10   :  { %p4508_p7 = pnand %p4507_p6, %p4501_p3 }
  0x12   :  { %4511 = shalt.err (!%p4508_p7)
}
  0x13   :  { %s4610_s30 = smov 64   ;;  %s4611_s6 = smov 4  }
  0x14   :  { %37 = dma.hbm_to_vmem [thread:$0]  %s7504_s1, 4096, %s32_s19, [#allocation6], %s4610_s30, %s4610_s30, %s4611_s6  }
  0x15   :  { %s4512_s11 = scalar_lea.hbm %s7503_s0, 4096 }
  0x16   :  { %p4513_p8 = scmp.ne.s32.totalorder %s7503_s0, %s4512_s11  ;;  %p4516_p9 = scmp.lt.u32.totalorder %s4512_s11, %s7503_s0 }
  0x18   :  { %p4518_p10 = pnand %p4516_p9, %p4513_p8 }
  0x1a   :  { %4521 = shalt.err (!%p4518_p10)
}
  0x1b   :  { %s4522_s16 = scalar_lea.vmem %s4648_s21, 4096  ;;  %p4527_p12 = scmp.lt.s32.totalorder %s4648_s21, %s4648_s21 }
  0x1c   :  { %p4523_p11 = scmp.ne.s32.totalorder %s4648_s21, %s4522_s16  ;;  %p4528_p13 = scmp.lt.s32.totalorder %s4522_s16, %s4522_s16 }
  0x1e   :  { %p4529_p0 = por %p4528_p13, %p4527_p12 }
  0x20   :  { %p4530_p1 = pnand %p4529_p0, %p4523_p11 }
  0x22   :  { %4533 = shalt.err (!%p4530_p1)
}
  0x23   :  { %25 = dma.hbm_to_vmem [thread:$0]  %s7503_s0, 4096, %s4648_s21, [#allocation3], %s4610_s30, %s4610_s30, %s4611_s6  }
  0x24   :  { %s4612_s18 = smov [#allocation7]   ;;  %s4534_s23 = scalar_lea.hbm %s7505_s2, 2048 }
  0x25   :  { %s43_s19 = sshll.u32 %s4612_s18, 4  ;;  %p4535_p2 = scmp.ne.s32.totalorder %s7505_s2, %s4534_s23  ;;  %s44_s19 = int_to_ptr.vmem [resolvable:$true] %s43_s19 }
  0x26   :  { %p4538_p3 = scmp.lt.u32.totalorder %s4534_s23, %s7505_s2 }
  0x28   :  { %p4540_p4 = pnand %p4538_p3, %p4535_p2 }
  0x2a   :  { %4543 = shalt.err (!%p4540_p4)
}
  0x2b   :  { %s4544_s28 = scalar_lea.vmem %s44_s19, 2048  ;;  %p4549_p6 = scmp.lt.s32.totalorder %s44_s19, %s44_s19 }
  0x2c   :  { %p4545_p5 = scmp.ne.s32.totalorder %s44_s19, %s4544_s28  ;;  %p4550_p7 = scmp.lt.s32.totalorder %s4544_s28, %s4544_s28 }
  0x2e   :  { %p4551_p8 = por %p4550_p7, %p4549_p6 }
  0x30   :  { %p4552_p9 = pnand %p4551_p8, %p4545_p5 }
  0x32   :  { %4555 = shalt.err (!%p4552_p9)
}
  0x33   :  { %s4613_s0 = smov 128   ;;  %s4614_s21 = smov 8  }
  0x34   :  { %49 = dma.hbm_to_vmem [thread:$0]  %s7505_s2, 2048, %s44_s19, [#allocation6], %s4613_s0, %s4613_s0, %s4614_s21  }
  0x35   :  { %s4615_s6 = smov [#allocation8]   ;;  %s4556_s10 = scalar_lea.hbm %s7506_s3, 2048 }
  0x36   :  { %s55_s7 = sshll.u32 %s4615_s6, 4  ;;  %p4557_p10 = scmp.ne.s32.totalorder %s7506_s3, %s4556_s10  ;;  %s56_s7 = int_to_ptr.vmem [resolvable:$true] %s55_s7 }
  0x37   :  { %p4560_p11 = scmp.lt.u32.totalorder %s4556_s10, %s7506_s3 }
  0x39   :  { %p4562_p12 = pnand %p4560_p11, %p4557_p10 }
  0x3b   :  { %4565 = shalt.err (!%p4562_p12)
}
  0x3c   :  { %s4566_s15 = scalar_lea.vmem %s56_s7, 2048  ;;  %p4571_p0 = scmp.lt.s32.totalorder %s56_s7, %s56_s7 }
  0x3d   :  { %p4567_p13 = scmp.ne.s32.totalorder %s56_s7, %s4566_s15  ;;  %p4572_p1 = scmp.lt.s32.totalorder %s4566_s15, %s4566_s15 }
  0x3f   :  { %p4573_p2 = por %p4572_p1, %p4571_p0 }
  0x41   :  { %p4574_p3 = pnand %p4573_p2, %p4567_p13 }
  0x43   :  { %4577 = shalt.err (!%p4574_p3)
}
  0x44   :  { %61 = dma.hbm_to_vmem [thread:$0]  %s7506_s3, 2048, %s56_s7, [#allocation9], %s4613_s0, %s4613_s0, %s4614_s21  }
  0x45   :  { %4600 = dma.done.wait [#allocation3], 4096  }
  0x46   :  { %4601 = vsyncadd [#allocation3], 4294963200 }
  0x47   :  { %4602 = dma.done.wait [#allocation6], 6144  }
  0x48   :  { %4603 = vsyncadd [#allocation6], 4294961152 }
  0x49   :  { %4604 = dma.done.wait [#allocation9], 2048  }
  0x4a   :  { %4605 = vsyncadd [#allocation9], 4294965248  ;;  %v4616_v0 = vmov 0   ;;  %v4012_v1 = vld [vmem:[#allocation8 + $0x4] ss:$8 sps:$4 sm:$0xff]   ;;  %v917_v22 = vld [vmem:[#allocation7 + $0x10] sm:$0xff] }
  0x4b   :  { %530 = vmatprep.mubr.bf16.mxu0 %v4616_v0  ;;  %770 = vmatprep.mubr.bf16.mxu1 %v4616_v0  ;;  %v4014_v2 = vld [vmem:[#allocation8] ss:$8 sps:$4 sm:$0xff]   ;;  %v4015_v3 = vld [vmem:[#allocation8 + $0x14] ss:$8 sps:$4 sm:$0xff]   ;;  %v4017_v4 = vld [vmem:[#allocation8 + $0x10] ss:$8 sps:$4 sm:$0xff]  }
  0x4c   :  { %498 = vmatprep.subr.bf16.mxu0 %v4012_v1  ;;  %3986 = vmatprep.subr.bf16.mxu1 %v4012_v1  ;;  %v4018_v5 = vld [vmem:[#allocation8 + $0x24] ss:$8 sps:$4 sm:$0xff]   ;;  %v4020_v6 = vld [vmem:[#allocation8 + $0x20] ss:$8 sps:$4 sm:$0xff]   ;;  %v4021_v7 = vld [vmem:[#allocation8 + $0x34] ss:$8 sps:$4 sm:$0xff]  }
  0x4d   :  { %499 = vmatpush1.bf16.msra.mxu0 %v4014_v2  ;;  %3994 = vmatpush1.bf16.msra.mxu1 %v4014_v2  ;;  %v4023_v8 = vld [vmem:[#allocation8 + $0x30] ss:$8 sps:$4 sm:$0xff]   ;;  %v4024_v9 = vld [vmem:[#allocation8 + $0x44] ss:$8 sps:$4 sm:$0xff]   ;;  %v4026_v10 = vld [vmem:[#allocation8 + $0x40] ss:$8 sps:$4 sm:$0xff]  }
  0x4e   :  { %500 = vmatprep.subr.bf16.mxu0 %v4015_v3  ;;  %3987 = vmatprep.subr.bf16.mxu1 %v4015_v3  ;;  %v4027_v11 = vld [vmem:[#allocation8 + $0x54] ss:$8 sps:$4 sm:$0xff]   ;;  %v4029_v12 = vld [vmem:[#allocation8 + $0x50] ss:$8 sps:$4 sm:$0xff]   ;;  %v4030_v13 = vld [vmem:[#allocation8 + $0x64] ss:$8 sps:$4 sm:$0xff]  }
  0x4f   :  { %v4032_v14 = vld [vmem:[#allocation8 + $0x60] ss:$8 sps:$4 sm:$0xff]   ;;  %v4033_v15 = vld [vmem:[#allocation8 + $0x74] ss:$8 sps:$4 sm:$0xff]   ;;  %v4035_v18 = vld [vmem:[#allocation8 + $0x70] ss:$8 sps:$4 sm:$0xff]  }
  0x50   :  { %v915_v16 = vld [vmem:[#allocation7] sm:$0xff]  ;;  %v916_v17 = vld [vmem:[#allocation7 + $0x8] sm:$0xff]  ;;  %v918_v23 = vld [vmem:[#allocation7 + $0x18] sm:$0xff] }
  0x51   :  { %501 = vmatpush1.bf16.msra.mxu0 %v4017_v4  ;;  %3995 = vmatpush1.bf16.msra.mxu1 %v4017_v4  ;;  %v4711_v19 = vld [vmem:[#allocation2] sm:$0xff]   ;;  %v3954_v21 = vpack.c.bf16 %v916_v17, %v915_v16  ;;  %v3958_v24 = vpack.c.bf16 %v918_v23, %v917_v22  ;;  %v920_v26 = vld [vmem:[#allocation7 + $0x28] sm:$0xff]  ;;  %v921_v30 = vld [vmem:[#allocation7 + $0x30] sm:$0xff] }
  0x52   :  { %502 = vmatprep.subr.bf16.mxu0 %v4018_v5  ;;  %3988 = vmatprep.subr.bf16.mxu1 %v4018_v5  ;;  %v4713_v20 = vld [vmem:[#allocation2 + $0xc0] sm:$0xff]   ;;  %v4718_v27 = vld [vmem:[#allocation2 + $0x8] sm:$0xff]   ;;  %v922_v31 = vld [vmem:[#allocation7 + $0x38] sm:$0xff]  ;;  %v141_v57 = vunpack.c.l.bf16 %v4711_v19  ;;  %v142_v59 = vunpack.c.h.bf16 %v4711_v19 }
  0x53   :  { %v919_v25 = vld [vmem:[#allocation7 + $0x20] sm:$0xff]  ;;  %v4720_v28 = vld [vmem:[#allocation2 + $0xc8] sm:$0xff]   ;;  %v3966_v32 = vpack.c.bf16 %v922_v31, %v921_v30  ;;  %v4727_v35 = vld [vmem:[#allocation2 + $0x10] sm:$0xff]   ;;  %v143_v61 = vunpack.c.l.bf16 %v4718_v27  ;;  %v144_v63 = vunpack.c.h.bf16 %v4718_v27 }
  0x54   :  { %v3962_v29 = vpack.c.bf16 %v920_v26, %v919_v25  ;;  %v923_v33 = vld [vmem:[#allocation7 + $0x40] sm:$0xff]  ;;  %v924_v34 = vld [vmem:[#allocation7 + $0x48] sm:$0xff]  ;;  %v4729_v36 = vld [vmem:[#allocation2 + $0xd0] sm:$0xff]   ;;  %v851_v58 = vmul.f32 %v141_v57, %v141_v57  ;;  %v852_v62 = vmul.f32 %v142_v59, %v142_v59  ;;  %v145_v2 = vunpack.c.l.bf16 %v4727_v35 }
  0x55   :  { %503 = vmatpush1.bf16.msra.mxu0 %v4020_v6  ;;  %3996 = vmatpush1.bf16.msra.mxu1 %v4020_v6  ;;  %v3970_v37 = vpack.c.bf16 %v924_v34, %v923_v33  ;;  %v925_v38 = vld [vmem:[#allocation7 + $0x50] sm:$0xff]  ;;  %v926_v39 = vld [vmem:[#allocation7 + $0x58] sm:$0xff]  ;;  %v927_v41 = vld [vmem:[#allocation7 + $0x60] sm:$0xff]  ;;  %v853_v1 = vmul.f32 %v143_v61, %v143_v61  ;;  %v854_v3 = vmul.f32 %v144_v63, %v144_v63  ;;  %v146_v4 = vunpack.c.h.bf16 %v4727_v35 }
  0x56   :  { %504 = vmatprep.subr.bf16.mxu0 %v4021_v7  ;;  %3989 = vmatprep.subr.bf16.mxu1 %v4021_v7  ;;  %v3974_v40 = vpack.c.bf16 %v926_v39, %v925_v38  ;;  %v928_v42 = vld [vmem:[#allocation7 + $0x68] sm:$0xff]  ;;  %v4735_v43 = vld [vmem:[#allocation2 + $0x18] sm:$0xff]   ;;  %v929_v46 = vld [vmem:[#allocation7 + $0x70] sm:$0xff]  ;;  %v855_v5 = vmul.f32 %v145_v2, %v145_v2 }
  0x57   :  { %v4737_v44 = vld [vmem:[#allocation2 + $0xd8] sm:$0xff]   ;;  %v3978_v45 = vpack.c.bf16 %v928_v42, %v927_v41  ;;  %v85_v49 = vld [vmem:[#allocation2 + $0x20] sm:$0xff]   ;;  %v87_v51 = vld [vmem:[#allocation2 + $0x28] sm:$0xff]   ;;  %v147_v7 = vunpack.c.l.bf16 %v4735_v43 }
  0x58   :  { %v930_v47 = vld [vmem:[#allocation7 + $0x78] sm:$0xff]  ;;  %v4743_v50 = vld [vmem:[#allocation2 + $0xe0] sm:$0xff]   ;;  %v4748_v52 = vld [vmem:[#allocation2 + $0xe8] sm:$0xff]   ;;  %v151_v16 = vunpack.c.l.bf16 %v87_v51 }
  0x59   :  { %505 = vmatpush1.bf16.msra.mxu0 %v4023_v8  ;;  %3997 = vmatpush1.bf16.msra.mxu1 %v4023_v8  ;;  %v3982_v48 = vpack.c.bf16 %v930_v47, %v929_v46  ;;  %v89_v53 = vld [vmem:[#allocation2 + $0x30] sm:$0xff]   ;;  %v4758_v55 = vld [vmem:[#allocation2 + $0x38] sm:$0xff]   ;;  %v93_v60 = vld [vmem:[#allocation2 + $0x40] sm:$0xff]   ;;  %v856_v8 = vmul.f32 %v146_v4, %v146_v4 }
  0x5a   :  { %506 = vmatprep.subr.bf16.mxu0 %v4024_v9  ;;  %3990 = vmatprep.subr.bf16.mxu1 %v4024_v9  ;;  %v4753_v54 = vld [vmem:[#allocation2 + $0xf0] sm:$0xff]   ;;  %v4760_v56 = vld [vmem:[#allocation2 + $0xf8] sm:$0xff]   ;;  %v95_v6 = vld [vmem:[#allocation2 + $0x48] sm:$0xff]   ;;  %v148_v9 = vunpack.c.h.bf16 %v4735_v43  ;;  %v154_v23 = vunpack.c.h.bf16 %v89_v53  ;;  %v155_v26 = vunpack.c.l.bf16 %v4758_v55  ;;  %v157_v31 = vunpack.c.l.bf16 %v93_v60 }
  0x5b   :  { %v99_v25 = vld [vmem:[#allocation2 + $0x58] sm:$0xff]   ;;  %v158_v33 = vunpack.c.h.bf16 %v93_v60  ;;  %v160_v39 = vunpack.c.h.bf16 %v95_v6  ;;  %v103_v46 = vld [vmem:[#allocation2 + $0x68] sm:$0xff]   ;;  %v105_v59 = vld [vmem:[#allocation2 + $0x70] sm:$0xff]  }
  0x5c   :  { %v865_v30 = vmul.f32 %v155_v26, %v155_v26  ;;  %v867_v34 = vmul.f32 %v157_v31, %v157_v31  ;;  %v163_v47 = vunpack.c.l.bf16 %v99_v25  ;;  %v107_v2 = vld [vmem:[#allocation2 + $0x78] sm:$0xff]   ;;  %v170_v4 = vunpack.c.h.bf16 %v105_v59 }
  0x5d   :  { %507 = vmatpush1.bf16.msra.mxu0 %v4026_v10  ;;  %3998 = vmatpush1.bf16.msra.mxu1 %v4026_v10  ;;  %v857_v10 = vmul.f32 %v147_v7, %v147_v7  ;;  %v868_v38 = vmul.f32 %v158_v33, %v158_v33  ;;  %v870_v42 = vmul.f32 %v160_v39, %v160_v39  ;;  %v109_v7 = vld [vmem:[#allocation2 + $0x80] sm:$0xff]  }
  0x5e   :  { %508 = vmatprep.subr.bf16.mxu0 %v4027_v11  ;;  %3991 = vmatprep.subr.bf16.mxu1 %v4027_v11  ;;  %v149_v11 = vunpack.c.l.bf16 %v85_v49 }
  0x61   :  { %509 = vmatpush1.bf16.msra.mxu0 %v4029_v12  ;;  %3999 = vmatpush1.bf16.msra.mxu1 %v4029_v12  ;;  %v858_v12 = vmul.f32 %v148_v9, %v148_v9  ;;  %v172_v9 = vunpack.c.h.bf16 %v107_v2 }
  0x62   :  { %510 = vmatprep.subr.bf16.mxu0 %v4030_v13  ;;  %3992 = vmatprep.subr.bf16.mxu1 %v4030_v13  ;;  %v150_v13 = vunpack.c.h.bf16 %v85_v49 }
  0x64   :  { %v860_v17 = vmul.f32 %v150_v13, %v150_v13  ;;  %v882_v13 = vmul.f32 %v172_v9, %v172_v9  ;;  %v197_v9 = vunpack.c.l.bf16 %v4743_v50 }
  0x65   :  { %511 = vmatpush1.bf16.msra.mxu0 %v4032_v14  ;;  %4000 = vmatpush1.bf16.msra.mxu1 %v4032_v14  ;;  %v859_v14 = vmul.f32 %v149_v11, %v149_v11  ;;  %v173_v11 = vunpack.c.l.bf16 %v109_v7 }
  0x66   :  { %512 = vmatprep.subr.bf16.mxu0 %v4033_v15  ;;  %3993 = vmatprep.subr.bf16.mxu1 %v4033_v15  ;;  %v97_v15 = vld [vmem:[#allocation2 + $0x50] sm:$0xff]  }
  0x67   :  { %v161_v41 = vunpack.c.l.bf16 %v97_v15 }
  0x69   :  { %513 = vmatpush1.bf16.msra.mxu0 %v4035_v18  ;;  %4001 = vmatpush1.bf16.msra.mxu1 %v4035_v18  ;;  %v152_v18 = vunpack.c.h.bf16 %v87_v51 }
  0x6a   :  { %3955 = vmatprep.subr.bf16.mxu1 %v3954_v21 }
  0x6b   :  { %v862_v22 = vmul.f32 %v152_v18, %v152_v18 }
  0x6c   :  { %531 = vmatmul.mubr.bf16.vlgmr.msra.gmra.mrb[0].mxu0 %v4711_v19  ;;  %771 = vmatmul.mubr.bf16.vlgmr.msra.gmra.mrb[0].mxu1 %v4713_v20  ;;  %v861_v19 = vmul.f32 %v151_v16, %v151_v16 }
  0x6d   :  { %3957 = vmatpush3.bf16.msra.mxu1 %v3954_v21  ;;  %540 = vmatprep.mubr.bf16.mxu0 %v4616_v0  ;;  %v153_v21 = vunpack.c.l.bf16 %v89_v53 }
  0x6e   :  { %780 = vmatprep.mubr.bf16.mxu1 %v4616_v0  ;;  %3959 = vmatprep.subr.bf16.mxu1 %v3958_v24 }
  0x71   :  { %3961 = vmatpush3.bf16.msra.mxu1 %v3958_v24  ;;  %v863_v24 = vmul.f32 %v153_v21, %v153_v21 }
  0x72   :  { %3963 = vmatprep.subr.bf16.mxu1 %v3962_v29 }
  0x74   :  { %541 = vmatmul.mubr.bf16.gmra.mrb[4].mxu0 %v4718_v27  ;;  %781 = vmatmul.mubr.bf16.gmra.mrb[4].mxu1 %v4720_v28  ;;  %v864_v27 = vmul.f32 %v154_v23, %v154_v23  ;;  %v115_v23 = vld [vmem:[#allocation2 + $0x98] sm:$0xff]  }
  0x75   :  { %550 = vmatprep.mubr.bf16.mxu0 %v4616_v0  ;;  %790 = vmatprep.mubr.bf16.mxu1 %v4616_v0  ;;  %v180_v31 = vunpack.c.h.bf16 %v115_v23 }
  0x76   :  { %3965 = vmatpush3.bf16.msra.mxu1 %v3962_v29  ;;  %v156_v29 = vunpack.c.h.bf16 %v4758_v55 }
  0x77   :  { %3967 = vmatprep.subr.bf16.mxu1 %v3966_v32 }
  0x7a   :  { %3969 = vmatpush3.bf16.msra.mxu1 %v3966_v32  ;;  %v866_v32 = vmul.f32 %v156_v29, %v156_v29  ;;  %v117_v29 = vld [vmem:[#allocation2 + $0xa0] sm:$0xff]  }
  0x7b   :  { %3971 = vmatprep.subr.bf16.mxu1 %v3970_v37  ;;  %v181_v33 = vunpack.c.l.bf16 %v117_v29 }
  0x7c   :  { %551 = vmatmul.mubr.bf16.gmra.mrb[8].mxu0 %v4727_v35  ;;  %791 = vmatmul.mubr.bf16.gmra.mrb[8].mxu1 %v4729_v36  ;;  %v101_v35 = vld [vmem:[#allocation2 + $0x60] sm:$0xff]  }
  0x7d   :  { %560 = vmatprep.mubr.bf16.mxu0 %v4616_v0  ;;  %800 = vmatprep.mubr.bf16.mxu1 %v4616_v0  ;;  %v166_v57 = vunpack.c.h.bf16 %v101_v35 }
  0x7e   :  { %3973 = vmatpush3.bf16.msra.mxu1 %v3970_v37  ;;  %v159_v37 = vunpack.c.l.bf16 %v95_v6 }
  0x7f   :  { %3975 = vmatprep.subr.bf16.mxu1 %v3974_v40  ;;  %v876_v61 = vmul.f32 %v166_v57, %v166_v57 }
  0x82   :  { %3977 = vmatpush3.bf16.msra.mxu1 %v3974_v40  ;;  %v869_v40 = vmul.f32 %v159_v37, %v159_v37  ;;  %v182_v37 = vunpack.c.h.bf16 %v117_v29 }
  0x83   :  { %3979 = vmatprep.subr.bf16.mxu1 %v3978_v45 }
  0x84   :  { %561 = vmatmul.mubr.bf16.gmra.mrb[12].mxu0 %v4735_v43  ;;  %801 = vmatmul.mubr.bf16.gmra.mrb[12].mxu1 %v4737_v44  ;;  %v162_v43 = vunpack.c.h.bf16 %v97_v15 }
  0x85   :  { %570 = vmatprep.mubr.bf16.mxu0 %v4616_v0  ;;  %810 = vmatprep.mubr.bf16.mxu1 %v4616_v0 }
  0x86   :  { %3981 = vmatpush3.bf16.msra.mxu1 %v3978_v45  ;;  %v871_v45 = vmul.f32 %v161_v41, %v161_v41  ;;  %v892_v41 = vmul.f32 %v182_v37, %v182_v37 }
  0x87   :  { %3983 = vmatprep.subr.bf16.mxu1 %v3982_v48 }
  0x8a   :  { %3985 = vmatpush3.bf16.msra.mxu1 %v3982_v48  ;;  %v872_v48 = vmul.f32 %v162_v43, %v162_v43 }
  0x8c   :  { %571 = vmatmul.mubr.bf16.gmra.mrb[16].mxu0 %v85_v49  ;;  %811 = vmatmul.mubr.bf16.gmra.mrb[16].mxu1 %v4743_v50  ;;  %v164_v49 = vunpack.c.h.bf16 %v99_v25 }
  0x8d   :  { %580 = vmatprep.mubr.bf16.mxu0 %v4616_v0  ;;  %820 = vmatprep.mubr.bf16.mxu1 %v4616_v0 }
  0x94   :  { %581 = vmatmul.mubr.bf16.gmra.mrb[20].mxu0 %v87_v51  ;;  %821 = vmatmul.mubr.bf16.gmra.mrb[20].mxu1 %v4748_v52  ;;  %v873_v51 = vmul.f32 %v163_v47, %v163_v47 }
  0x95   :  { %590 = vmatprep.mubr.bf16.mxu0 %v4616_v0  ;;  %830 = vmatprep.mubr.bf16.mxu1 %v4616_v0 }
  0x9c   :  { %591 = vmatmul.mubr.bf16.gmra.mrb[24].mxu0 %v89_v53  ;;  %831 = vmatmul.mubr.bf16.gmra.mrb[24].mxu1 %v4753_v54  ;;  %v165_v53 = vunpack.c.l.bf16 %v101_v35 }
  0x9d   :  { %600 = vmatprep.mubr.bf16.mxu0 %v4616_v0  ;;  %840 = vmatprep.mubr.bf16.mxu1 %v4616_v0 }
  0xa4   :  { %601 = vmatmul.mubr.bf16.gmra.mrb[28].mxu0 %v4758_v55  ;;  %841 = vmatmul.mubr.bf16.gmra.mrb[28].mxu1 %v4760_v56  ;;  %v874_v55 = vmul.f32 %v164_v49, %v164_v49 }
  0xa5   :  { %610 = vmatprep.mubr.bf16.mxu0 %v4616_v0  ;;  %3858 = vmatprep.mubr.f32.mxu1 %v851_v58  ;;  %v875_v58 = vmul.f32 %v165_v53, %v165_v53 }
  0xac   :  { %611 = vmatmul.mubr.bf16.gmra.mrb[32].mxu0 %v93_v60  ;;  %3859 = vmatmul.mubr.f32.vlgmr.msra.gmra.mrb[32].mxu1 %v852_v62  ;;  %v167_v60 = vunpack.c.l.bf16 %v103_v46  ;;  %v168_v62 = vunpack.c.h.bf16 %v103_v46 }
  0xad   :  { %3861 = vmatprep.mubr.f32.mxu1 %v853_v1  ;;  %620 = vmatprep.mubr.bf16.mxu0 %v4616_v0  ;;  %v169_v1 = vunpack.c.l.bf16 %v105_v59 }
  0xae   :  { %v877_v63 = vmul.f32 %v167_v60, %v167_v60  ;;  %v190_v60 = vunpack.c.h.bf16 %v4713_v20 }
  0xb0   :  { %3862 = vmatmul.mubr.f32.gmra.mrb[34].mxu1 %v854_v3  ;;  %v878_v3 = vmul.f32 %v168_v62, %v168_v62  ;;  %v191_v62 = vunpack.c.l.bf16 %v4720_v28 }
  0xb1   :  { %3864 = vmatprep.mubr.f32.mxu1 %v855_v5  ;;  %v879_v5 = vmul.f32 %v169_v1, %v169_v1  ;;  %v192_v1 = vunpack.c.h.bf16 %v4720_v28 }
  0xb4   :  { %621 = vmatmul.mubr.bf16.gmra.mrb[36].mxu0 %v95_v6  ;;  %3865 = vmatmul.mubr.f32.gmra.mrb[36].mxu1 %v856_v8  ;;  %v171_v6 = vunpack.c.l.bf16 %v107_v2  ;;  %v880_v8 = vmul.f32 %v170_v4, %v170_v4  ;;  %v902_v4 = vmul.f32 %v192_v1, %v192_v1 }
  0xb5   :  { %3867 = vmatprep.mubr.f32.mxu1 %v857_v10  ;;  %630 = vmatprep.mubr.bf16.mxu0 %v4616_v0 }
  0xb6   :  { %v881_v10 = vmul.f32 %v171_v6, %v171_v6  ;;  %v195_v6 = vunpack.c.l.bf16 %v4737_v44 }
  0xb8   :  { %3868 = vmatmul.mubr.f32.gmra.mrb[38].mxu1 %v858_v12  ;;  %v111_v12 = vld [vmem:[#allocation2 + $0x88] sm:$0xff]   ;;  %v905_v28 = vmul.f32 %v195_v6, %v195_v6 }
  0xb9   :  { %3870 = vmatprep.mubr.f32.mxu1 %v859_v14  ;;  %v174_v14 = vunpack.c.h.bf16 %v109_v7  ;;  %v175_v16 = vunpack.c.l.bf16 %v111_v12 }
  0xbb   :  { %v884_v18 = vmul.f32 %v174_v14, %v174_v14  ;;  %v885_v21 = vmul.f32 %v175_v16, %v175_v16  ;;  %v200_v14 = vunpack.c.h.bf16 %v4748_v52 }
  0xbc   :  { %631 = vmatmul.mubr.bf16.gmra.mrb[40].mxu0 %v97_v15  ;;  %3871 = vmatmul.mubr.f32.gmra.mrb[40].mxu1 %v860_v17  ;;  %v883_v15 = vmul.f32 %v173_v11, %v173_v11  ;;  %v113_v17 = vld [vmem:[#allocation2 + $0x90] sm:$0xff]   ;;  %v198_v11 = vunpack.c.h.bf16 %v4743_v50  ;;  %v202_v50 = vunpack.c.h.bf16 %v4753_v54 }
  0xbd   :  { %3873 = vmatprep.mubr.f32.mxu1 %v861_v19  ;;  %640 = vmatprep.mubr.bf16.mxu0 %v4616_v0  ;;  %v176_v19 = vunpack.c.h.bf16 %v111_v12  ;;  %v910_v16 = vmul.f32 %v200_v14, %v200_v14 }
  0xc0   :  { %3874 = vmatmul.mubr.f32.gmra.mrb[42].mxu1 %v862_v22  ;;  %v177_v22 = vunpack.c.l.bf16 %v113_v17 }
  0xc1   :  { %3876 = vmatprep.mubr.f32.mxu1 %v863_v24  ;;  %v886_v24 = vmul.f32 %v176_v19, %v176_v19  ;;  %v912_v19 = vmul.f32 %v202_v50, %v202_v50 }
  0xc2   :  { %v887_v26 = vmul.f32 %v177_v22, %v177_v22 }
  0xc4   :  { %641 = vmatmul.mubr.bf16.gmra.mrb[44].mxu0 %v99_v25  ;;  %3877 = vmatmul.mubr.f32.gmra.mrb[44].mxu1 %v864_v27  ;;  %v178_v25 = vunpack.c.h.bf16 %v113_v17  ;;  %v179_v27 = vunpack.c.l.bf16 %v115_v23 }
  0xc5   :  { %3879 = vmatprep.mubr.f32.mxu1 %v865_v30  ;;  %650 = vmatprep.mubr.bf16.mxu0 %v4616_v0 }
  0xc6   :  { %v888_v30 = vmul.f32 %v178_v25, %v178_v25 }
  0xc8   :  { %3880 = vmatmul.mubr.f32.gmra.mrb[46].mxu1 %v866_v32  ;;  %v889_v32 = vmul.f32 %v179_v27, %v179_v27 }
  0xc9   :  { %3882 = vmatprep.mubr.f32.mxu1 %v867_v34  ;;  %v119_v34 = vld [vmem:[#allocation2 + $0xa8] sm:$0xff]  }
  0xca   :  { %v183_v39 = vunpack.c.l.bf16 %v119_v34 }
  0xcc   :  { %651 = vmatmul.mubr.bf16.gmra.mrb[48].mxu0 %v101_v35  ;;  %3883 = vmatmul.mubr.f32.gmra.mrb[48].mxu1 %v868_v38  ;;  %v890_v35 = vmul.f32 %v180_v31, %v180_v31  ;;  %v891_v38 = vmul.f32 %v181_v33, %v181_v33  ;;  %v893_v43 = vmul.f32 %v183_v39, %v183_v39 }
  0xcd   :  { %3885 = vmatprep.mubr.f32.mxu1 %v869_v40  ;;  %660 = vmatprep.mubr.bf16.mxu0 %v4616_v0  ;;  %v4785_v40 = vld [vmem:[#allocation2 + $0xb0] sm:$0xff]  }
  0xd0   :  { %3886 = vmatmul.mubr.f32.gmra.mrb[50].mxu1 %v870_v42  ;;  %v184_v42 = vunpack.c.h.bf16 %v119_v34 }
  0xd1   :  { %3888 = vmatprep.mubr.f32.mxu1 %v871_v45  ;;  %v185_v45 = vunpack.c.l.bf16 %v4785_v40 }
  0xd2   :  { %v894_v47 = vmul.f32 %v184_v42, %v184_v42 }
  0xd3   :  { %v895_v49 = vmul.f32 %v185_v45, %v185_v45 }
  0xd4   :  { %661 = vmatmul.mubr.bf16.gmra.mrb[52].mxu0 %v103_v46  ;;  %3889 = vmatmul.mubr.f32.gmra.mrb[52].mxu1 %v872_v48  ;;  %v4788_v46 = vld [vmem:[#allocation2 + $0xb8] sm:$0xff]   ;;  %v186_v48 = vunpack.c.h.bf16 %v4785_v40 }
  0xd5   :  { %3891 = vmatprep.mubr.f32.mxu1 %v873_v51  ;;  %670 = vmatprep.mubr.bf16.mxu0 %v4616_v0  ;;  %v187_v51 = vunpack.c.l.bf16 %v4788_v46 }
  0xd6   :  { %v896_v53 = vmul.f32 %v186_v48, %v186_v48 }
  0xd7   :  { %v897_v57 = vmul.f32 %v187_v51, %v187_v51 }
  0xd8   :  { %3892 = vmatmul.mubr.f32.gmra.mrb[54].mxu1 %v874_v55  ;;  %v188_v55 = vunpack.c.h.bf16 %v4788_v46 }
  0xd9   :  { %3894 = vmatprep.mubr.f32.mxu1 %v875_v58  ;;  %v189_v58 = vunpack.c.l.bf16 %v4713_v20 }
  0xdc   :  { %671 = vmatmul.mubr.bf16.gmra.mrb[56].mxu0 %v105_v59  ;;  %3895 = vmatmul.mubr.f32.gmra.mrb[56].mxu1 %v876_v61  ;;  %v898_v59 = vmul.f32 %v188_v55, %v188_v55  ;;  %v899_v61 = vmul.f32 %v189_v58, %v189_v58 }
  0xdd   :  { %3897 = vmatprep.mubr.f32.mxu1 %v877_v63  ;;  %680 = vmatprep.mubr.bf16.mxu0 %v4616_v0  ;;  %v900_v63 = vmul.f32 %v190_v60, %v190_v60 }
  0xe0   :  { %3898 = vmatmul.mubr.f32.gmra.mrb[58].mxu1 %v878_v3  ;;  %v193_v3 = vunpack.c.l.bf16 %v4729_v36 }
  0xe1   :  { %3900 = vmatprep.mubr.f32.mxu1 %v879_v5  ;;  %v194_v5 = vunpack.c.h.bf16 %v4729_v36  ;;  %v907_v36 = vmul.f32 %v197_v9, %v197_v9 }
  0xe2   :  { %v903_v20 = vmul.f32 %v193_v3, %v193_v3 }
  0xe4   :  { %681 = vmatmul.mubr.bf16.gmra.mrb[60].mxu0 %v107_v2  ;;  %3901 = vmatmul.mubr.f32.gmra.mrb[60].mxu1 %v880_v8  ;;  %v901_v2 = vmul.f32 %v191_v62, %v191_v62  ;;  %v196_v8 = vunpack.c.h.bf16 %v4737_v44 }
  0xe5   :  { %3903 = vmatprep.mubr.f32.mxu1 %v881_v10  ;;  %690 = vmatprep.mubr.bf16.mxu0 %v4616_v0 }
  0xe6   :  { %v906_v10 = vmul.f32 %v196_v8, %v196_v8 }
  0xe8   :  { %3904 = vmatmul.mubr.f32.gmra.mrb[62].mxu1 %v882_v13  ;;  %v908_v13 = vmul.f32 %v198_v11, %v198_v11 }
  0xe9   :  { %3906 = vmatprep.mubr.f32.mxu1 %v883_v15  ;;  %v201_v15 = vunpack.c.l.bf16 %v4753_v54 }
  0xec   :  { %691 = vmatmul.mubr.bf16.gmra.mrb[64].mxu0 %v109_v7  ;;  %3907 = vmatmul.mubr.f32.gmra.mrb[64].mxu1 %v884_v18  ;;  %v904_v7 = vmul.f32 %v194_v5, %v194_v5  ;;  %v203_v18 = vunpack.c.l.bf16 %v4760_v56 }
  0xed   :  { %3909 = vmatprep.mubr.f32.mxu1 %v885_v21  ;;  %700 = vmatprep.mubr.bf16.mxu0 %v4616_v0 }
  0xee   :  { %v913_v21 = vmul.f32 %v203_v18, %v203_v18 }
  0xf0   :  { %3910 = vmatmul.mubr.f32.gmra.mrb[66].mxu1 %v886_v24 }
  0xf1   :  { %3912 = vmatprep.mubr.f32.mxu1 %v887_v26 }
  0xf4   :  { %701 = vmatmul.mubr.bf16.gmra.mrb[68].mxu0 %v111_v12  ;;  %3913 = vmatmul.mubr.f32.gmra.mrb[68].mxu1 %v888_v30  ;;  %v199_v12 = vunpack.c.l.bf16 %v4748_v52  ;;  %v204_v52 = vunpack.c.h.bf16 %v4760_v56 }
  0xf5   :  { %3915 = vmatprep.mubr.f32.mxu1 %v889_v32  ;;  %710 = vmatprep.mubr.bf16.mxu0 %v4616_v0 }
  0xf6   :  { %v909_v44 = vmul.f32 %v199_v12, %v199_v12  ;;  %v914_v22 = vmul.f32 %v204_v52, %v204_v52 }
  0xf8   :  { %3916 = vmatmul.mubr.f32.gmra.mrb[70].mxu1 %v890_v35 }
  0xf9   :  { %3918 = vmatprep.mubr.f32.mxu1 %v891_v38 }
  0xfc   :  { %711 = vmatmul.mubr.bf16.gmra.mrb[72].mxu0 %v113_v17  ;;  %3919 = vmatmul.mubr.f32.gmra.mrb[72].mxu1 %v892_v41  ;;  %v911_v17 = vmul.f32 %v201_v15, %v201_v15 }
  0xfd   :  { %3921 = vmatprep.mubr.f32.mxu1 %v893_v43  ;;  %720 = vmatprep.mubr.bf16.mxu0 %v4616_v0 }
 0x100   :  { %3922 = vmatmul.mubr.f32.gmra.mrb[74].mxu1 %v894_v47 }
 0x101   :  { %3924 = vmatprep.mubr.f32.mxu1 %v895_v49 }
 0x104   :  { %721 = vmatmul.mubr.bf16.gmra.mrb[76].mxu0 %v115_v23  ;;  %3925 = vmatmul.mubr.f32.gmra.mrb[76].mxu1 %v896_v53 }
 0x105   :  { %3927 = vmatprep.mubr.f32.mxu1 %v897_v57  ;;  %730 = vmatprep.mubr.bf16.mxu0 %v4616_v0 }
 0x108   :  { %3928 = vmatmul.mubr.f32.gmra.mrb[78].mxu1 %v898_v59 }
 0x109   :  { %3930 = vmatprep.mubr.f32.mxu1 %v899_v61 }
 0x10c   :  { %731 = vmatmul.mubr.bf16.gmra.mrb[80].mxu0 %v117_v29  ;;  %3931 = vmatmul.mubr.f32.gmra.mrb[80].mxu1 %v900_v63 }
 0x10d   :  { %3933 = vmatprep.mubr.f32.mxu1 %v901_v2  ;;  %740 = vmatprep.mubr.bf16.mxu0 %v4616_v0 }
 0x110   :  { %3934 = vmatmul.mubr.f32.gmra.mrb[82].mxu1 %v902_v4 }
 0x111   :  { %3936 = vmatprep.mubr.f32.mxu1 %v903_v20 }
 0x114   :  { %741 = vmatmul.mubr.bf16.gmra.mrb[84].mxu0 %v119_v34  ;;  %3937 = vmatmul.mubr.f32.gmra.mrb[84].mxu1 %v904_v7 }
 0x115   :  { %3939 = vmatprep.mubr.f32.mxu1 %v905_v28  ;;  %750 = vmatprep.mubr.bf16.mxu0 %v4616_v0 }
 0x118   :  { %3940 = vmatmul.mubr.f32.gmra.mrb[86].mxu1 %v906_v10 }
 0x119   :  { %3942 = vmatprep.mubr.f32.mxu1 %v907_v36 }
 0x11c   :  { %751 = vmatmul.mubr.bf16.gmra.mrb[88].mxu0 %v4785_v40  ;;  %3943 = vmatmul.mubr.f32.gmra.mrb[88].mxu1 %v908_v13 }
 0x11d   :  { %3945 = vmatprep.mubr.f32.mxu1 %v909_v44  ;;  %760 = vmatprep.mubr.bf16.mxu0 %v4616_v0 }
 0x120   :  { %3946 = vmatmul.mubr.f32.gmra.mrb[90].mxu1 %v910_v16 }
 0x121   :  { %3948 = vmatprep.mubr.f32.mxu1 %v911_v17 }
 0x124   :  { %761 = vmatmul.mubr.bf16.gmra.mrb[92].mxu0 %v4788_v46  ;;  %3949 = vmatmul.mubr.f32.gmra.mrb[92].mxu1 %v912_v19 }
 0x125   :  { %3951 = vmatprep.mubr.f32.mxu1 %v913_v21 }
 0x128   :  { %3952 = vmatmul.mubr.f32.gmra.mrb[94].mxu1 %v914_v22 }
 0x13f   :  { %v4816_v23 = vpop.f32.mrb[0].mxu0  ;;  %v4818_v54 = vpop.f32.mrb[0].mxu1 }
 0x140   :  { %v4820_v0 = vpop.f32.mrb[1].mxu0  ;;  %v4822_v24 = vpop.f32.mrb[1].mxu1 }
 0x141   :  { %7573 = vst [vmem:[#allocation15_spill] sm:$0xff] %v4820_v0  ;;  %7574 = vst [vmem:[#allocation16_spill] sm:$0xff] %v4822_v24  ;;  %v536_v25 = vpop.f32.mrb[2].mxu0  ;;  %v4824_v26 = vpop.f32.mrb[2].mxu1 }
 0x142   :  { %v4826_v56 = vpop.f32.mrb[3].mxu0  ;;  %v4828_v27 = vpop.f32.mrb[3].mxu1  ;;  %v1317_v21 = vmul.f32 %v536_v25, %v536_v25 }
 0x143   :  { %7575 = vst [vmem:[#allocation17_spill] sm:$0xff] %v4826_v56  ;;  %7576 = vst [vmem:[#allocation18_spill] sm:$0xff] %v4828_v27 }
 0x147   :  { %v542_v29 = vpop.f32.mrb[4].mxu0  ;;  %v4830_v30 = vpop.f32.mrb[4].mxu1 }
 0x148   :  { %v4832_v31 = vpop.f32.mrb[5].mxu0  ;;  %v4834_v32 = vpop.f32.mrb[5].mxu1 }
 0x149   :  { %7577 = vst [vmem:[#allocation19_spill] sm:$0xff] %v4832_v31  ;;  %7578 = vst [vmem:[#allocation20_spill] sm:$0xff] %v4834_v32  ;;  %v546_v33 = vpop.f32.mrb[6].mxu0  ;;  %v4836_v34 = vpop.f32.mrb[6].mxu1 }
 0x14a   :  { %v4838_v35 = vpop.f32.mrb[7].mxu0  ;;  %v4840_v37 = vpop.f32.mrb[7].mxu1 }
 0x14b   :  { %7579 = vst [vmem:[#allocation21_spill] sm:$0xff] %v4838_v35  ;;  %7580 = vst [vmem:[#allocation22_spill] sm:$0xff] %v4840_v37 }
 0x14f   :  { %v4842_v38 = vpop.f32.mrb[8].mxu0  ;;  %v4844_v39 = vpop.f32.mrb[8].mxu1 }
 0x150   :  { %v4846_v40 = vpop.f32.mrb[9].mxu0  ;;  %v4848_v41 = vpop.f32.mrb[9].mxu1 }
 0x151   :  { %7581 = vst [vmem:[#allocation23_spill] sm:$0xff] %v4846_v40  ;;  %7582 = vst [vmem:[#allocation24_spill] sm:$0xff] %v4848_v41  ;;  %v556_v42 = vpop.f32.mrb[10].mxu0  ;;  %v4850_v43 = vpop.f32.mrb[10].mxu1 }
 0x152   :  { %v4852_v45 = vpop.f32.mrb[11].mxu0  ;;  %v4854_v46 = vpop.f32.mrb[11].mxu1 }
 0x153   :  { %7583 = vst [vmem:[#allocation25_spill] sm:$0xff] %v4852_v45  ;;  %7584 = vst [vmem:[#allocation26_spill] sm:$0xff] %v4854_v46 }
 0x157   :  { %v4856_v47 = vpop.f32.mrb[12].mxu0  ;;  %v4858_v48 = vpop.f32.mrb[12].mxu1 }
 0x158   :  { %v4860_v49 = vpop.f32.mrb[13].mxu0  ;;  %v4862_v51 = vpop.f32.mrb[13].mxu1 }
 0x159   :  { %7585 = vst [vmem:[#allocation27_spill] sm:$0xff] %v4860_v49  ;;  %7586 = vst [vmem:[#allocation28_spill] sm:$0xff] %v4862_v51  ;;  %v4864_v53 = vpop.f32.mrb[14].mxu0  ;;  %v4866_v55 = vpop.f32.mrb[14].mxu1 }
 0x15a   :  { %v4868_v57 = vpop.f32.mrb[15].mxu0  ;;  %v4870_v58 = vpop.f32.mrb[15].mxu1 }
 0x15b   :  { %7587 = vst [vmem:[#allocation29_spill] sm:$0xff] %v4868_v57  ;;  %7588 = vst [vmem:[#allocation30_spill] sm:$0xff] %v4870_v58 }
 0x15f   :  { %v4872_v59 = vpop.f32.mrb[16].mxu0  ;;  %v4874_v60 = vpop.f32.mrb[16].mxu1 }
 0x160   :  { %v4876_v61 = vpop.f32.mrb[17].mxu0  ;;  %v4878_v62 = vpop.f32.mrb[17].mxu1 }
 0x161   :  { %7589 = vst [vmem:[#allocation31_spill] sm:$0xff] %v4876_v61  ;;  %7590 = vst [vmem:[#allocation32_spill] sm:$0xff] %v4878_v62  ;;  %v4880_v63 = vpop.f32.mrb[18].mxu0  ;;  %v4882_v1 = vpop.f32.mrb[18].mxu1 }
 0x162   :  { %v4884_v2 = vpop.f32.mrb[19].mxu0  ;;  %v4886_v3 = vpop.f32.mrb[19].mxu1 }
 0x163   :  { %7591 = vst [vmem:[#allocation33_spill] sm:$0xff] %v4884_v2  ;;  %7592 = vst [vmem:[#allocation34_spill] sm:$0xff] %v4886_v3  ;;  %v4954_v3 = vld [vmem:[%s7507_s4] ss:$0 sm:$0xff] }
 0x167   :  { %v4888_v4 = vpop.f32.mrb[20].mxu0  ;;  %v4890_v5 = vpop.f32.mrb[20].mxu1 }
 0x168   :  { %v4892_v20 = vpop.f32.mrb[21].mxu0  ;;  %v4894_v6 = vpop.f32.mrb[21].mxu1 }
 0x169   :  { %7593 = vst [vmem:[#allocation35_spill] sm:$0xff] %v4892_v20  ;;  %7594 = vst [vmem:[#allocation36_spill] sm:$0xff] %v4894_v6  ;;  %v4896_v7 = vpop.f32.mrb[22].mxu0  ;;  %v4898_v8 = vpop.f32.mrb[22].mxu1  ;;  %v1319_v6 = vmul.f32 %v546_v33, %v546_v33  ;;  %v1321_v33 = vmul.f32 %v556_v42, %v556_v42  ;;  %v1323_v42 = vmul.f32 %v4864_v53, %v4864_v53 }
 0x16a   :  { %v4900_v28 = vpop.f32.mrb[23].mxu0  ;;  %v4902_v9 = vpop.f32.mrb[23].mxu1 }
 0x16b   :  { %7595 = vst [vmem:[#allocation37_spill] sm:$0xff] %v4900_v28  ;;  %7596 = vst [vmem:[#allocation38_spill] sm:$0xff] %v4902_v9  ;;  %v4941_v9 = vld [vmem:[%s7507_s4 + $0x1] ss:$0 sm:$0xff] }
 0x16c   :  { %v1387_v2 = vmul.f32 %v4941_v9, %v1319_v6  ;;  %v1389_v6 = vmul.f32 %v4941_v9, %v1321_v33 }
 0x16f   :  { %v4904_v10 = vpop.f32.mrb[24].mxu0  ;;  %v4906_v11 = vpop.f32.mrb[24].mxu1 }
 0x170   :  { %v4908_v36 = vpop.f32.mrb[25].mxu0  ;;  %v4910_v12 = vpop.f32.mrb[25].mxu1 }
 0x171   :  { %7597 = vst [vmem:[#allocation39_spill] sm:$0xff] %v4908_v36  ;;  %7598 = vst [vmem:[#allocation40_spill] sm:$0xff] %v4910_v12  ;;  %v4912_v13 = vpop.f32.mrb[26].mxu0  ;;  %v4914_v14 = vpop.f32.mrb[26].mxu1 }
 0x172   :  { %v4916_v44 = vpop.f32.mrb[27].mxu0  ;;  %v4918_v15 = vpop.f32.mrb[27].mxu1 }
 0x173   :  { %7599 = vst [vmem:[#allocation41_spill] sm:$0xff] %v4916_v44  ;;  %7600 = vst [vmem:[#allocation42_spill] sm:$0xff] %v4918_v15  ;;  %v1316_v15 = vmul.f32 %v4816_v23, %v4816_v23 }
 0x175   :  { %v1384_v25 = vmul.f32 %v4941_v9, %v1316_v15 }
 0x177   :  { %v4920_v16 = vpop.f32.mrb[28].mxu0  ;;  %v4922_v50 = vpop.f32.mrb[28].mxu1 }
 0x178   :  { %v4924_v17 = vpop.f32.mrb[29].mxu0  ;;  %v4926_v18 = vpop.f32.mrb[29].mxu1 }
 0x179   :  { %7601 = vst [vmem:[#allocation43_spill] sm:$0xff] %v4924_v17  ;;  %7602 = vst [vmem:[#allocation44_spill] sm:$0xff] %v4926_v18  ;;  %v4928_v19 = vpop.f32.mrb[30].mxu0  ;;  %v4930_v52 = vpop.f32.mrb[30].mxu1  ;;  %v1385_v18 = vmul.f32 %v4941_v9, %v1317_v21  ;;  %v1318_v17 = vmul.f32 %v542_v29, %v542_v29 }
 0x17a   :  { %v4932_v22 = vpop.f32.mrb[31].mxu0  ;;  %v4934_v12 = vpop.f32.mrb[31].mxu1 }
 0x17b   :  { %7603 = vst [vmem:[#allocation45_spill] sm:$0xff] %v4932_v22  ;;  %7604 = vst [vmem:[#allocation46_spill] sm:$0xff] %v4934_v12 }
 0x17f   :  { %v4944_v44 = vpop.f32.mrb[32].mxu0  ;;  %v3860_v36 = vpop.f32.mrb[32].mxu1 }
 0x180   :  { %v1449_v22 = vsub.f32 %v3860_v36, %v1385_v18  ;;  %v4947_v28 = vpop.f32.mrb[33].mxu0  ;;  %v997_v12 = vpop.f32.mrb[33].mxu1  ;;  %v1320_v36 = vmul.f32 %v4842_v38, %v4842_v38  ;;  %v1386_v18 = vmul.f32 %v4941_v9, %v1318_v17  ;;  %v1322_v38 = vmul.f32 %v4856_v47, %v4856_v47 }
 0x181   :  { %7605 = vst [vmem:[#allocation47_spill] sm:$0xff] %v4947_v28  ;;  %v1448_v20 = vsub.f32 %v997_v12, %v1384_v25  ;;  %v4949_v23 = vpop.f32.mrb[34].mxu0  ;;  %v1325_v47 = vmul.f32 %v4880_v63, %v4880_v63 }
 0x182   :  { %v1513_v21 = vmul.f32 0.5, %v1449_v22  ;;  %v4956_v29 = vpop.f32.mrb[35].mxu0 }
 0x183   :  { %7606 = vst [vmem:[#allocation48_spill] sm:$0xff] %v4956_v29  ;;  %v3863_v15 = vpop.f32.mrb[34].mxu1  ;;  %v1512_v12 = vmul.f32 0.5, %v1448_v20 }
 0x184   :  { %v1451_v25 = vsub.f32 %v3863_v15, %v1387_v2  ;;  %v1007_v28 = vpop.f32.mrb[35].mxu1  ;;  %v4963_v62 = vsub.f32 %v4954_v3, %v1513_v21  ;;  %v1388_v2 = vmul.f32 %v4941_v9, %v1320_v36  ;;  %v1324_v36 = vmul.f32 %v4872_v59, %v4872_v59 }
 0x185   :  { %v1450_v61 = vsub.f32 %v1007_v28, %v1386_v18  ;;  %v4977_v53 = vsub.f32 %v4954_v3, %v1512_v12  ;;  %v1393_v59 = vmul.f32 %v4941_v9, %v1325_v47 }
 0x186   :  { %v1515_v22 = vmul.f32 0.5, %v1451_v25  ;;  %1646 = vmax.xlane.f32.xlu0 %v4963_v62 }
 0x187   :  { %v4971_v29 = vpop.f32.mrb[36].mxu0  ;;  %v3866_v20 = vpop.f32.mrb[36].mxu1  ;;  %v1514_v17 = vmul.f32 0.5, %v1450_v61  ;;  %v1391_v61 = vmul.f32 %v4941_v9, %v1323_v42  ;;  %v1327_v42 = vmul.f32 %v4896_v7, %v4896_v7 }
 0x188   :  { %v1453_v21 = vsub.f32 %v3866_v20, %v1389_v6  ;;  %v4974_v15 = vpop.f32.mrb[37].mxu0  ;;  %v1017_v28 = vpop.f32.mrb[37].mxu1  ;;  %v4980_v18 = vsub.f32 %v4954_v3, %v1515_v22  ;;  %v1390_v6 = vmul.f32 %v4941_v9, %v1322_v38  ;;  %v1326_v38 = vmul.f32 %v4888_v4, %v4888_v4 }
 0x189   :  { %7607 = vst [vmem:[#allocation49_spill] sm:$0xff] %v4974_v15  ;;  %v1452_v33 = vsub.f32 %v1017_v28, %v1388_v2  ;;  %v4982_v25 = vpop.f32.mrb[38].mxu0  ;;  %v4995_v63 = vsub.f32 %v4954_v3, %v1514_v17  ;;  %v1329_v4 = vmul.f32 %v4912_v13, %v4912_v13 }
 0x18a   :  { %v4986_v58 = vpop.f32.mrb[39].mxu0  ;;  %1644 = vmax.xlane.f32.xlu0 %v4977_v53  ;;  %1650 = vmax.xlane.f32.xlu1 %v4980_v18  ;;  %v1517_v20 = vmul.f32 0.5, %v1453_v21 }
 0x18b   :  { %7608 = vst [vmem:[#allocation50_spill] sm:$0xff] %v4986_v58  ;;  %v1516_v12 = vmul.f32 0.5, %v1452_v33  ;;  %v3869_v22 = vpop.f32.mrb[38].mxu1 }
 0x18c   :  { %v1455_v2 = vsub.f32 %v3869_v22, %v1391_v61  ;;  %v1027_v28 = vpop.f32.mrb[39].mxu1  ;;  %v1392_v61 = vmul.f32 %v4941_v9, %v1324_v36  ;;  %v1395_v36 = vmul.f32 %v4941_v9, %v1327_v42  ;;  %v1331_v42 = vmul.f32 %v4928_v19, %v4928_v19 }
 0x18d   :  { %v1454_v58 = vsub.f32 %v1027_v28, %v1390_v6  ;;  %v4998_v15 = vsub.f32 %v4954_v3, %v1516_v12  ;;  %v5013_v28 = vsub.f32 %v4954_v3, %v1517_v20 }
 0x18e   :  { %1648 = vmax.xlane.f32.xlu1 %v4995_v63  ;;  %v1519_v12 = vmul.f32 0.5, %v1455_v2  ;;  %v1328_v2 = vmul.f32 %v4904_v10, %v4904_v10  ;;  %v1397_v10 = vmul.f32 %v4941_v9, %v1329_v4 }
 0x18f   :  { %v1518_v21 = vmul.f32 0.5, %v1454_v58  ;;  %v5006_v33 = vpop.f32.mrb[40].mxu0  ;;  %1652 = vmax.xlane.f32.xlu0 %v4998_v15  ;;  %v3872_v17 = vpop.f32.mrb[40].mxu1 }
 0x190   :  { %v1457_v22 = vsub.f32 %v3872_v17, %v1393_v59  ;;  %v5010_v6 = vpop.f32.mrb[41].mxu0  ;;  %v1037_v7 = vpop.f32.mrb[41].mxu1  ;;  %v1394_v17 = vmul.f32 %v4941_v9, %v1326_v38  ;;  %v5031_v13 = vsub.f32 %v4954_v3, %v1519_v12  ;;  %v1330_v38 = vmul.f32 %v4920_v16, %v4920_v16 }
 0x191   :  { %7609 = vst [vmem:[#allocation51_spill] sm:$0xff] %v5010_v6  ;;  %v1456_v47 = vsub.f32 %v1037_v7, %v1392_v61  ;;  %v5015_v57 = vpop.f32.mrb[42].mxu0  ;;  %v5018_v58 = vsub.f32 %v4954_v3, %v1518_v21 }
 0x192   :  { %v5022_v51 = vpop.f32.mrb[43].mxu0  ;;  %1654 = vmax.xlane.f32.xlu1 %v5013_v28  ;;  %v1521_v21 = vmul.f32 0.5, %v1457_v22 }
 0x193   :  { %7610 = vst [vmem:[#allocation52_spill] sm:$0xff] %v5022_v51  ;;  %v1520_v20 = vmul.f32 0.5, %v1456_v47  ;;  %1656 = vmax.xlane.f32.xlu0 %v5018_v58  ;;  %v3875_v59 = vpop.f32.mrb[42].mxu1 }
 0x194   :  { %v1459_v61 = vsub.f32 %v3875_v59, %v1395_v36  ;;  %v1047_v7 = vpop.f32.mrb[43].mxu1  ;;  %v1396_v36 = vmul.f32 %v4941_v9, %v1328_v2  ;;  %v5047_v19 = vsub.f32 %v4954_v3, %v1521_v21  ;;  %v1399_v2 = vmul.f32 %v4941_v9, %v1331_v42 }
 0x195   :  { %v1458_v51 = vsub.f32 %v1047_v7, %v1394_v17  ;;  %v5034_v6 = vsub.f32 %v4954_v3, %v1520_v20  ;;  %v1335_v42 = vmul.f32 %v4982_v25, %v4982_v25 }
 0x196   :  { %1658 = vmax.xlane.f32.xlu1 %v5031_v13  ;;  %v1523_v59 = vmul.f32 0.5, %v1459_v61  ;;  %v1332_v61 = vmul.f32 %v4944_v44, %v4944_v44  ;;  %v1334_v44 = vmul.f32 %v4971_v29, %v4971_v29  ;;  %v1337_v29 = vmul.f32 %v5015_v57, %v5015_v57 }
 0x197   :  { %v1522_v22 = vmul.f32 0.5, %v1458_v51  ;;  %v642_v47 = vpop.f32.mrb[44].mxu0  ;;  %1660 = vmax.xlane.f32.xlu0 %v5034_v6  ;;  %v3878_v12 = vpop.f32.mrb[44].mxu1  ;;  %v1333_v51 = vmul.f32 %v4949_v23, %v4949_v23 }
 0x198   :  { %v1461_v20 = vsub.f32 %v3878_v12, %v1397_v10  ;;  %v5044_v17 = vpop.f32.mrb[45].mxu0  ;;  %v1057_v7 = vpop.f32.mrb[45].mxu1  ;;  %v1398_v12 = vmul.f32 %v4941_v9, %v1330_v38  ;;  %v5063_v23 = vsub.f32 %v4954_v3, %v1523_v59 }
 0x199   :  { %7611 = vst [vmem:[#allocation53_spill] sm:$0xff] %v5044_v17  ;;  %v1460_v49 = vsub.f32 %v1057_v7, %v1396_v36  ;;  %v646_v4 = vpop.f32.mrb[46].mxu0  ;;  %v5050_v46 = vsub.f32 %v4954_v3, %v1522_v22 }
 0x19a   :  { %v5054_v16 = vpop.f32.mrb[47].mxu0  ;;  %1662 = vmax.xlane.f32.xlu1 %v5047_v19  ;;  %v1525_v22 = vmul.f32 0.5, %v1461_v20 }
 0x19b   :  { %7612 = vst [vmem:[#allocation54_spill] sm:$0xff] %v5054_v16  ;;  %v1524_v10 = vmul.f32 0.5, %v1460_v49  ;;  %1664 = vmax.xlane.f32.xlu0 %v5050_v46  ;;  %v3881_v21 = vpop.f32.mrb[46].mxu1  ;;  %v1401_v49 = vmul.f32 %v4941_v9, %v1333_v51 }
 0x19c   :  { %v1463_v36 = vsub.f32 %v3881_v21, %v1399_v2  ;;  %v1067_v7 = vpop.f32.mrb[47].mxu1  ;;  %v1400_v2 = vmul.f32 %v4941_v9, %v1332_v61  ;;  %v5079_v25 = vsub.f32 %v4954_v3, %v1525_v22  ;;  %v1403_v61 = vmul.f32 %v4941_v9, %v1335_v42 }
 0x19d   :  { %v1462_v16 = vsub.f32 %v1067_v7, %v1398_v12  ;;  %v5066_v17 = vsub.f32 %v4954_v3, %v1524_v10  ;;  %v1339_v42 = vmul.f32 %v646_v4, %v646_v4 }
 0x19e   :  { %1666 = vmax.xlane.f32.xlu1 %v5063_v23  ;;  %v1527_v21 = vmul.f32 0.5, %v1463_v36  ;;  %v1336_v36 = vmul.f32 %v5006_v33, %v5006_v33  ;;  %v1338_v33 = vmul.f32 %v642_v47, %v642_v47 }
 0x19f   :  { %v1526_v38 = vmul.f32 0.5, %v1462_v16  ;;  %v652_v20 = vpop.f32.mrb[48].mxu0  ;;  %1668 = vmax.xlane.f32.xlu0 %v5066_v17  ;;  %v3884_v59 = vpop.f32.mrb[48].mxu1 }
 0x1a0   :  { %v1465_v10 = vsub.f32 %v3884_v59, %v1401_v49  ;;  %v5076_v12 = vpop.f32.mrb[49].mxu0  ;;  %v1077_v7 = vpop.f32.mrb[49].mxu1  ;;  %v1402_v59 = vmul.f32 %v4941_v9, %v1334_v44  ;;  %v5095_v57 = vsub.f32 %v4954_v3, %v1527_v21 }
 0x1a1   :  { %7613 = vst [vmem:[#allocation55_spill] sm:$0xff] %v5076_v12  ;;  %v1464_v45 = vsub.f32 %v1077_v7, %v1400_v2  ;;  %v656_v51 = vpop.f32.mrb[50].mxu0  ;;  %v5082_v41 = vsub.f32 %v4954_v3, %v1526_v38 }
 0x1a2   :  { %v5086_v16 = vpop.f32.mrb[51].mxu0  ;;  %1670 = vmax.xlane.f32.xlu1 %v5079_v25  ;;  %v1529_v38 = vmul.f32 0.5, %v1465_v10  ;;  %v1404_v10 = vmul.f32 %v4941_v9, %v1336_v36  ;;  %v1341_v47 = vmul.f32 %v656_v51, %v656_v51  ;;  %v1407_v36 = vmul.f32 %v4941_v9, %v1339_v42 }
 0x1a3   :  { %7614 = vst [vmem:[#allocation56_spill] sm:$0xff] %v5086_v16  ;;  %v1528_v49 = vmul.f32 0.5, %v1464_v45  ;;  %1672 = vmax.xlane.f32.xlu0 %v5082_v41  ;;  %v3887_v22 = vpop.f32.mrb[50].mxu1  ;;  %v1405_v45 = vmul.f32 %v4941_v9, %v1337_v29 }
 0x1a4   :  { %v1467_v2 = vsub.f32 %v3887_v22, %v1403_v61  ;;  %v1087_v7 = vpop.f32.mrb[51].mxu1 }
 0x1a5   :  { %v1466_v16 = vsub.f32 %v1087_v7, %v1402_v59  ;;  %v5098_v12 = vsub.f32 %v4954_v3, %v1528_v49  ;;  %v5107_v49 = vsub.f32 %v4954_v3, %v1529_v38  ;;  %v1406_v38 = vmul.f32 %v4941_v9, %v1338_v33 }
 0x1a6   :  { %1674 = vmax.xlane.f32.xlu1 %v5095_v57  ;;  %v1531_v61 = vmul.f32 0.5, %v1467_v2  ;;  %v1340_v2 = vmul.f32 %v652_v20, %v652_v20  ;;  %v1409_v20 = vmul.f32 %v4941_v9, %v1341_v47 }
 0x1a7   :  { %v1530_v40 = vmul.f32 0.5, %v1466_v16  ;;  %v662_v37 = vpop.f32.mrb[52].mxu0  ;;  %1676 = vmax.xlane.f32.xlu0 %v5098_v12  ;;  %v3890_v44 = vpop.f32.mrb[52].mxu1 }
 0x1a8   :  { %v1469_v21 = vsub.f32 %v3890_v44, %v1405_v45  ;;  %v5104_v22 = vpop.f32.mrb[53].mxu0  ;;  %v1097_v59 = vpop.f32.mrb[53].mxu1  ;;  %v1342_v42 = vmul.f32 %v662_v37, %v662_v37 }
 0x1a9   :  { %7615 = vst [vmem:[#allocation57_spill] sm:$0xff] %v5104_v22  ;;  %v1468_v4 = vsub.f32 %v1097_v59, %v1404_v10  ;;  %v666_v7 = vpop.f32.mrb[54].mxu0  ;;  %v5110_v29 = vsub.f32 %v4954_v3, %v1530_v40  ;;  %v5119_v40 = vsub.f32 %v4954_v3, %v1531_v61 }
 0x1aa   :  { %v5112_v16 = vpop.f32.mrb[55].mxu0  ;;  %1678 = vmax.xlane.f32.xlu1 %v5107_v49  ;;  %v1533_v22 = vmul.f32 0.5, %v1469_v21  ;;  %v1343_v35 = vmul.f32 %v666_v7, %v666_v7  ;;  %v1408_v21 = vmul.f32 %v4941_v9, %v1340_v2 }
 0x1ab   :  { %7616 = vst [vmem:[#allocation58_spill] sm:$0xff] %v5112_v16  ;;  %v1532_v45 = vmul.f32 0.5, %v1468_v4  ;;  %1680 = vmax.xlane.f32.xlu0 %v5110_v29  ;;  %v3893_v44 = vpop.f32.mrb[54].mxu1 }
 0x1ac   :  { %v1471_v10 = vsub.f32 %v3893_v44, %v1407_v36  ;;  %v1107_v59 = vpop.f32.mrb[55].mxu1  ;;  %v1411_v2 = vmul.f32 %v4941_v9, %v1343_v35 }
 0x1ad   :  { %v1470_v51 = vsub.f32 %v1107_v59, %v1406_v38  ;;  %v5122_v16 = vsub.f32 %v4954_v3, %v1532_v45  ;;  %v5131_v45 = vsub.f32 %v4954_v3, %v1533_v22  ;;  %v1410_v22 = vmul.f32 %v4941_v9, %v1342_v42 }
 0x1ae   :  { %1682 = vmax.xlane.f32.xlu1 %v5119_v40  ;;  %v1535_v36 = vmul.f32 0.5, %v1471_v10 }
 0x1af   :  { %v1534_v4 = vmul.f32 0.5, %v1470_v51  ;;  %v672_v32 = vpop.f32.mrb[56].mxu0  ;;  %1684 = vmax.xlane.f32.xlu0 %v5122_v16  ;;  %v3896_v33 = vpop.f32.mrb[56].mxu1  ;;  %7618 = vst [vmem:[#allocation60_spill] sm:$0xff] %v5131_v45 }
 0x1b0   :  { %v1473_v61 = vsub.f32 %v3896_v33, %v1409_v20  ;;  %v5128_v44 = vpop.f32.mrb[57].mxu0  ;;  %v1117_v38 = vpop.f32.mrb[57].mxu1  ;;  %v1344_v10 = vmul.f32 %v672_v32, %v672_v32 }
 0x1b1   :  { %7617 = vst [vmem:[#allocation59_spill] sm:$0xff] %v5128_v44  ;;  %v1472_v7 = vsub.f32 %v1117_v38, %v1408_v21  ;;  %v676_v59 = vpop.f32.mrb[58].mxu0  ;;  %v5134_v47 = vsub.f32 %v4954_v3, %v1534_v4  ;;  %v5143_v4 = vsub.f32 %v4954_v3, %v1535_v36 }
 0x1b2   :  { %v1345_v37 = vmul.f32 %v676_v59, %v676_v59  ;;  %v5136_v51 = vpop.f32.mrb[59].mxu0  ;;  %1686 = vmax.xlane.f32.xlu1 %v5131_v45  ;;  %v1537_v44 = vmul.f32 0.5, %v1473_v61  ;;  %v1412_v42 = vmul.f32 %v4941_v9, %v1344_v10 }
 0x1b3   :  { %7619 = vst [vmem:[#allocation61_spill] sm:$0xff] %v5134_v47  ;;  %7620 = vst [vmem:[#allocation62_spill] sm:$0xff] %v5136_v51  ;;  %v1536_v20 = vmul.f32 0.5, %v1472_v7  ;;  %1688 = vmax.xlane.f32.xlu0 %v5134_v47  ;;  %v3899_v33 = vpop.f32.mrb[58].mxu1 }
 0x1b4   :  { %v1475_v21 = vsub.f32 %v3899_v33, %v1411_v2  ;;  %v1127_v38 = vpop.f32.mrb[59].mxu1  ;;  %7621 = vst [vmem:[#allocation63_spill] sm:$0xff] %v5143_v4  ;;  %v1413_v32 = vmul.f32 %v4941_v9, %v1345_v37 }
 0x1b5   :  { %v1474_v59 = vsub.f32 %v1127_v38, %v1410_v22  ;;  %v5146_v51 = vsub.f32 %v4954_v3, %v1536_v20  ;;  %v5155_v20 = vsub.f32 %v4954_v3, %v1537_v44 }
 0x1b6   :  { %1690 = vmax.xlane.f32.xlu1 %v5143_v4  ;;  %v1539_v61 = vmul.f32 0.5, %v1475_v21 }
 0x1b7   :  { %7622 = vst [vmem:[#allocation64_spill] sm:$0xff] %v5146_v51  ;;  %v1538_v35 = vmul.f32 0.5, %v1474_v59  ;;  %v682_v7 = vpop.f32.mrb[60].mxu0  ;;  %1692 = vmax.xlane.f32.xlu0 %v5146_v51  ;;  %v3902_v31 = vpop.f32.mrb[60].mxu1  ;;  %7624 = vst [vmem:[#allocation66_spill] sm:$0xff] %v5155_v20 }
 0x1b8   :  { %v1346_v2 = vmul.f32 %v682_v7, %v682_v7  ;;  %v1477_v33 = vsub.f32 %v3902_v31, %v1413_v32  ;;  %v5152_v36 = vpop.f32.mrb[61].mxu0  ;;  %v1137_v22 = vpop.f32.mrb[61].mxu1 }
 0x1b9   :  { %7623 = vst [vmem:[#allocation65_spill] sm:$0xff] %v5152_v36  ;;  %v1476_v38 = vsub.f32 %v1137_v22, %v1412_v42  ;;  %v686_v27 = vpop.f32.mrb[62].mxu0  ;;  %v5158_v37 = vsub.f32 %v4954_v3, %v1538_v35  ;;  %v5167_v42 = vsub.f32 %v4954_v3, %v1539_v61 }
 0x1ba   :  { %v1347_v59 = vmul.f32 %v686_v27, %v686_v27  ;;  %v5160_v56 = vpop.f32.mrb[63].mxu0  ;;  %1694 = vmax.xlane.f32.xlu1 %v5155_v20  ;;  %v1414_v10 = vmul.f32 %v4941_v9, %v1346_v2  ;;  %v1541_v32 = vmul.f32 0.5, %v1477_v33 }
 0x1bb   :  { %7625 = vst [vmem:[#allocation67_spill] sm:$0xff] %v5158_v37  ;;  %7626 = vst [vmem:[#allocation68_spill] sm:$0xff] %v5160_v56  ;;  %v1540_v21 = vmul.f32 0.5, %v1476_v38  ;;  %1696 = vmax.xlane.f32.xlu0 %v5158_v37  ;;  %v3905_v31 = vpop.f32.mrb[62].mxu1 }
 0x1bc   :  { %v1415_v44 = vmul.f32 %v4941_v9, %v1347_v59  ;;  %v1147_v7 = vpop.f32.mrb[63].mxu1  ;;  %7627 = vst [vmem:[#allocation69_spill] sm:$0xff] %v5167_v42  ;;  %v5177_v61 = vsub.f32 %v4954_v3, %v1541_v32 }
 0x1bd   :  { %v1478_v35 = vsub.f32 %v1147_v7, %v1414_v10  ;;  %v5170_v27 = vsub.f32 %v4954_v3, %v1540_v21 }
 0x1be   :  { %v1479_v22 = vsub.f32 %v3905_v31, %v1415_v44  ;;  %1698 = vmax.xlane.f32.xlu1 %v5167_v42  ;;  %7630 = vst [vmem:[#allocation72_spill] sm:$0xff] %v5177_v61 }
 0x1bf   :  { %7628 = vst [vmem:[#allocation70_spill] sm:$0xff] %v5170_v27  ;;  %v1542_v56 = vmul.f32 0.5, %v1478_v35  ;;  %v692_v2 = vpop.f32.mrb[64].mxu0  ;;  %1700 = vmax.xlane.f32.xlu0 %v5170_v27  ;;  %v3908_v38 = vpop.f32.mrb[64].mxu1 }
 0x1c0   :  { %v1543_v36 = vmul.f32 0.5, %v1479_v22  ;;  %v1348_v33 = vmul.f32 %v692_v2, %v692_v2  ;;  %v5174_v24 = vpop.f32.mrb[65].mxu0  ;;  %v1157_v59 = vpop.f32.mrb[65].mxu1 }
 0x1c1   :  { %7629 = vst [vmem:[#allocation71_spill] sm:$0xff] %v5174_v24  ;;  %v696_v10 = vpop.f32.mrb[66].mxu0  ;;  %v5180_v21 = vsub.f32 %v4954_v3, %v1542_v56 }
 0x1c2   :  { %v1349_v31 = vmul.f32 %v696_v10, %v696_v10  ;;  %v1416_v44 = vmul.f32 %v4941_v9, %v1348_v33  ;;  %v5183_v7 = vpop.f32.mrb[67].mxu0  ;;  %1702 = vmax.xlane.f32.xlu1 %v5177_v61  ;;  %v5189_v32 = vsub.f32 %v4954_v3, %v1543_v36 }
 0x1c3   :  { %7631 = vst [vmem:[#allocation73_spill] sm:$0xff] %v5180_v21  ;;  %7632 = vst [vmem:[#allocation74_spill] sm:$0xff] %v5183_v7  ;;  %1704 = vmax.xlane.f32.xlu0 %v5180_v21  ;;  %v3911_v35 = vpop.f32.mrb[66].mxu1 }
 0x1c4   :  { %v1417_v22 = vmul.f32 %v4941_v9, %v1349_v31  ;;  %v1480_v2 = vsub.f32 %v1157_v59, %v1416_v44  ;;  %v1167_v24 = vpop.f32.mrb[67].mxu1  ;;  %7633 = vst [vmem:[#allocation75_spill] sm:$0xff] %v5189_v32 }
 0x1c6   :  { %v1544_v0 = vmul.f32 0.5, %v1480_v2  ;;  %1706 = vmax.xlane.f32.xlu1 %v5189_v32  ;;  %v1481_v56 = vsub.f32 %v3908_v38, %v1417_v22 }
 0x1c7   :  { %v702_v10 = vpop.f32.mrb[68].mxu0  ;;  %v3914_v33 = vpop.f32.mrb[68].mxu1 }
 0x1c8   :  { %v1350_v27 = vmul.f32 %v702_v10, %v702_v10  ;;  %v5192_v7 = vpop.f32.mrb[69].mxu0  ;;  %v1177_v61 = vpop.f32.mrb[69].mxu1  ;;  %v5195_v21 = vsub.f32 %v4954_v3, %v1544_v0  ;;  %v1545_v42 = vmul.f32 0.5, %v1481_v56 }
 0x1c9   :  { %7634 = vst [vmem:[#allocation76_spill] sm:$0xff] %v5192_v7  ;;  %v706_v31 = vpop.f32.mrb[70].mxu0 }
 0x1ca   :  { %7635 = vst [vmem:[#allocation77_spill] sm:$0xff] %v5195_v21  ;;  %v1418_v59 = vmul.f32 %v4941_v9, %v1350_v27  ;;  %v1351_v44 = vmul.f32 %v706_v31, %v706_v31  ;;  %v5198_v36 = vpop.f32.mrb[71].mxu0  ;;  %1708 = vmax.xlane.f32.xlu0 %v5195_v21  ;;  %v5202_v38 = vsub.f32 %v4954_v3, %v1545_v42 }
 0x1cb   :  { %7636 = vst [vmem:[#allocation78_spill] sm:$0xff] %v5198_v36  ;;  %v3917_v22 = vpop.f32.mrb[70].mxu1 }
 0x1cc   :  { %7637 = vst [vmem:[#allocation79_spill] sm:$0xff] %v5202_v38  ;;  %v1419_v2 = vmul.f32 %v4941_v9, %v1351_v44  ;;  %1710 = vmax.xlane.f32.xlu1 %v5202_v38  ;;  %v1187_v10 = vpop.f32.mrb[71].mxu1  ;;  %v1482_v0 = vsub.f32 %v1167_v24, %v1418_v59 }
 0x1ce   :  { %v1546_v7 = vmul.f32 0.5, %v1482_v0  ;;  %v1483_v56 = vsub.f32 %v3911_v35, %v1419_v2 }
 0x1cf   :  { %v712_v32 = vpop.f32.mrb[72].mxu0  ;;  %v5206_v37 = vpop.f32.mrb[72].mxu1 }
 0x1d0   :  { %v1352_v27 = vmul.f32 %v712_v32, %v712_v32  ;;  %v5208_v31 = vpop.f32.mrb[73].mxu0  ;;  %v5210_v36 = vpop.f32.mrb[73].mxu1  ;;  %v5213_v42 = vsub.f32 %v4954_v3, %v1546_v7  ;;  %v1547_v21 = vmul.f32 0.5, %v1483_v56 }
 0x1d1   :  { %7638 = vst [vmem:[#allocation80_spill] sm:$0xff] %v5208_v31  ;;  %v716_v20 = vpop.f32.mrb[74].mxu0 }
 0x1d2   :  { %7639 = vst [vmem:[#allocation81_spill] sm:$0xff] %v5213_v42  ;;  %v1420_v44 = vmul.f32 %v4941_v9, %v1352_v27  ;;  %v1353_v38 = vmul.f32 %v716_v20, %v716_v20  ;;  %v5216_v51 = vpop.f32.mrb[75].mxu0  ;;  %1712 = vmax.xlane.f32.xlu0 %v5213_v42  ;;  %v5220_v24 = vsub.f32 %v4954_v3, %v1547_v21 }
 0x1d3   :  { %7640 = vst [vmem:[#allocation82_spill] sm:$0xff] %v5216_v51  ;;  %v5222_v35 = vpop.f32.mrb[74].mxu1 }
 0x1d4   :  { %7641 = vst [vmem:[#allocation83_spill] sm:$0xff] %v5220_v24  ;;  %v1421_v32 = vmul.f32 %v4941_v9, %v1353_v38  ;;  %1714 = vmax.xlane.f32.xlu1 %v5220_v24  ;;  %v5226_v7 = vpop.f32.mrb[75].mxu1  ;;  %v1484_v59 = vsub.f32 %v1177_v61, %v1420_v44  ;;  %v1365_v24 = vmul.f32 %v4824_v26, %v4824_v26 }
 0x1d6   :  { %v1548_v2 = vmul.f32 0.5, %v1484_v59  ;;  %v1485_v0 = vsub.f32 %v3914_v33, %v1421_v32  ;;  %v1364_v59 = vmul.f32 %v4818_v54, %v4818_v54 }
 0x1d7   :  { %v722_v56 = vpop.f32.mrb[76].mxu0  ;;  %v5228_v20 = vpop.f32.mrb[76].mxu1 }
 0x1d8   :  { %v1354_v27 = vmul.f32 %v722_v56, %v722_v56  ;;  %v5230_v51 = vpop.f32.mrb[77].mxu0  ;;  %v5232_v31 = vpop.f32.mrb[77].mxu1  ;;  %v5235_v21 = vsub.f32 %v4954_v3, %v1548_v2  ;;  %v1549_v42 = vmul.f32 0.5, %v1485_v0  ;;  %v1432_v4 = vmul.f32 %v4941_v9, %v1364_v59 }
 0x1d9   :  { %7642 = vst [vmem:[#allocation84_spill] sm:$0xff] %v5230_v51  ;;  %v726_v38 = vpop.f32.mrb[78].mxu0  ;;  %v1366_v51 = vmul.f32 %v4830_v30, %v4830_v30 }
 0x1da   :  { %7643 = vst [vmem:[#allocation85_spill] sm:$0xff] %v5235_v21  ;;  %v1422_v61 = vmul.f32 %v4941_v9, %v1354_v27  ;;  %v1355_v44 = vmul.f32 %v726_v38, %v726_v38  ;;  %v5240_v33 = vpop.f32.mrb[79].mxu0  ;;  %1716 = vmax.xlane.f32.xlu0 %v5235_v21  ;;  %v5244_v32 = vsub.f32 %v4954_v3, %v1549_v42 }
 0x1db   :  { %7644 = vst [vmem:[#allocation86_spill] sm:$0xff] %v5240_v33  ;;  %v5248_v2 = vpop.f32.mrb[78].mxu1  ;;  %v1367_v27 = vmul.f32 %v4836_v34, %v4836_v34  ;;  %v1433_v38 = vmul.f32 %v4941_v9, %v1365_v24  ;;  %v1369_v24 = vmul.f32 %v4850_v43, %v4850_v43 }
 0x1dc   :  { %7645 = vst [vmem:[#allocation87_spill] sm:$0xff] %v5244_v32  ;;  %v1423_v0 = vmul.f32 %v4941_v9, %v1355_v44  ;;  %1718 = vmax.xlane.f32.xlu1 %v5244_v32  ;;  %v5252_v26 = vpop.f32.mrb[79].mxu1  ;;  %v1486_v56 = vsub.f32 %v1187_v10, %v1422_v61 }
 0x1dd   :  { %v1435_v30 = vmul.f32 %v4941_v9, %v1367_v27 }
 0x1de   :  { %v1550_v33 = vmul.f32 0.5, %v1486_v56  ;;  %v1487_v42 = vsub.f32 %v3917_v22, %v1423_v0 }
 0x1df   :  { %v732_v54 = vpop.f32.mrb[80].mxu0  ;;  %v3932_v21 = vpop.f32.mrb[80].mxu1 }
 0x1e0   :  { %v1356_v44 = vmul.f32 %v732_v54, %v732_v54  ;;  %v1497_v47 = vsub.f32 %v3932_v21, %v1433_v38  ;;  %v5260_v32 = vpop.f32.mrb[81].mxu0  ;;  %v1237_v45 = vpop.f32.mrb[81].mxu1  ;;  %v5263_v10 = vsub.f32 %v4954_v3, %v1550_v33  ;;  %v1551_v34 = vmul.f32 0.5, %v1487_v42 }
 0x1e1   :  { %7646 = vst [vmem:[#allocation88_spill] sm:$0xff] %v5260_v32  ;;  %v1496_v22 = vsub.f32 %v1237_v45, %v1432_v4  ;;  %v736_v61 = vpop.f32.mrb[82].mxu0  ;;  %v1368_v33 = vmul.f32 %v4844_v39, %v4844_v39  ;;  %v1434_v45 = vmul.f32 %v4941_v9, %v1366_v51  ;;  %v1437_v39 = vmul.f32 %v4941_v9, %v1369_v24 }
 0x1e2   :  { %v1424_v0 = vmul.f32 %v4941_v9, %v1356_v44  ;;  %v1561_v56 = vmul.f32 0.5, %v1497_v47  ;;  %v1357_v59 = vmul.f32 %v736_v61, %v736_v61  ;;  %1720 = vmax.xlane.f32.xlu0 %v5263_v10  ;;  %v5270_v21 = vpop.f32.mrb[83].mxu0  ;;  %v5273_v38 = vsub.f32 %v4954_v3, %v1551_v34 }
 0x1e3   :  { %7647 = vst [vmem:[#allocation89_spill] sm:$0xff] %v5270_v21  ;;  %v1560_v42 = vmul.f32 0.5, %v1496_v22  ;;  %v3935_v43 = vpop.f32.mrb[82].mxu1  ;;  %v1371_v44 = vmul.f32 %v4866_v55, %v4866_v55 }
 0x1e4   :  { %v1425_v4 = vmul.f32 %v4941_v9, %v1357_v59  ;;  %v1499_v27 = vsub.f32 %v3935_v43, %v1435_v30  ;;  %1722 = vmax.xlane.f32.xlu1 %v5273_v38  ;;  %v1247_v47 = vpop.f32.mrb[83].mxu1  ;;  %v1488_v54 = vsub.f32 %v5210_v36, %v1424_v0  ;;  %v5288_v51 = vsub.f32 %v4954_v3, %v1561_v56 }
 0x1e5   :  { %v1498_v34 = vsub.f32 %v1247_v47, %v1434_v45  ;;  %v5284_v61 = vsub.f32 %v4954_v3, %v1560_v42  ;;  %v1370_v43 = vmul.f32 %v4858_v48, %v4858_v48  ;;  %v1436_v0 = vmul.f32 %v4941_v9, %v1368_v33 }
 0x1e6   :  { %v1563_v22 = vmul.f32 0.5, %v1499_v27  ;;  %v1552_v59 = vmul.f32 0.5, %v1488_v54  ;;  %v1489_v30 = vsub.f32 %v5206_v37, %v1425_v4  ;;  %v1373_v37 = vmul.f32 %v4882_v1, %v4882_v1 }
 0x1e7   :  { %v742_v36 = vpop.f32.mrb[84].mxu0  ;;  %1740 = vmax.xlane.f32.xlu0 %v5284_v61  ;;  %v3938_v55 = vpop.f32.mrb[84].mxu1  ;;  %v1562_v48 = vmul.f32 0.5, %v1498_v34  ;;  %v1439_v54 = vmul.f32 %v4941_v9, %v1371_v44  ;;  %v1438_v34 = vmul.f32 %v4941_v9, %v1370_v43  ;;  %v1375_v44 = vmul.f32 %v4898_v8, %v4898_v8 }
 0x1e8   :  { %v1358_v42 = vmul.f32 %v742_v36, %v742_v36  ;;  %v1501_v45 = vsub.f32 %v3938_v55, %v1437_v39  ;;  %v5295_v47 = vpop.f32.mrb[85].mxu0  ;;  %1742 = vmax.xlane.f32.xlu1 %v5288_v51  ;;  %v1257_v24 = vpop.f32.mrb[85].mxu1  ;;  %v5299_v56 = vsub.f32 %v4954_v3, %v1552_v59  ;;  %v5306_v39 = vsub.f32 %v4954_v3, %v1563_v22 }
 0x1e9   :  { %7648 = vst [vmem:[#allocation90_spill] sm:$0xff] %v5295_v47  ;;  %v1500_v4 = vsub.f32 %v1257_v24, %v1436_v0  ;;  %v746_v27 = vpop.f32.mrb[86].mxu0  ;;  %v1553_v47 = vmul.f32 0.5, %v1489_v30  ;;  %v1372_v59 = vmul.f32 %v4874_v60, %v4874_v60  ;;  %v5320_v60 = vsub.f32 %v4954_v3, %v1562_v48 }
 0x1ea   :  { %v1426_v33 = vmul.f32 %v4941_v9, %v1358_v42  ;;  %v1359_v36 = vmul.f32 %v746_v27, %v746_v27  ;;  %v5308_v55 = vpop.f32.mrb[87].mxu0  ;;  %v1441_v21 = vmul.f32 %v4941_v9, %v1373_v37 }
 0x1eb   :  { %7649 = vst [vmem:[#allocation91_spill] sm:$0xff] %v5308_v55  ;;  %1724 = vmax.xlane.f32.xlu0 %v5299_v56  ;;  %v3941_v1 = vpop.f32.mrb[86].mxu1  ;;  %v1564_v30 = vmul.f32 0.5, %v1500_v4  ;;  %v1565_v55 = vmul.f32 0.5, %v1501_v45  ;;  %v5324_v43 = vsub.f32 %v4954_v3, %v1553_v47  ;;  %v1440_v4 = vmul.f32 %v4941_v9, %v1372_v59 }
 0x1ec   :  { %v1427_v0 = vmul.f32 %v4941_v9, %v1359_v36  ;;  %v1503_v42 = vsub.f32 %v3941_v1, %v1439_v54  ;;  %1746 = vmax.xlane.f32.xlu1 %v5306_v39  ;;  %v1267_v22 = vpop.f32.mrb[87].mxu1  ;;  %v1490_v24 = vsub.f32 %v5226_v7, %v1426_v33  ;;  %v1374_v54 = vmul.f32 %v4890_v5, %v4890_v5 }
 0x1ed   :  { %v1502_v27 = vsub.f32 %v1267_v22, %v1438_v34  ;;  %v1443_v47 = vmul.f32 %v4941_v9, %v1375_v44  ;;  %v5338_v34 = vsub.f32 %v4954_v3, %v1564_v30  ;;  %v1376_v44 = vmul.f32 %v4906_v11, %v4906_v11 }
 0x1ee   :  { %v1491_v8 = vsub.f32 %v5222_v35, %v1427_v0  ;;  %v1377_v35 = vmul.f32 %v4914_v14, %v4914_v14  ;;  %v1554_v0 = vmul.f32 0.5, %v1490_v24  ;;  %v1567_v22 = vmul.f32 0.5, %v1503_v42 }
 0x1ef   :  { %v752_v36 = vpop.f32.mrb[88].mxu0  ;;  %1744 = vmax.xlane.f32.xlu0 %v5320_v60  ;;  %v3944_v7 = vpop.f32.mrb[88].mxu1 }
 0x1f0   :  { %v1360_v33 = vmul.f32 %v752_v36, %v752_v36  ;;  %v1505_v48 = vsub.f32 %v3944_v7, %v1441_v21  ;;  %v5331_v1 = vpop.f32.mrb[89].mxu0  ;;  %1726 = vmax.xlane.f32.xlu1 %v5324_v43  ;;  %v1277_v45 = vpop.f32.mrb[89].mxu1  ;;  %v5342_v36 = vsub.f32 %v4954_v3, %v1565_v55  ;;  %v1379_v55 = vmul.f32 %v4930_v52, %v4930_v52 }
 0x1f1   :  { %7650 = vst [vmem:[#allocation92_spill] sm:$0xff] %v5331_v1  ;;  %v1504_v37 = vsub.f32 %v1277_v45, %v1440_v4  ;;  %v756_v5 = vpop.f32.mrb[90].mxu0  ;;  %v1442_v4 = vmul.f32 %v4941_v9, %v1374_v54  ;;  %v1566_v45 = vmul.f32 0.5, %v1502_v27  ;;  %v5356_v11 = vsub.f32 %v4954_v3, %v1554_v0 }
 0x1f2   :  { %v1428_v59 = vmul.f32 %v4941_v9, %v1360_v33  ;;  %v1361_v21 = vmul.f32 %v756_v5, %v756_v5  ;;  %v5344_v7 = vpop.f32.mrb[91].mxu0  ;;  %v5360_v54 = vsub.f32 %v4954_v3, %v1567_v22  ;;  %v1444_v27 = vmul.f32 %v4941_v9, %v1376_v44 }
 0x1f3   :  { %7651 = vst [vmem:[#allocation93_spill] sm:$0xff] %v5344_v7  ;;  %1748 = vmax.xlane.f32.xlu0 %v5338_v34  ;;  %v3947_v14 = vpop.f32.mrb[90].mxu1  ;;  %v1445_v7 = vmul.f32 %v4941_v9, %v1377_v35  ;;  %v1568_v22 = vmul.f32 0.5, %v1504_v37 }
 0x1f4   :  { %v1429_v30 = vmul.f32 %v4941_v9, %v1361_v21  ;;  %v1507_v24 = vsub.f32 %v3947_v14, %v1443_v47  ;;  %1750 = vmax.xlane.f32.xlu1 %v5342_v36  ;;  %v1287_v42 = vpop.f32.mrb[91].mxu1  ;;  %v1492_v33 = vsub.f32 %v5232_v31, %v1428_v59  ;;  %v1555_v21 = vmul.f32 0.5, %v1491_v8 }
 0x1f5   :  { %v1506_v5 = vsub.f32 %v1287_v42, %v1442_v4  ;;  %v1378_v14 = vmul.f32 %v4922_v50, %v4922_v50  ;;  %v1447_v50 = vmul.f32 %v4941_v9, %v1379_v55 }
 0x1f6   :  { %v1493_v47 = vsub.f32 %v5228_v20, %v1429_v30  ;;  %v5371_v20 = vsub.f32 %v4954_v3, %v1566_v45  ;;  %v1569_v30 = vmul.f32 0.5, %v1505_v48  ;;  %v5376_v44 = vsub.f32 %v4954_v3, %v1555_v21 }
 0x1f7   :  { %v762_v31 = vpop.f32.mrb[92].mxu0  ;;  %1728 = vmax.xlane.f32.xlu0 %v5356_v11  ;;  %v3950_v52 = vpop.f32.mrb[92].mxu1  ;;  %v1446_v37 = vmul.f32 %v4941_v9, %v1378_v14  ;;  %v1556_v21 = vmul.f32 0.5, %v1492_v33 }
 0x1f8   :  { %v1362_v59 = vmul.f32 %v762_v31, %v762_v31  ;;  %v1509_v0 = vsub.f32 %v3950_v52, %v1445_v7  ;;  %v5367_v4 = vpop.f32.mrb[93].mxu0  ;;  %1754 = vmax.xlane.f32.xlu1 %v5360_v54  ;;  %v1297_v35 = vpop.f32.mrb[93].mxu1 }
 0x1f9   :  { %7652 = vst [vmem:[#allocation94_spill] sm:$0xff] %v5367_v4  ;;  %v1508_v8 = vsub.f32 %v1297_v35, %v1444_v27  ;;  %v766_v42 = vpop.f32.mrb[94].mxu0  ;;  %v1571_v35 = vmul.f32 0.5, %v1507_v24 }
 0x1fa   :  { %v1430_v1 = vmul.f32 %v4941_v9, %v1362_v59  ;;  %v1363_v32 = vmul.f32 %v766_v42, %v766_v42  ;;  %v5378_v7 = vpop.f32.mrb[95].mxu0  ;;  %v5386_v59 = vsub.f32 %v4954_v3, %v1568_v22  ;;  %v5389_v42 = vsub.f32 %v4954_v3, %v1569_v30 }
 0x1fb   :  { %7653 = vst [vmem:[#allocation95_spill] sm:$0xff] %v5378_v7  ;;  %1752 = vmax.xlane.f32.xlu0 %v5371_v20  ;;  %v3953_v31 = vpop.f32.mrb[94].mxu1  ;;  %v1572_v24 = vmul.f32 0.5, %v1508_v8 }
 0x1fc   :  { %v1431_v52 = vmul.f32 %v4941_v9, %v1363_v32  ;;  %v1511_v45 = vsub.f32 %v3953_v31, %v1447_v50  ;;  %1730 = vmax.xlane.f32.xlu1 %v5376_v44  ;;  %v1307_v55 = vpop.f32.mrb[95].mxu1  ;;  %v1494_v48 = vsub.f32 %v5252_v26, %v1430_v1  ;;  %v1570_v9 = vmul.f32 0.5, %v1506_v5 }
 0x1fd   :  { %v1510_v27 = vsub.f32 %v1307_v55, %v1446_v37  ;;  %v5395_v32 = vsub.f32 %v4954_v3, %v1556_v21  ;;  %v5398_v26 = vsub.f32 %v4954_v3, %v1571_v35  ;;  %v1557_v1 = vmul.f32 0.5, %v1493_v47 }
 0x1fe   :  { %v1495_v7 = vsub.f32 %v5248_v2, %v1431_v52  ;;  %v5403_v33 = vsub.f32 %v4954_v3, %v1570_v9  ;;  %v1573_v2 = vmul.f32 0.5, %v1509_v0  ;;  %v5411_v5 = vsub.f32 %v4954_v3, %v1572_v24 }
 0x1ff   :  { %1756 = vmax.xlane.f32.xlu0 %v5386_v59  ;;  %v5406_v14 = vsub.f32 %v4954_v3, %v1557_v1  ;;  %v1558_v47 = vmul.f32 0.5, %v1494_v48  ;;  %v1575_v22 = vmul.f32 0.5, %v1511_v45  ;;  %v1574_v0 = vmul.f32 0.5, %v1510_v27 }
 0x200   :  { %1758 = vmax.xlane.f32.xlu1 %v5389_v42  ;;  %v5414_v50 = vsub.f32 %v4954_v3, %v1573_v2  ;;  %v1559_v31 = vmul.f32 0.5, %v1495_v7 }
 0x201   :  { %v5419_v8 = vsub.f32 %v4954_v3, %v1558_v47  ;;  %v5422_v30 = vsub.f32 %v4954_v3, %v1575_v22  ;;  %v5427_v37 = vsub.f32 %v4954_v3, %v1574_v0 }
 0x202   :  { %v5430_v52 = vsub.f32 %v4954_v3, %v1559_v31 }
 0x203   :  { %1732 = vmax.xlane.f32.xlu0 %v5395_v32 }
 0x204   :  { %1762 = vmax.xlane.f32.xlu1 %v5398_v26 }
 0x207   :  { %1760 = vmax.xlane.f32.xlu0 %v5403_v33 }
 0x208   :  { %1734 = vmax.xlane.f32.xlu1 %v5406_v14 }
 0x20b   :  { %1764 = vmax.xlane.f32.xlu0 %v5411_v5 }
 0x20c   :  { %1766 = vmax.xlane.f32.xlu1 %v5414_v50 }
 0x20f   :  { %1736 = vmax.xlane.f32.xlu0 %v5419_v8 }
 0x210   :  { %1770 = vmax.xlane.f32.xlu1 %v5422_v30 }
 0x213   :  { %v5432_v45 = vpop.xlane.xlu0 %1646  ;;  %1768 = vmax.xlane.f32.xlu0 %v5427_v37 }
 0x214   :  { %v1773_v55 = vsub.f32 %v4963_v62, %v5432_v45  ;;  %1738 = vmax.xlane.f32.xlu1 %v5430_v52 }
 0x216   :  { %v1838_v7 = vmul.f32 1.442695, %v1773_v55 }
 0x217   :  { %v5438_v48 = vpop.xlane.xlu0 %1644  ;;  %v5440_v27 = vpop.xlane.xlu1 %1650 }
 0x218   :  { %4100 = vpow2.f32 %v1838_v7  ;;  %v1772_v21 = vsub.f32 %v4977_v53, %v5438_v48  ;;  %v1775_v3 = vsub.f32 %v4980_v18, %v5440_v27 }
 0x21a   :  { %v1836_v35 = vmul.f32 1.442695, %v1772_v21  ;;  %v1842_v9 = vmul.f32 1.442695, %v1775_v3 }
 0x21b   :  { %v5446_v1 = vpop.xlane.xlu1 %1648 }
 0x21c   :  { %4102 = vpow2.f32 %v1836_v35  ;;  %v1774_v62 = vsub.f32 %v4995_v63, %v5446_v1  ;;  %v5450_v24 = vpop.xlane.xlu0 %1652 }
 0x21d   :  { %4104 = vpow2.f32 %v1842_v9  ;;  %v1776_v2 = vsub.f32 %v4998_v15, %v5450_v24 }
 0x21e   :  { %v1840_v47 = vmul.f32 1.442695, %v1774_v62 }
 0x21f   :  { %v1844_v22 = vmul.f32 1.442695, %v1776_v2  ;;  %v5454_v53 = vpop.xlane.xlu1 %1654 }
 0x220   :  { %4106 = vpow2.f32 %v1840_v47  ;;  %v1777_v18 = vsub.f32 %v5013_v28, %v5454_v53  ;;  %v5458_v0 = vpop.xlane.xlu0 %1656 }
 0x221   :  { %v1778_v31 = vsub.f32 %v5018_v58, %v5458_v0  ;;  %4108 = vpow2.f32 %v1844_v22 }
 0x222   :  { %v4101_v63 = vpop.eup %4100  ;;  %v1846_v55 = vmul.f32 1.442695, %v1777_v18 }
 0x223   :  { %v1848_v7 = vmul.f32 1.442695, %v1778_v31  ;;  %v5462_v21 = vpop.xlane.xlu1 %1658  ;;  %1966 = vadd.xlane.f32.xlu1 %v4101_v63 }
 0x224   :  { %4110 = vpow2.f32 %v1846_v55  ;;  %v1779_v15 = vsub.f32 %v5031_v13, %v5462_v21  ;;  %v5466_v3 = vpop.xlane.xlu0 %1660 }
 0x225   :  { %v1780_v28 = vsub.f32 %v5034_v6, %v5466_v3  ;;  %4112 = vpow2.f32 %v1848_v7 }
 0x226   :  { %v4103_v35 = vpop.eup %4102  ;;  %v1850_v9 = vmul.f32 1.442695, %v1779_v15 }
 0x227   :  { %v4105_v62 = vpop.eup %4104  ;;  %v1852_v58 = vmul.f32 1.442695, %v1780_v28  ;;  %v5470_v2 = vpop.xlane.xlu1 %1662  ;;  %1964 = vadd.xlane.f32.xlu0 %v4103_v35 }
 0x228   :  { %4114 = vpow2.f32 %v1850_v9  ;;  %v1781_v47 = vsub.f32 %v5047_v19, %v5470_v2  ;;  %1970 = vadd.xlane.f32.xlu1 %v4105_v62  ;;  %v5474_v22 = vpop.xlane.xlu0 %1664 }
 0x229   :  { %v1782_v13 = vsub.f32 %v5050_v46, %v5474_v22  ;;  %4116 = vpow2.f32 %v1852_v58 }
 0x22a   :  { %v4107_v18 = vpop.eup %4106  ;;  %v1854_v6 = vmul.f32 1.442695, %v1781_v47 }
 0x22b   :  { %v1856_v31 = vmul.f32 1.442695, %v1782_v13  ;;  %v5478_v63 = vpop.xlane.xlu1 %1666  ;;  %1968 = vadd.xlane.f32.xlu0 %v4107_v18  ;;  %v4109_v19 = vpop.eup %4108 }
 0x22c   :  { %4118 = vpow2.f32 %v1854_v6  ;;  %v1783_v55 = vsub.f32 %v5063_v23, %v5478_v63  ;;  %v5482_v7 = vpop.xlane.xlu0 %1668 }
 0x22d   :  { %v1784_v15 = vsub.f32 %v5066_v17, %v5482_v7  ;;  %4120 = vpow2.f32 %v1856_v31 }
 0x22e   :  { %v4111_v28 = vpop.eup %4110  ;;  %v1858_v35 = vmul.f32 1.442695, %v1783_v55 }
 0x22f   :  { %v1860_v46 = vmul.f32 1.442695, %v1784_v15  ;;  %v5486_v9 = vpop.xlane.xlu1 %1670  ;;  %1974 = vadd.xlane.f32.xlu1 %v4111_v28  ;;  %1972 = vadd.xlane.f32.xlu0 %v4109_v19  ;;  %v4113_v23 = vpop.eup %4112 }
 0x230   :  { %4122 = vpow2.f32 %v1858_v35  ;;  %v1785_v62 = vsub.f32 %v5079_v25, %v5486_v9  ;;  %v5490_v58 = vpop.xlane.xlu0 %1672 }
 0x231   :  { %v1786_v47 = vsub.f32 %v5082_v41, %v5490_v58  ;;  %4124 = vpow2.f32 %v1860_v46 }
 0x232   :  { %v4115_v13 = vpop.eup %4114  ;;  %v1862_v17 = vmul.f32 1.442695, %v1785_v62 }
 0x233   :  { %v1864_v18 = vmul.f32 1.442695, %v1786_v47  ;;  %v5494_v6 = vpop.xlane.xlu1 %1674  ;;  %1978 = vadd.xlane.f32.xlu1 %v4115_v13  ;;  %1976 = vadd.xlane.f32.xlu0 %v4113_v23  ;;  %v4117_v25 = vpop.eup %4116 }
 0x234   :  { %4126 = vpow2.f32 %v1862_v17  ;;  %v1787_v31 = vsub.f32 %v5095_v57, %v5494_v6  ;;  %v5498_v55 = vpop.xlane.xlu0 %1676 }
 0x235   :  { %7654 = vst [vmem:[#allocation96_spill] sm:$0xff] %v5498_v55  ;;  %v1788_v19 = vsub.f32 %v5098_v12, %v5498_v55  ;;  %4128 = vpow2.f32 %v1864_v18 }
 0x236   :  { %v4119_v15 = vpop.eup %4118  ;;  %v1866_v41 = vmul.f32 1.442695, %v1787_v31 }
 0x237   :  { %v1868_v28 = vmul.f32 1.442695, %v1788_v19  ;;  %v5502_v35 = vpop.xlane.xlu1 %1678  ;;  %1982 = vadd.xlane.f32.xlu1 %v4119_v15  ;;  %1980 = vadd.xlane.f32.xlu0 %v4117_v25  ;;  %v4121_v57 = vpop.eup %4120 }
 0x238   :  { %4130 = vpow2.f32 %v1866_v41  ;;  %v1789_v46 = vsub.f32 %v5107_v49, %v5502_v35  ;;  %v5506_v62 = vpop.xlane.xlu0 %1680 }
 0x239   :  { %7655 = vst [vmem:[#allocation97_spill] sm:$0xff] %v5506_v62  ;;  %v1790_v23 = vsub.f32 %v5110_v29, %v5506_v62  ;;  %4132 = vpow2.f32 %v1868_v28  ;;  %v7659_v28 = vld [vmem:[#allocation60_spill] sm:$0xff] }
 0x23a   :  { %v4123_v47 = vpop.eup %4122  ;;  %v1870_v12 = vmul.f32 1.442695, %v1789_v46 }
 0x23b   :  { %v1872_v13 = vmul.f32 1.442695, %v1790_v23  ;;  %v5510_v17 = vpop.xlane.xlu1 %1682  ;;  %1986 = vadd.xlane.f32.xlu1 %v4123_v47  ;;  %1984 = vadd.xlane.f32.xlu0 %v4121_v57  ;;  %v4125_v49 = vpop.eup %4124  ;;  %v7661_v23 = vld [vmem:[#allocation61_spill] sm:$0xff] }
 0x23c   :  { %7656 = vst [vmem:[#allocation98_spill] sm:$0xff] %v5510_v17  ;;  %4134 = vpow2.f32 %v1870_v12  ;;  %v1791_v18 = vsub.f32 %v5119_v40, %v5510_v17  ;;  %v5514_v31 = vpop.xlane.xlu0 %1684 }
 0x23d   :  { %7657 = vst [vmem:[#allocation99_spill] sm:$0xff] %v5514_v31  ;;  %v1792_v25 = vsub.f32 %v5122_v16, %v5514_v31  ;;  %4136 = vpow2.f32 %v1872_v13 }
 0x23e   :  { %v4127_v19 = vpop.eup %4126  ;;  %v1874_v29 = vmul.f32 1.442695, %v1791_v18 }
 0x23f   :  { %v1876_v15 = vmul.f32 1.442695, %v1792_v25  ;;  %v5518_v41 = vpop.xlane.xlu1 %1686  ;;  %1990 = vadd.xlane.f32.xlu1 %v4127_v19  ;;  %1988 = vadd.xlane.f32.xlu0 %v4125_v49  ;;  %v4129_v40 = vpop.eup %4128  ;;  %v7663_v49 = vld [vmem:[#allocation63_spill] sm:$0xff] }
 0x240   :  { %7658 = vst [vmem:[#allocation100_spill] sm:$0xff] %v5518_v41  ;;  %4138 = vpow2.f32 %v1874_v29  ;;  %v1793_v46 = vsub.f32 %v7659_v28, %v5518_v41  ;;  %v5522_v57 = vpop.xlane.xlu0 %1688  ;;  %v7665_v28 = vld [vmem:[#allocation64_spill] sm:$0xff] }
 0x241   :  { %7660 = vst [vmem:[#allocation60_spill] sm:$0xff] %v5522_v57  ;;  %v1794_v47 = vsub.f32 %v7661_v23, %v5522_v57  ;;  %4140 = vpow2.f32 %v1876_v15 }
 0x242   :  { %v4131_v12 = vpop.eup %4130  ;;  %v1878_v16 = vmul.f32 1.442695, %v1793_v46 }
 0x243   :  { %v1880_v18 = vmul.f32 1.442695, %v1794_v47  ;;  %v5526_v13 = vpop.xlane.xlu1 %1690  ;;  %1994 = vadd.xlane.f32.xlu1 %v4131_v12  ;;  %1992 = vadd.xlane.f32.xlu0 %v4129_v40  ;;  %v4133_v29 = vpop.eup %4132  ;;  %v7667_v40 = vld [vmem:[#allocation66_spill] sm:$0xff] }
 0x244   :  { %7662 = vst [vmem:[#allocation61_spill] sm:$0xff] %v5526_v13  ;;  %4142 = vpow2.f32 %v1878_v16  ;;  %v1795_v25 = vsub.f32 %v7663_v49, %v5526_v13  ;;  %v5530_v19 = vpop.xlane.xlu0 %1692  ;;  %v7669_v49 = vld [vmem:[#allocation67_spill] sm:$0xff] }
 0x245   :  { %7664 = vst [vmem:[#allocation63_spill] sm:$0xff] %v5530_v19  ;;  %v1796_v4 = vsub.f32 %v7665_v28, %v5530_v19  ;;  %4144 = vpow2.f32 %v1880_v18 }
 0x246   :  { %v4135_v31 = vpop.eup %4134  ;;  %v1882_v23 = vmul.f32 1.442695, %v1795_v25 }
 0x247   :  { %v1884_v46 = vmul.f32 1.442695, %v1796_v4  ;;  %v5534_v15 = vpop.xlane.xlu1 %1694  ;;  %1998 = vadd.xlane.f32.xlu1 %v4135_v31  ;;  %1996 = vadd.xlane.f32.xlu0 %v4133_v29  ;;  %v4137_v16 = vpop.eup %4136  ;;  %v7671_v4 = vld [vmem:[#allocation69_spill] sm:$0xff] }
 0x248   :  { %7666 = vst [vmem:[#allocation64_spill] sm:$0xff] %v5534_v15  ;;  %4146 = vpow2.f32 %v1882_v23  ;;  %v1797_v47 = vsub.f32 %v7667_v40, %v5534_v15  ;;  %v5538_v12 = vpop.xlane.xlu0 %1696  ;;  %v7673_v40 = vld [vmem:[#allocation70_spill] sm:$0xff] }
 0x249   :  { %7668 = vst [vmem:[#allocation66_spill] sm:$0xff] %v5538_v12  ;;  %v1798_v57 = vsub.f32 %v7669_v49, %v5538_v12  ;;  %4148 = vpow2.f32 %v1884_v46 }
 0x24a   :  { %v4139_v13 = vpop.eup %4138  ;;  %v1886_v28 = vmul.f32 1.442695, %v1797_v47 }
 0x24b   :  { %v1888_v25 = vmul.f32 1.442695, %v1798_v57  ;;  %v5542_v18 = vpop.xlane.xlu1 %1698  ;;  %2002 = vadd.xlane.f32.xlu1 %v4139_v13  ;;  %2000 = vadd.xlane.f32.xlu0 %v4137_v16  ;;  %v4141_v23 = vpop.eup %4140  ;;  %v7675_v57 = vld [vmem:[#allocation72_spill] sm:$0xff] }
 0x24c   :  { %7670 = vst [vmem:[#allocation67_spill] sm:$0xff] %v5542_v18  ;;  %4150 = vpow2.f32 %v1886_v28  ;;  %v1799_v31 = vsub.f32 %v7671_v4, %v5542_v18  ;;  %v5546_v29 = vpop.xlane.xlu0 %1700  ;;  %v7677_v4 = vld [vmem:[#allocation73_spill] sm:$0xff] }
 0x24d   :  { %7672 = vst [vmem:[#allocation69_spill] sm:$0xff] %v5546_v29  ;;  %v1800_v19 = vsub.f32 %v7673_v40, %v5546_v29  ;;  %4152 = vpow2.f32 %v1888_v25 }
 0x24e   :  { %v4143_v15 = vpop.eup %4142  ;;  %v1890_v49 = vmul.f32 1.442695, %v1799_v31 }
 0x24f   :  { %v1892_v47 = vmul.f32 1.442695, %v1800_v19  ;;  %v5550_v46 = vpop.xlane.xlu1 %1702  ;;  %2006 = vadd.xlane.f32.xlu1 %v4143_v15  ;;  %2004 = vadd.xlane.f32.xlu0 %v4141_v23  ;;  %v4145_v28 = vpop.eup %4144  ;;  %v7679_v19 = vld [vmem:[#allocation75_spill] sm:$0xff] }
 0x250   :  { %7674 = vst [vmem:[#allocation70_spill] sm:$0xff] %v5550_v46  ;;  %4154 = vpow2.f32 %v1890_v49  ;;  %v1801_v13 = vsub.f32 %v7675_v57, %v5550_v46  ;;  %v5554_v16 = vpop.xlane.xlu0 %1704 }
 0x251   :  { %7676 = vst [vmem:[#allocation72_spill] sm:$0xff] %v5554_v16  ;;  %v1802_v12 = vsub.f32 %v7677_v4, %v5554_v16  ;;  %4156 = vpow2.f32 %v1892_v47  ;;  %v7681_v47 = vld [vmem:[#allocation77_spill] sm:$0xff] }
 0x252   :  { %v4147_v18 = vpop.eup %4146  ;;  %v1894_v40 = vmul.f32 1.442695, %v1801_v13 }
 0x253   :  { %v1896_v31 = vmul.f32 1.442695, %v1802_v12  ;;  %v5558_v25 = vpop.xlane.xlu1 %1706  ;;  %2010 = vadd.xlane.f32.xlu1 %v4147_v18  ;;  %2008 = vadd.xlane.f32.xlu0 %v4145_v28  ;;  %v4149_v23 = vpop.eup %4148 }
 0x254   :  { %7678 = vst [vmem:[#allocation73_spill] sm:$0xff] %v5558_v25  ;;  %4158 = vpow2.f32 %v1894_v40  ;;  %v1803_v15 = vsub.f32 %v7679_v19, %v5558_v25  ;;  %v7683_v40 = vld [vmem:[#allocation79_spill] sm:$0xff] }
 0x255   :  { %4160 = vpow2.f32 %v1896_v31 }
 0x256   :  { %v4151_v49 = vpop.eup %4150  ;;  %v1898_v57 = vmul.f32 1.442695, %v1803_v15 }
 0x257   :  { %v5562_v29 = vpop.xlane.xlu0 %1708  ;;  %2014 = vadd.xlane.f32.xlu1 %v4151_v49  ;;  %2012 = vadd.xlane.f32.xlu0 %v4149_v23  ;;  %v4153_v13 = vpop.eup %4152  ;;  %v7685_v49 = vld [vmem:[#allocation81_spill] sm:$0xff] }
 0x258   :  { %7680 = vst [vmem:[#allocation75_spill] sm:$0xff] %v5562_v29  ;;  %4162 = vpow2.f32 %v1898_v57  ;;  %v1804_v12 = vsub.f32 %v7681_v47, %v5562_v29 }
 0x259   :  { %v5566_v4 = vpop.xlane.xlu1 %1710 }
 0x25a   :  { %7682 = vst [vmem:[#allocation77_spill] sm:$0xff] %v5566_v4  ;;  %v4155_v18 = vpop.eup %4154  ;;  %v1900_v28 = vmul.f32 1.442695, %v1804_v12  ;;  %v1805_v19 = vsub.f32 %v7683_v40, %v5566_v4 }
 0x25b   :  { %2018 = vadd.xlane.f32.xlu1 %v4155_v18  ;;  %2016 = vadd.xlane.f32.xlu0 %v4153_v13  ;;  %v4157_v15 = vpop.eup %4156  ;;  %v7687_v18 = vld [vmem:[#allocation83_spill] sm:$0xff] }
 0x25c   :  { %4164 = vpow2.f32 %v1900_v28  ;;  %v1902_v31 = vmul.f32 1.442695, %v1805_v19 }
 0x25e   :  { %v4159_v16 = vpop.eup %4158  ;;  %4166 = vpow2.f32 %v1902_v31  ;;  %v7689_v31 = vld [vmem:[#allocation85_spill] sm:$0xff] }
 0x25f   :  { %v5570_v23 = vpop.xlane.xlu0 %1712  ;;  %2022 = vadd.xlane.f32.xlu1 %v4159_v16  ;;  %2020 = vadd.xlane.f32.xlu0 %v4157_v15  ;;  %v4161_v47 = vpop.eup %4160 }
 0x260   :  { %7684 = vst [vmem:[#allocation79_spill] sm:$0xff] %v5570_v23  ;;  %v1806_v57 = vsub.f32 %v7685_v49, %v5570_v23  ;;  %v7691_v23 = vld [vmem:[#allocation87_spill] sm:$0xff] }
 0x261   :  { %v5574_v29 = vpop.xlane.xlu1 %1714 }
 0x262   :  { %7686 = vst [vmem:[#allocation81_spill] sm:$0xff] %v5574_v29  ;;  %v4163_v12 = vpop.eup %4162  ;;  %v1904_v25 = vmul.f32 1.442695, %v1806_v57  ;;  %v1807_v13 = vsub.f32 %v7687_v18, %v5574_v29  ;;  %v7799_v29 = vld [vmem:[#allocation80_spill] sm:$0xff] }
 0x263   :  { %2026 = vadd.xlane.f32.xlu1 %v4163_v12  ;;  %2024 = vadd.xlane.f32.xlu0 %v4161_v47 }
 0x264   :  { %4168 = vpow2.f32 %v1904_v25  ;;  %v1906_v28 = vmul.f32 1.442695, %v1807_v13 }
 0x266   :  { %v4165_v40 = vpop.eup %4164  ;;  %4170 = vpow2.f32 %v1906_v28 }
 0x267   :  { %v5578_v19 = vpop.xlane.xlu0 %1716  ;;  %2028 = vadd.xlane.f32.xlu0 %v4165_v40 }
 0x268   :  { %7688 = vst [vmem:[#allocation83_spill] sm:$0xff] %v5578_v19  ;;  %v4167_v16 = vpop.eup %4166  ;;  %v1808_v15 = vsub.f32 %v7689_v31, %v5578_v19 }
 0x269   :  { %v5582_v49 = vpop.xlane.xlu1 %1718  ;;  %2030 = vadd.xlane.f32.xlu1 %v4167_v16 }
 0x26a   :  { %7690 = vst [vmem:[#allocation85_spill] sm:$0xff] %v5582_v49  ;;  %v1908_v57 = vmul.f32 1.442695, %v1808_v15  ;;  %v1809_v18 = vsub.f32 %v7691_v23, %v5582_v49 }
 0x26c   :  { %4172 = vpow2.f32 %v1908_v57  ;;  %v1910_v47 = vmul.f32 1.442695, %v1809_v18 }
 0x26e   :  { %v4169_v25 = vpop.eup %4168  ;;  %4174 = vpow2.f32 %v1910_v47 }
 0x26f   :  { %v5586_v12 = vpop.xlane.xlu0 %1720  ;;  %2032 = vadd.xlane.f32.xlu0 %v4169_v25 }
 0x270   :  { %7692 = vst [vmem:[#allocation87_spill] sm:$0xff] %v5586_v12  ;;  %v4171_v13 = vpop.eup %4170  ;;  %v1810_v28 = vsub.f32 %v5263_v10, %v5586_v12 }
 0x271   :  { %v5590_v40 = vpop.xlane.xlu1 %1722  ;;  %2034 = vadd.xlane.f32.xlu1 %v4171_v13 }
 0x272   :  { %7693 = vst [vmem:[#allocation101_spill] sm:$0xff] %v5590_v40  ;;  %v1912_v31 = vmul.f32 1.442695, %v1810_v28  ;;  %v1811_v16 = vsub.f32 %v5273_v38, %v5590_v40 }
 0x274   :  { %4176 = vpow2.f32 %v1912_v31  ;;  %v1914_v23 = vmul.f32 1.442695, %v1811_v16  ;;  %v5594_v15 = vpop.xlane.xlu0 %1740 }
 0x275   :  { %7694 = vst [vmem:[#allocation102_spill] sm:$0xff] %v5594_v15  ;;  %v1820_v57 = vsub.f32 %v5284_v61, %v5594_v15  ;;  %v5598_v18 = vpop.xlane.xlu1 %1742 }
 0x276   :  { %7695 = vst [vmem:[#allocation103_spill] sm:$0xff] %v5598_v18  ;;  %v4173_v47 = vpop.eup %4172  ;;  %4178 = vpow2.f32 %v1914_v23  ;;  %v1821_v10 = vsub.f32 %v5288_v51, %v5598_v18 }
 0x277   :  { %v1932_v25 = vmul.f32 1.442695, %v1820_v57  ;;  %2036 = vadd.xlane.f32.xlu0 %v4173_v47 }
 0x278   :  { %v4175_v13 = vpop.eup %4174  ;;  %v1934_v28 = vmul.f32 1.442695, %v1821_v10  ;;  %v5602_v12 = vpop.xlane.xlu0 %1724 }
 0x279   :  { %7696 = vst [vmem:[#allocation104_spill] sm:$0xff] %v5602_v12  ;;  %4180 = vpow2.f32 %v1932_v25  ;;  %v1812_v38 = vsub.f32 %v5299_v56, %v5602_v12  ;;  %v5606_v31 = vpop.xlane.xlu1 %1746  ;;  %2038 = vadd.xlane.f32.xlu1 %v4175_v13 }
 0x27a   :  { %7697 = vst [vmem:[#allocation105_spill] sm:$0xff] %v5606_v31  ;;  %4182 = vpow2.f32 %v1934_v28  ;;  %v1823_v61 = vsub.f32 %v5306_v39, %v5606_v31  ;;  %v7775_v31 = vld [vmem:[#allocation55_spill] sm:$0xff] }
 0x27b   :  { %v1916_v16 = vmul.f32 1.442695, %v1812_v38 }
 0x27c   :  { %v1938_v23 = vmul.f32 1.442695, %v1823_v61  ;;  %v5610_v51 = vpop.xlane.xlu0 %1744 }
 0x27d   :  { %7698 = vst [vmem:[#allocation106_spill] sm:$0xff] %v5610_v51  ;;  %4184 = vpow2.f32 %v1916_v16  ;;  %v1822_v57 = vsub.f32 %v5320_v60, %v5610_v51  ;;  %v5614_v47 = vpop.xlane.xlu1 %1726 }
 0x27e   :  { %7699 = vst [vmem:[#allocation107_spill] sm:$0xff] %v5614_v47  ;;  %v4177_v10 = vpop.eup %4176  ;;  %4186 = vpow2.f32 %v1938_v23  ;;  %v1813_v56 = vsub.f32 %v5324_v43, %v5614_v47 }
 0x27f   :  { %v1936_v25 = vmul.f32 1.442695, %v1822_v57  ;;  %2040 = vadd.xlane.f32.xlu0 %v4177_v10 }
 0x280   :  { %v4179_v13 = vpop.eup %4178  ;;  %v1918_v28 = vmul.f32 1.442695, %v1813_v56  ;;  %v5618_v39 = vpop.xlane.xlu0 %1748 }
 0x281   :  { %7700 = vst [vmem:[#allocation108_spill] sm:$0xff] %v5618_v39  ;;  %4188 = vpow2.f32 %v1936_v25  ;;  %v1824_v38 = vsub.f32 %v5338_v34, %v5618_v39  ;;  %v5622_v61 = vpop.xlane.xlu1 %1750  ;;  %2042 = vadd.xlane.f32.xlu1 %v4179_v13  ;;  %v7773_v39 = vld [vmem:[#allocation54_spill] sm:$0xff] }
 0x282   :  { %7701 = vst [vmem:[#allocation109_spill] sm:$0xff] %v5622_v61  ;;  %4190 = vpow2.f32 %v1918_v28  ;;  %v1825_v60 = vsub.f32 %v5342_v36, %v5622_v61 }
 0x283   :  { %v4181_v16 = vpop.eup %4180  ;;  %v1940_v23 = vmul.f32 1.442695, %v1824_v38 }
 0x284   :  { %v4183_v43 = vpop.eup %4182  ;;  %v1942_v57 = vmul.f32 1.442695, %v1825_v60  ;;  %v5626_v10 = vpop.xlane.xlu0 %1728  ;;  %2060 = vadd.xlane.f32.xlu0 %v4181_v16 }
 0x285   :  { %7702 = vst [vmem:[#allocation110_spill] sm:$0xff] %v5626_v10  ;;  %4192 = vpow2.f32 %v1940_v23  ;;  %v1814_v56 = vsub.f32 %v5356_v11, %v5626_v10  ;;  %v5630_v25 = vpop.xlane.xlu1 %1754  ;;  %2062 = vadd.xlane.f32.xlu1 %v4183_v43  ;;  %v7767_v10 = vld [vmem:[#allocation51_spill] sm:$0xff] }
 0x286   :  { %7703 = vst [vmem:[#allocation111_spill] sm:$0xff] %v5630_v25  ;;  %4194 = vpow2.f32 %v1942_v57  ;;  %v1827_v34 = vsub.f32 %v5360_v54, %v5630_v25  ;;  %v7765_v25 = vld [vmem:[#allocation50_spill] sm:$0xff] }
 0x287   :  { %v4185_v13 = vpop.eup %4184  ;;  %v1920_v36 = vmul.f32 1.442695, %v1814_v56 }
 0x288   :  { %v4187_v28 = vpop.eup %4186  ;;  %v1946_v38 = vmul.f32 1.442695, %v1827_v34  ;;  %v5634_v61 = vpop.xlane.xlu0 %1752  ;;  %2044 = vadd.xlane.f32.xlu0 %v4185_v13 }
 0x289   :  { %7704 = vst [vmem:[#allocation112_spill] sm:$0xff] %v5634_v61  ;;  %4196 = vpow2.f32 %v1920_v36  ;;  %v1826_v60 = vsub.f32 %v5371_v20, %v5634_v61  ;;  %v5638_v16 = vpop.xlane.xlu1 %1730  ;;  %2066 = vadd.xlane.f32.xlu1 %v4187_v28  ;;  %v7759_v61 = vld [vmem:[#allocation47_spill] sm:$0xff] }
 0x28a   :  { %7705 = vst [vmem:[#allocation113_spill] sm:$0xff] %v5638_v16  ;;  %4198 = vpow2.f32 %v1946_v38  ;;  %v1815_v11 = vsub.f32 %v5376_v44, %v5638_v16  ;;  %v7751_v16 = vld [vmem:[#allocation39_spill] sm:$0xff] }
 0x28b   :  { %v4189_v23 = vpop.eup %4188  ;;  %v1944_v54 = vmul.f32 1.442695, %v1826_v60 }
 0x28c   :  { %v4191_v43 = vpop.eup %4190  ;;  %v1922_v57 = vmul.f32 1.442695, %v1815_v11  ;;  %v5642_v56 = vpop.xlane.xlu0 %1756  ;;  %2064 = vadd.xlane.f32.xlu0 %v4189_v23 }
 0x28d   :  { %7706 = vst [vmem:[#allocation114_spill] sm:$0xff] %v5642_v56  ;;  %4200 = vpow2.f32 %v1944_v54  ;;  %v1828_v34 = vsub.f32 %v5386_v59, %v5642_v56  ;;  %v5646_v13 = vpop.xlane.xlu1 %1758  ;;  %2046 = vadd.xlane.f32.xlu1 %v4191_v43 }
 0x28e   :  { %7707 = vst [vmem:[#allocation115_spill] sm:$0xff] %v5646_v13  ;;  %4202 = vpow2.f32 %v1922_v57  ;;  %v1829_v20 = vsub.f32 %v5389_v42, %v5646_v13  ;;  %v7745_v13 = vld [vmem:[#allocation33_spill] sm:$0xff] }
 0x28f   :  { %v4193_v36 = vpop.eup %4192  ;;  %v1948_v44 = vmul.f32 1.442695, %v1828_v34 }
 0x290   :  { %v4195_v28 = vpop.eup %4194  ;;  %v1950_v38 = vmul.f32 1.442695, %v1829_v20  ;;  %v5650_v60 = vpop.xlane.xlu0 %1732  ;;  %2068 = vadd.xlane.f32.xlu0 %v4193_v36 }
 0x291   :  { %7708 = vst [vmem:[#allocation116_spill] sm:$0xff] %v5650_v60  ;;  %4204 = vpow2.f32 %v1948_v44  ;;  %v1816_v11 = vsub.f32 %v5395_v32, %v5650_v60  ;;  %v5654_v23 = vpop.xlane.xlu1 %1762  ;;  %2070 = vadd.xlane.f32.xlu1 %v4195_v28  ;;  %v7742_v60 = vld [vmem:[#allocation31_spill] sm:$0xff] }
 0x292   :  { %7709 = vst [vmem:[#allocation117_spill] sm:$0xff] %v5654_v23  ;;  %4206 = vpow2.f32 %v1950_v38  ;;  %v1831_v59 = vsub.f32 %v5398_v26, %v5654_v23  ;;  %v7740_v23 = vld [vmem:[#allocation30_spill] sm:$0xff] }
 0x293   :  { %v4197_v54 = vpop.eup %4196  ;;  %v1924_v42 = vmul.f32 1.442695, %v1816_v11 }
 0x294   :  { %v4199_v43 = vpop.eup %4198  ;;  %v1954_v57 = vmul.f32 1.442695, %v1831_v59  ;;  %v5658_v34 = vpop.xlane.xlu0 %1760  ;;  %2048 = vadd.xlane.f32.xlu0 %v4197_v54 }
 0x295   :  { %7710 = vst [vmem:[#allocation118_spill] sm:$0xff] %v5658_v34  ;;  %4208 = vpow2.f32 %v1924_v42  ;;  %v1830_v20 = vsub.f32 %v5403_v33, %v5658_v34  ;;  %v5662_v36 = vpop.xlane.xlu1 %1734  ;;  %2074 = vadd.xlane.f32.xlu1 %v4199_v43  ;;  %v7737_v34 = vld [vmem:[#allocation28_spill] sm:$0xff] }
 0x296   :  { %7711 = vst [vmem:[#allocation119_spill] sm:$0xff] %v5662_v36  ;;  %4210 = vpow2.f32 %v1954_v57  ;;  %v1817_v32 = vsub.f32 %v5406_v14, %v5662_v36 }
 0x297   :  { %v4201_v44 = vpop.eup %4200  ;;  %v1952_v26 = vmul.f32 1.442695, %v1830_v20 }
 0x298   :  { %v4203_v28 = vpop.eup %4202  ;;  %v1926_v38 = vmul.f32 1.442695, %v1817_v32  ;;  %v5666_v11 = vpop.xlane.xlu0 %1764  ;;  %2072 = vadd.xlane.f32.xlu0 %v4201_v44 }
 0x299   :  { %7712 = vst [vmem:[#allocation120_spill] sm:$0xff] %v5666_v11  ;;  %4212 = vpow2.f32 %v1952_v26  ;;  %v1832_v59 = vsub.f32 %v5411_v5, %v5666_v11  ;;  %v5670_v54 = vpop.xlane.xlu1 %1766  ;;  %2050 = vadd.xlane.f32.xlu1 %v4203_v28 }
 0x29a   :  { %7713 = vst [vmem:[#allocation121_spill] sm:$0xff] %v5670_v54  ;;  %4214 = vpow2.f32 %v1926_v38  ;;  %v1833_v33 = vsub.f32 %v5414_v50, %v5670_v54  ;;  %v7733_v54 = vld [vmem:[#allocation25_spill] sm:$0xff] }
 0x29b   :  { %v4205_v42 = vpop.eup %4204  ;;  %v1956_v14 = vmul.f32 1.442695, %v1832_v59 }
 0x29c   :  { %v4207_v43 = vpop.eup %4206  ;;  %v1958_v57 = vmul.f32 1.442695, %v1833_v33  ;;  %v5674_v20 = vpop.xlane.xlu0 %1736  ;;  %2076 = vadd.xlane.f32.xlu0 %v4205_v42 }
 0x29d   :  { %7714 = vst [vmem:[#allocation122_spill] sm:$0xff] %v5674_v20  ;;  %4216 = vpow2.f32 %v1956_v14  ;;  %v1818_v32 = vsub.f32 %v5419_v8, %v5674_v20  ;;  %2078 = vadd.xlane.f32.xlu1 %v4207_v43  ;;  %v5678_v5 = vpop.xlane.xlu1 %1770 }
 0x29e   :  { %7715 = vst [vmem:[#allocation123_spill] sm:$0xff] %v5678_v5  ;;  %4218 = vpow2.f32 %v1958_v57  ;;  %v1835_v8 = vsub.f32 %v5422_v30, %v5678_v5 }
 0x29f   :  { %v4209_v44 = vpop.eup %4208  ;;  %v1928_v26 = vmul.f32 1.442695, %v1818_v32 }
 0x2a0   :  { %v4211_v28 = vpop.eup %4210  ;;  %2052 = vadd.xlane.f32.xlu0 %v4209_v44  ;;  %v5680_v50 = vpop.xlane.xlu0 %1768  ;;  %v1962_v32 = vmul.f32 1.442695, %v1835_v8  ;;  %v7718_v8 = vld [vmem:[#allocation15_spill] sm:$0xff] }
 0x2a1   :  { %7716 = vst [vmem:[#allocation124_spill] sm:$0xff] %v5680_v50  ;;  %4220 = vpow2.f32 %v1928_v26  ;;  %v1834_v38 = vsub.f32 %v5427_v37, %v5680_v50  ;;  %2082 = vadd.xlane.f32.xlu1 %v4211_v28  ;;  %v5684_v59 = vpop.xlane.xlu1 %1738  ;;  %v7730_v50 = vld [vmem:[#allocation23_spill] sm:$0xff] }
 0x2a2   :  { %7717 = vst [vmem:[#allocation125_spill] sm:$0xff] %v5684_v59  ;;  %v1819_v33 = vsub.f32 %v5430_v52, %v5684_v59  ;;  %v5693_v52 = vld [vmem:[%s7507_s4 + $0x2] ss:$0 sm:$0xff]  ;;  %v7728_v59 = vld [vmem:[#allocation22_spill] sm:$0xff] }
 0x2a3   :  { %v4213_v42 = vpop.eup %4212  ;;  %v1960_v14 = vmul.f32 1.442695, %v1834_v38  ;;  %v5737_v11 = vadd.f32 %v5693_v52, %v7733_v54  ;;  %v5757_v54 = vadd.f32 %v5693_v52, %v7740_v23  ;;  %v5833_v12 = vadd.f32 %v5693_v52, %v7775_v31 }
 0x2a4   :  { %v4215_v43 = vpop.eup %4214  ;;  %v1930_v57 = vmul.f32 1.442695, %v1819_v33  ;;  %2080 = vadd.xlane.f32.xlu0 %v4213_v42  ;;  %v5697_v33 = vadd.f32 %v5693_v52, %v7718_v8  ;;  %v7719_v42 = vld [vmem:[#allocation16_spill] sm:$0xff]  ;;  %v5890_v4 = vadd.f32 %v5693_v52, %v7799_v29 }
 0x2a5   :  { %4222 = vpow2.f32 %v1960_v14  ;;  %2054 = vadd.xlane.f32.xlu1 %v4215_v43  ;;  %v5701_v14 = vadd.f32 %v5693_v52, %v7719_v42  ;;  %v7727_v42 = vld [vmem:[#allocation21_spill] sm:$0xff]  ;;  %7741 = vst [vmem:[#allocation22_spill] sm:$0xff] %v5757_v54 }
 0x2a6   :  { %4224 = vpow2.f32 %v1930_v57  ;;  %v7721_v57 = vld [vmem:[#allocation17_spill] sm:$0xff]  ;;  %v5721_v5 = vadd.f32 %v5693_v52, %v7727_v42  ;;  %v7734_v42 = vld [vmem:[#allocation26_spill] sm:$0xff] }
 0x2a7   :  { %v4217_v44 = vpop.eup %4216  ;;  %4226 = vpow2.f32 %v1962_v32  ;;  %7720 = vst [vmem:[#allocation15_spill] sm:$0xff] %v5701_v14  ;;  %v5705_v32 = vadd.f32 %v5693_v52, %v7721_v57  ;;  %v5725_v57 = vadd.f32 %v5693_v52, %v7728_v59  ;;  %v5741_v36 = vadd.f32 %v5693_v52, %v7734_v42  ;;  %v7736_v59 = vld [vmem:[#allocation27_spill] sm:$0xff]  ;;  %v7750_v54 = vld [vmem:[#allocation37_spill] sm:$0xff] }
 0x2a8   :  { %v4219_v37 = vpop.eup %4218  ;;  %2084 = vadd.xlane.f32.xlu0 %v4217_v44  ;;  %v7722_v44 = vld [vmem:[#allocation18_spill] sm:$0xff]  ;;  %v5761_v42 = vadd.f32 %v5693_v52, %v7742_v60  ;;  %v5781_v60 = vadd.f32 %v5693_v52, %v7750_v54  ;;  %v5801_v54 = vadd.f32 %v5693_v52, %v7759_v61  ;;  %v7771_v14 = vld [vmem:[#allocation53_spill] sm:$0xff] }
 0x2a9   :  { %2086 = vadd.xlane.f32.xlu1 %v4219_v37  ;;  %v5709_v37 = vadd.f32 %v5693_v52, %v7722_v44  ;;  %7729 = vst [vmem:[#allocation18_spill] sm:$0xff] %v5725_v57  ;;  %v5729_v44 = vadd.f32 %v5693_v52, %v7730_v50  ;;  %v5745_v50 = vadd.f32 %v5693_v52, %v7736_v59  ;;  %v7763_v57 = vld [vmem:[#allocation49_spill] sm:$0xff] }
 0x2aa   :  { %7760 = vst [vmem:[#allocation30_spill] sm:$0xff] %v5801_v54 }
 0x2ab   :  { %v4221_v26 = vpop.eup %4220  ;;  %7723 = vst [vmem:[#allocation16_spill] sm:$0xff] %v5709_v37  ;;  %v7769_v37 = vld [vmem:[#allocation52_spill] sm:$0xff] }
 0x2ac   :  { %2056 = vadd.xlane.f32.xlu0 %v4221_v26  ;;  %v7724_v26 = vld [vmem:[#allocation19_spill] sm:$0xff]  ;;  %v5821_v61 = vadd.f32 %v5693_v52, %v7769_v37  ;;  %v7779_v37 = vld [vmem:[#allocation57_spill] sm:$0xff] }
 0x2ad   :  { %v5841_v15 = vadd.f32 %v5693_v52, %v7779_v37  ;;  %v7787_v37 = vld [vmem:[#allocation65_spill] sm:$0xff] }
 0x2af   :  { %v4223_v30 = vpop.eup %4222 }
 0x2b0   :  { %v4225_v28 = vpop.eup %4224  ;;  %v1967_v38 = vpop.xlane.xlu1 %1966  ;;  %2088 = vadd.xlane.f32.xlu0 %v4223_v30  ;;  %v5713_v30 = vadd.f32 %v5693_v52, %v7724_v26  ;;  %v7731_v26 = vld [vmem:[#allocation24_spill] sm:$0xff] }
 0x2b1   :  { %4228 = vlog2.f32 %v1967_v38  ;;  %2058 = vadd.xlane.f32.xlu1 %v4225_v28  ;;  %v4227_v43 = vpop.eup %4226  ;;  %v7725_v28 = vld [vmem:[#allocation20_spill] sm:$0xff] }
 0x2b2   :  { %v5717_v38 = vadd.f32 %v5693_v52, %v7725_v28  ;;  %v5733_v28 = vadd.f32 %v5693_v52, %v7731_v26  ;;  %7735 = vst [vmem:[#allocation20_spill] sm:$0xff] %v5741_v36  ;;  %v7748_v36 = vld [vmem:[#allocation35_spill] sm:$0xff] }
 0x2b3   :  { %v5777_v23 = vadd.f32 %v5693_v52, %v7748_v36  ;;  %7770 = vst [vmem:[#allocation35_spill] sm:$0xff] %v5821_v61 }
 0x2b4   :  { %7726 = vst [vmem:[#allocation17_spill] sm:$0xff] %v5717_v38  ;;  %v1965_v8 = vpop.xlane.xlu0 %1964  ;;  %7732 = vst [vmem:[#allocation19_spill] sm:$0xff] %v5733_v28  ;;  %v7757_v28 = vld [vmem:[#allocation45_spill] sm:$0xff] }
 0x2b5   :  { %v1971_v20 = vpop.xlane.xlu1 %1970  ;;  %4230 = vlog2.f32 %v1965_v8  ;;  %2090 = vadd.xlane.f32.xlu1 %v4227_v43  ;;  %v5749_v43 = vadd.f32 %v5693_v52, %v7737_v34  ;;  %v7739_v8 = vld [vmem:[#allocation29_spill] sm:$0xff]  ;;  %v5769_v34 = vadd.f32 %v5693_v52, %v7745_v13  ;;  %7749 = vst [vmem:[#allocation25_spill] sm:$0xff] %v5777_v23  ;;  %v5797_v36 = vadd.f32 %v5693_v52, %v7757_v28 }
 0x2b6   :  { %4232 = vlog2.f32 %v1971_v20  ;;  %v5753_v26 = vadd.f32 %v5693_v52, %v7739_v8  ;;  %v7743_v20 = vld [vmem:[#allocation32_spill] sm:$0xff]  ;;  %v7753_v13 = vld [vmem:[#allocation41_spill] sm:$0xff]  ;;  %v5817_v28 = vadd.f32 %v5693_v52, %v7767_v10  ;;  %7780 = vst [vmem:[#allocation45_spill] sm:$0xff] %v5841_v15 }
 0x2b7   :  { %7738 = vst [vmem:[#allocation21_spill] sm:$0xff] %v5749_v43  ;;  %v5765_v59 = vadd.f32 %v5693_v52, %v7743_v20  ;;  %v7746_v43 = vld [vmem:[#allocation34_spill] sm:$0xff]  ;;  %v5785_v20 = vadd.f32 %v5693_v52, %v7751_v16  ;;  %7758 = vst [vmem:[#allocation29_spill] sm:$0xff] %v5797_v36  ;;  %v7761_v16 = vld [vmem:[#allocation48_spill] sm:$0xff] }
 0x2b8   :  { %v5773_v8 = vadd.f32 %v5693_v52, %v7746_v43  ;;  %v1969_v56 = vpop.xlane.xlu0 %1968  ;;  %v7755_v43 = vld [vmem:[#allocation43_spill] sm:$0xff]  ;;  %7768 = vst [vmem:[#allocation34_spill] sm:$0xff] %v5817_v28  ;;  %7776 = vst [vmem:[#allocation41_spill] sm:$0xff] %v5833_v12  ;;  %v7777_v10 = vld [vmem:[#allocation56_spill] sm:$0xff] }
 0x2b9   :  { %7744 = vst [vmem:[#allocation23_spill] sm:$0xff] %v5765_v59  ;;  %7752 = vst [vmem:[#allocation26_spill] sm:$0xff] %v5785_v20  ;;  %4234 = vlog2.f32 %v1969_v56  ;;  %v5789_v59 = vadd.f32 %v5693_v52, %v7753_v13  ;;  %v5805_v56 = vadd.f32 %v5693_v52, %v7761_v16  ;;  %v5809_v13 = vadd.f32 %v5693_v52, %v7763_v57  ;;  %v7789_v15 = vld [vmem:[#allocation68_spill] sm:$0xff] }
 0x2ba   :  { %7747 = vst [vmem:[#allocation24_spill] sm:$0xff] %v5773_v8  ;;  %v5793_v8 = vadd.f32 %v5693_v52, %v7755_v43  ;;  %v5813_v43 = vadd.f32 %v5693_v52, %v7765_v25  ;;  %v5825_v16 = vadd.f32 %v5693_v52, %v7771_v14  ;;  %v5829_v57 = vadd.f32 %v5693_v52, %v7773_v39  ;;  %v7781_v14 = vld [vmem:[#allocation58_spill] sm:$0xff] }
 0x2bb   :  { %7754 = vst [vmem:[#allocation27_spill] sm:$0xff] %v5789_v59  ;;  %v4229_v38 = vpop.eup %4228  ;;  %7762 = vst [vmem:[#allocation31_spill] sm:$0xff] %v5805_v56  ;;  %v5837_v18 = vadd.f32 %v5693_v52, %v7777_v10  ;;  %v5845_v39 = vadd.f32 %v5693_v52, %v7781_v14  ;;  %v7785_v10 = vld [vmem:[#allocation62_spill] sm:$0xff]  ;;  %v5864_v14 = vadd.f32 %v5693_v52, %v7789_v15 }
 0x2bc   :  { %7756 = vst [vmem:[#allocation28_spill] sm:$0xff] %v5793_v8  ;;  %7764 = vst [vmem:[#allocation32_spill] sm:$0xff] %v5809_v13  ;;  %v2095_v47 = vmul.f32 0.6931472, %v4229_v38  ;;  %v1975_v51 = vpop.xlane.xlu1 %1974  ;;  %v1973_v25 = vpop.xlane.xlu0 %1972  ;;  %v7783_v38 = vld [vmem:[#allocation59_spill] sm:$0xff]  ;;  %v5856_v19 = vadd.f32 %v5693_v52, %v7785_v10  ;;  %v5966_v8 = vld [vmem:[#allocation5 + $0x28] sm:$0xff]  }
 0x2bd   :  { %7766 = vst [vmem:[#allocation33_spill] sm:$0xff] %v5813_v43  ;;  %7772 = vst [vmem:[#allocation37_spill] sm:$0xff] %v5825_v16  ;;  %4236 = vlog2.f32 %v1975_v51  ;;  %v5849_v40 = vadd.f32 %v5693_v52, %v7783_v38  ;;  %v5860_v51 = vadd.f32 %v5693_v52, %v7787_v37  ;;  %v7795_v37 = vld [vmem:[#allocation76_spill] sm:$0xff] }
 0x2be   :  { %7774 = vst [vmem:[#allocation39_spill] sm:$0xff] %v5829_v57  ;;  %7778 = vst [vmem:[#allocation43_spill] sm:$0xff] %v5837_v18  ;;  %v5852_v31 = vadd.f32 %v2095_v47, %v5432_v45  ;;  %4238 = vlog2.f32 %v1973_v25  ;;  %v5873_v45 = vld [vmem:[%s7507_s4 + $0x3] ss:$0 sm:$0xff]  ;;  %v7793_v25 = vld [vmem:[#allocation74_spill] sm:$0xff] }
 0x2bf   :  { %7782 = vst [vmem:[#allocation47_spill] sm:$0xff] %v5845_v39  ;;  %7784 = vst [vmem:[#allocation48_spill] sm:$0xff] %v5849_v40  ;;  %v4231_v49 = vpop.eup %4230  ;;  %v7791_v39 = vld [vmem:[#allocation71_spill] sm:$0xff]  ;;  %v5877_v10 = vadd.f32 %v5693_v52, %v7793_v25  ;;  %v7805_v18 = vld [vmem:[#allocation86_spill] sm:$0xff] }
 0x2c0   :  { %7786 = vst [vmem:[#allocation49_spill] sm:$0xff] %v5856_v19  ;;  %7788 = vst [vmem:[#allocation50_spill] sm:$0xff] %v5860_v51  ;;  %v5868_v38 = vadd.f32 %v5693_v52, %v7791_v39  ;;  %v4233_v47 = vpop.eup %4232  ;;  %v5881_v51 = vadd.f32 %v5693_v52, %v7795_v37  ;;  %v2285_v15 = vsub.f32 0.0, %v5852_v31  ;;  %v1979_v40 = vpop.xlane.xlu1 %1978  ;;  %v5895_v25 = vld [vmem:[%s7507_s4 + $0x4] ss:$0 sm:$0xff]  ;;  %v7809_v57 = vld [vmem:[#allocation89_spill] sm:$0xff] }
 0x2c1   :  { %7790 = vst [vmem:[#allocation51_spill] sm:$0xff] %v5864_v14  ;;  %7794 = vst [vmem:[#allocation53_spill] sm:$0xff] %v5877_v10  ;;  %v2093_v14 = vmul.f32 0.6931472, %v4231_v49  ;;  %v1977_v39 = vpop.xlane.xlu0 %1976  ;;  %v2099_v37 = vmul.f32 0.6931472, %v4233_v47  ;;  %4240 = vlog2.f32 %v1979_v40  ;;  %v5913_v40 = vadd.f32 %v5693_v52, %v7805_v18 }
 0x2c2   :  { %7792 = vst [vmem:[#allocation52_spill] sm:$0xff] %v5868_v38  ;;  %7796 = vst [vmem:[#allocation54_spill] sm:$0xff] %v5881_v51  ;;  %v7797_v38 = vld [vmem:[#allocation78_spill] sm:$0xff]  ;;  %v5901_v10 = vld [vmem:[#allocation5] sm:$0xff]   ;;  %4242 = vlog2.f32 %v1977_v39  ;;  %v3384_v47 = vlaneseq  ;;  %v5928_v18 = vadd.f32 %v5693_v52, %v7809_v57 }
 0x2c3   :  { %v5886_v19 = vadd.f32 %v5693_v52, %v7797_v38  ;;  %7800 = vst [vmem:[#allocation56_spill] sm:$0xff] %v5890_v4  ;;  %v7801_v51 = vld [vmem:[#allocation82_spill] sm:$0xff]  ;;  %v2353_v38 = vmul.f32 %v5873_v45, %v2285_v15  ;;  %v4235_v29 = vpop.eup %4234  ;;  %v7803_v4 = vld [vmem:[#allocation84_spill] sm:$0xff]  ;;  %7806 = vst [vmem:[#allocation59_spill] sm:$0xff] %v5913_v40 }
 0x2c4   :  { %v5899_v49 = vadd.f32 %v5693_v52, %v7801_v51  ;;  %v5909_v12 = vadd.f32 %v5693_v52, %v7803_v4  ;;  %v5916_v51 = vadd.f32 %v2099_v37, %v5440_v27  ;;  %v2097_v4 = vmul.f32 0.6931472, %v4235_v29  ;;  %7810 = vst [vmem:[#allocation65_spill] sm:$0xff] %v5928_v18  ;;  %v5936_v40 = vld [vmem:[#allocation5 + $0x10] sm:$0xff]   ;;  %v5943_v18 = vld [vmem:[#allocation5 + $0x18] sm:$0xff]  }
 0x2c5   :  { %7798 = vst [vmem:[#allocation55_spill] sm:$0xff] %v5886_v19  ;;  %v5905_v19 = vadd.f32 %v2093_v14, %v5438_v48  ;;  %v2421_v48 = vadd.f32 %v5895_v25, %v2353_v38  ;;  %v5923_v14 = vld [vmem:[#allocation5 + $0x8] sm:$0xff]   ;;  %v1981_v16 = vpop.xlane.xlu0 %1980  ;;  %v5938_v46 = vand.u32 127, %v3384_v47 }
 0x2c6   :  { %7802 = vst [vmem:[#allocation57_spill] sm:$0xff] %v5899_v49  ;;  %7804 = vst [vmem:[#allocation58_spill] sm:$0xff] %v5909_v12  ;;  %v7807_v49 = vld [vmem:[#allocation88_spill] sm:$0xff]  ;;  %v1983_v12 = vpop.xlane.xlu1 %1982  ;;  %v2287_v37 = vsub.f32 0.0, %v5916_v51  ;;  %v5934_v38 = vadd.f32 %v2097_v4, %v5446_v1 }
 0x2c7   :  { %v5920_v15 = vadd.f32 %v5693_v52, %v7807_v49  ;;  %v2284_v39 = vsub.f32 0.0, %v5905_v19  ;;  %4244 = vlog2.f32 %v1983_v12  ;;  %v2485_v49 = vmax.f32 %v2421_v48, 0.0  ;;  %v4237_v29 = vpop.eup %4236 }
 0x2c8   :  { %4246 = vlog2.f32 %v1981_v16  ;;  %v2355_v57 = vmul.f32 %v5873_v45, %v2287_v37  ;;  %v4239_v12 = vpop.eup %4238  ;;  %v2103_v4 = vmul.f32 0.6931472, %v4237_v29  ;;  %v5952_v37 = vld [vmem:[#allocation5 + $0x20] sm:$0xff]   ;;  %vm3386_vm2 = vcmp.eq.s32.totalorder %v5938_v46, 8 }
 0x2c9   :  { %7808 = vst [vmem:[#allocation62_spill] sm:$0xff] %v5920_v15  ;;  %v2352_v15 = vmul.f32 %v5873_v45, %v2284_v39  ;;  %v5945_v48 = vadd.f32 1e-16, %v2485_v49  ;;  %v2286_v39 = vsub.f32 0.0, %v5934_v38  ;;  %v2101_v28 = vmul.f32 0.6931472, %v4239_v12  ;;  %v1985_v12 = vpop.xlane.xlu0 %1984 }
 0x2ca   :  { %v2423_v16 = vadd.f32 %v5895_v25, %v2355_v57  ;;  %v1987_v27 = vpop.xlane.xlu1 %1986  ;;  %v5960_v47 = vadd.f32 %v2103_v4, %v5454_v53 }
 0x2cb   :  { %v2420_v1 = vadd.f32 %v5895_v25, %v2352_v15  ;;  %4248 = vrsqrt.f32 %v5945_v48  ;;  %v4241_v13 = vpop.eup %4240  ;;  %v2354_v57 = vmul.f32 %v5873_v45, %v2286_v39  ;;  %v5963_v54 = vadd.f32 %v2101_v28, %v5450_v24 }
 0x2cc   :  { %v2487_v29 = vmax.f32 %v2423_v16, 0.0  ;;  %v4243_v52 = vpop.eup %4242  ;;  %v2107_v56 = vmul.f32 0.6931472, %v4241_v13  ;;  %4250 = vlog2.f32 %v1987_v27  ;;  %v2289_v53 = vsub.f32 0.0, %v5960_v47 }
 0x2cd   :  { %v2484_v43 = vmax.f32 %v2420_v1, 0.0  ;;  %v2422_v1 = vadd.f32 %v5895_v25, %v2354_v57  ;;  %v2288_v39 = vsub.f32 0.0, %v5963_v54  ;;  %v2105_v24 = vmul.f32 0.6931472, %v4243_v52 }
 0x2ce   :  { %v5968_v15 = vadd.f32 1e-16, %v2487_v29  ;;  %v5976_v4 = vadd.f32 %v2107_v56, %v5462_v21  ;;  %4252 = vlog2.f32 %v1985_v12  ;;  %v1991_v29 = vpop.xlane.xlu1 %1990  ;;  %vm2689_vm0 = vcmp.eq.f32.partialorder %v5945_v48, inf }
 0x2cf   :  { %v5970_v16 = vadd.f32 1e-16, %v2484_v43  ;;  %vm2691_vm1 = vcmp.eq.f32.partialorder %v5945_v48, 0.0  ;;  %v2692_v21 = vand.u32 2147483648, %v5945_v48  ;;  %v2486_v56 = vmax.f32 %v2422_v1, 0.0 }
 0x2d0   :  { %4254 = vrsqrt.f32 %v5968_v15  ;;  %v2357_v52 = vmul.f32 %v5873_v45, %v2289_v53  ;;  %v2356_v12 = vmul.f32 %v5873_v45, %v2288_v39  ;;  %v2291_v28 = vsub.f32 0.0, %v5976_v4 }
 0x2d1   :  { %v4245_v13 = vpop.eup %4244  ;;  %4256 = vrsqrt.f32 %v5970_v16  ;;  %v5991_v43 = vadd.f32 %v2105_v24, %v5458_v0  ;;  %vm2703_vm3 = vcmp.eq.f32.partialorder %v5968_v15, inf  ;;  %v5994_v61 = vadd.f32 1e-16, %v2486_v56 }
 0x2d2   :  { %v4247_v57 = vpop.eup %4246  ;;  %v2111_v27 = vmul.f32 0.6931472, %v4245_v13  ;;  %4258 = vlog2.f32 %v1991_v29  ;;  %v2425_v1 = vadd.f32 %v5895_v25, %v2357_v52  ;;  %v2424_v53 = vadd.f32 %v5895_v25, %v2356_v12 }
 0x2d3   :  { %v2109_v49 = vmul.f32 0.6931472, %v4247_v57  ;;  %v2359_v39 = vmul.f32 %v5873_v45, %v2291_v28  ;;  %vm2705_vm4 = vcmp.eq.f32.partialorder %v5968_v15, 0.0  ;;  %v2290_v41 = vsub.f32 0.0, %v5991_v43 }
 0x2d4   :  { %v6002_v0 = vadd.f32 %v2111_v27, %v5470_v2  ;;  %v2706_v29 = vand.u32 2147483648, %v5968_v15  ;;  %vm2682_vm5 = vcmp.eq.f32.partialorder %v5970_v16, inf  ;;  %4260 = vrsqrt.f32 %v5994_v61  ;;  %v1989_v2 = vpop.xlane.xlu0 %1988 }
 0x2d5   :  { %v4249_v36 = vpop.eup %4248  ;;  %v6005_v24 = vadd.f32 %v2109_v49, %v5466_v3  ;;  %vm2684_vm6 = vcmp.eq.f32.partialorder %v5970_v16, 0.0  ;;  %v2489_v57 = vmax.f32 %v2425_v1, 0.0  ;;  %v2488_v56 = vmax.f32 %v2424_v53, 0.0 }
 0x2d6   :  { %v2688_v13 = vmul.f32 %v4249_v36, %v5945_v48  ;;  %v4251_v28 = vpop.eup %4250  ;;  %v2427_v52 = vadd.f32 %v5895_v25, %v2359_v39  ;;  %v2685_v36 = vand.u32 2147483648, %v5970_v16  ;;  %v2358_v49 = vmul.f32 %v5873_v45, %v2290_v41 }
 0x2d7   :  { %v2293_v27 = vsub.f32 0.0, %v6002_v0  ;;  %v6023_v1 = vadd.f32 1e-16, %v2489_v57  ;;  %v6025_v53 = vadd.f32 1e-16, %v2488_v56  ;;  %v2292_v39 = vsub.f32 0.0, %v6005_v24 }
 0x2d8   :  { %v2690_v3 = vsel %vm2689_vm0, %v5945_v48, %v2688_v13  ;;  %v6019_v12 = vpop.eup %4252  ;;  %v7811_v13 = vunpack.c.h.bf16 %v5901_v10  ;;  %v2491_v59 = vmax.f32 %v2427_v52, 0.0  ;;  %v2115_v23 = vmul.f32 0.6931472, %v4251_v28 }
 0x2d9   :  { %v2693_v62 = vsel %vm2691_vm1, %v2692_v21, %v2690_v3  ;;  %4262 = vlog2.f32 %v1989_v2  ;;  %v2426_v48 = vadd.f32 %v5895_v25, %v2358_v49  ;;  %v2361_v21 = vmul.f32 %v5873_v45, %v2293_v27 }
 0x2da   :  { %v4255_v17 = vpop.eup %4254  ;;  %v3257_v20 = vmul.f32 %v7811_v13, %v2693_v62  ;;  %4264 = vrsqrt.f32 %v6023_v1  ;;  %vm2696_vm7 = vcmp.eq.f32.partialorder %v5994_v61, inf  ;;  %vm2698_vm8 = vcmp.eq.f32.partialorder %v5994_v61, 0.0 }
 0x2db   :  { %v4257_v41 = vpop.eup %4256  ;;  %v2702_v55 = vmul.f32 %v4255_v17, %v5968_v15  ;;  %4266 = vrsqrt.f32 %v6025_v53  ;;  %v2699_v17 = vand.u32 2147483648, %v5994_v61  ;;  %v2360_v52 = vmul.f32 %v5873_v45, %v2292_v39 }
 0x2dc   :  { %v3321_v57 = vadd.f32 %v3257_v20, %v5705_v32  ;;  %v2681_v56 = vmul.f32 %v4257_v41, %v5970_v16  ;;  %v4259_v62 = vpop.eup %4258  ;;  %v6052_v3 = vadd.f32 1e-16, %v2491_v59  ;;  %v2490_v39 = vmax.f32 %v2426_v48, 0.0 }
 0x2dd   :  { %v2704_v28 = vsel %vm2703_vm3, %v5968_v15, %v2702_v55  ;;  %v7812_v55 = vunpack.c.h.bf16 %v5923_v14  ;;  %v2429_v13 = vadd.f32 %v5895_v25, %v2361_v21  ;;  %v7813_v15 = vunpack.c.l.bf16 %v5901_v10 }
 0x2de   :  { %v3388_v32 = vsel %vm3386_vm2, %v5852_v31, %v3321_v57  ;;  %v2707_v20 = vsel %vm2705_vm4, %v2706_v29, %v2704_v28  ;;  %v2683_v2 = vsel %vm2682_vm5, %v5970_v16, %v2681_v56  ;;  %v4261_v31 = vpop.eup %4260  ;;  %vm2717_vm9 = vcmp.eq.f32.partialorder %v6023_v1, inf }
 0x2df   :  { %3452 = vst [vmem:[#allocation10 + $0x8] sm:$0xff] %v3388_v32  ;;  %v3259_v49 = vmul.f32 %v7812_v55, %v2707_v20  ;;  %v2686_v27 = vsel %vm2684_vm6, %v2685_v36, %v2683_v2  ;;  %vm2719_vm10 = vcmp.eq.f32.partialorder %v6023_v1, 0.0  ;;  %4268 = vrsqrt.f32 %v6052_v3 }
 0x2e0   :  { %v3256_v29 = vmul.f32 %v7813_v15, %v2686_v27  ;;  %v2695_v41 = vmul.f32 %v4261_v31, %v5994_v61  ;;  %v2720_v16 = vand.u32 2147483648, %v6023_v1  ;;  %v6067_v36 = vadd.f32 1e-16, %v2490_v39 }
 0x2e1   :  { %v3323_v59 = vadd.f32 %v3259_v49, %v5721_v5  ;;  %v2493_v21 = vmax.f32 %v2429_v13, 0.0  ;;  %v2428_v10 = vadd.f32 %v5895_v25, %v2360_v52  ;;  %v6072_v57 = vadd.f32 %v2115_v23, %v5478_v63 }
 0x2e2   :  { %v3320_v48 = vadd.f32 %v3256_v29, %v5697_v33  ;;  %v2697_v5 = vsel %vm2696_vm7, %v5994_v61, %v2695_v41  ;;  %vm2710_vm11 = vcmp.eq.f32.partialorder %v6025_v53, inf  ;;  %4270 = vrsqrt.f32 %v6067_v36 }
 0x2e3   :  { %v3390_v56 = vsel %vm3386_vm2, %v5916_v51, %v3323_v59  ;;  %v4263_v28 = vpop.eup %4262  ;;  %v2700_v63 = vsel %vm2698_vm8, %v2699_v17, %v2697_v5  ;;  %vm2712_vm12 = vcmp.eq.f32.partialorder %v6025_v53, 0.0  ;;  %v2713_v23 = vand.u32 2147483648, %v6025_v53 }
 0x2e4   :  { %3454 = vst [vmem:[#allocation10 + $0x18] sm:$0xff] %v3390_v56  ;;  %v3387_v33 = vsel %vm3386_vm2, %v5905_v19, %v3320_v48  ;;  %v4265_v51 = vpop.eup %4264  ;;  %v7814_v52 = vunpack.c.l.bf16 %v5923_v14  ;;  %v6091_v20 = vadd.f32 1e-16, %v2493_v21  ;;  %v2492_v2 = vmax.f32 %v2428_v10, 0.0 }
 0x2e5   :  { %3451 = vst [vmem:[#allocation10] sm:$0xff] %v3387_v33  ;;  %v2295_v55 = vsub.f32 0.0, %v6072_v57  ;;  %v4267_v49 = vpop.eup %4266  ;;  %v2716_v19 = vmul.f32 %v4265_v51, %v6023_v1  ;;  %vm2731_vm13 = vcmp.eq.f32.partialorder %v6052_v3, inf  ;;  %vm2733_vm14 = vcmp.eq.f32.partialorder %v6052_v3, 0.0 }
 0x2e6   :  { %v3258_v32 = vmul.f32 %v7814_v52, %v2700_v63  ;;  %v2734_v61 = vand.u32 2147483648, %v6052_v3  ;;  %v2709_v27 = vmul.f32 %v4267_v49, %v6025_v53  ;;  %vm2724_vm15 = vcmp.eq.f32.partialorder %v6067_v36, inf }
 0x2e7   :  { %4272 = vrsqrt.f32 %v6091_v20  ;;  %v2113_v14 = vmul.f32 0.6931472, %v6019_v12  ;;  %v2718_v39 = vsel %vm2717_vm9, %v6023_v1, %v2716_v19  ;;  %v6106_v13 = vadd.f32 1e-16, %v2492_v2 }
 0x2e8   :  { %v3322_v17 = vadd.f32 %v3258_v32, %v5713_v30  ;;  %v2119_v31 = vmul.f32 0.6931472, %v4259_v62  ;;  %v2117_v15 = vmul.f32 0.6931472, %v4263_v28  ;;  %v2721_v29 = vsel %vm2719_vm10, %v2720_v16, %v2718_v39 }
 0x2e9   :  { %v2711_v59 = vsel %vm2710_vm11, %v6025_v53, %v2709_v27  ;;  %v2363_v12 = vmul.f32 %v5873_v45, %v2295_v55  ;;  %v4269_v41 = vpop.eup %4268  ;;  %v7815_v48 = vunpack.c.h.bf16 %v5936_v40  ;;  %vm2726_vm0 = vcmp.eq.f32.partialorder %v6067_v36, 0.0 }
 0x2ea   :  { %v3389_v30 = vsel %vm3386_vm2, %v5934_v38, %v3322_v17  ;;  %v2714_v62 = vsel %vm2712_vm12, %v2713_v23, %v2711_v59  ;;  %4274 = vrsqrt.f32 %v6106_v13  ;;  %v1995_v38 = vpop.xlane.xlu1 %1994  ;;  %v7816_v1 = vunpack.c.l.bf16 %v5936_v40 }
 0x2eb   :  { %3453 = vst [vmem:[#allocation10 + $0x10] sm:$0xff] %v3389_v30  ;;  %v3261_v21 = vmul.f32 %v7815_v48, %v2721_v29  ;;  %v2730_v10 = vmul.f32 %v4269_v41, %v6052_v3  ;;  %v2727_v56 = vand.u32 2147483648, %v6067_v36  ;;  %vm2745_vm1 = vcmp.eq.f32.partialorder %v6091_v20, inf }
 0x2ec   :  { %v3260_v16 = vmul.f32 %v7816_v1, %v2714_v62  ;;  %vm2747_vm3 = vcmp.eq.f32.partialorder %v6091_v20, 0.0  ;;  %v2431_v53 = vadd.f32 %v5895_v25, %v2363_v12  ;;  %v6132_v28 = vadd.f32 %v2113_v14, %v5474_v22  ;;  %v4271_v40 = vpop.eup %4270 }
 0x2ed   :  { %v3325_v5 = vadd.f32 %v3261_v21, %v5737_v11  ;;  %v6135_v33 = vadd.f32 %v2119_v31, %v5486_v9  ;;  %v2732_v23 = vsel %vm2731_vm13, %v6052_v3, %v2730_v10  ;;  %v6142_v51 = vadd.f32 %v2117_v15, %v5482_v7  ;;  %v1993_v11 = vpop.xlane.xlu0 %1992 }
 0x2ee   :  { %v3324_v63 = vadd.f32 %v3260_v16, %v5729_v44  ;;  %4276 = vlog2.f32 %v1995_v38  ;;  %v2735_v9 = vsel %vm2733_vm14, %v2734_v61, %v2732_v23  ;;  %v2723_v52 = vmul.f32 %v4271_v40, %v6067_v36  ;;  %v1999_v61 = vpop.xlane.xlu1 %1998 }
 0x2ef   :  { %v3392_v22 = vsel %vm3386_vm2, %v5960_v47, %v3325_v5  ;;  %v2495_v32 = vmax.f32 %v2431_v53, 0.0  ;;  %v7817_v7 = vunpack.c.h.bf16 %v5943_v18  ;;  %v2294_v55 = vsub.f32 0.0, %v6132_v28 }
 0x2f0   :  { %3456 = vst [vmem:[#allocation10 + $0x28] sm:$0xff] %v3392_v22  ;;  %v3391_v44 = vsel %vm3386_vm2, %v5963_v54, %v3324_v63  ;;  %v2297_v49 = vsub.f32 0.0, %v6135_v33  ;;  %v2725_v47 = vsel %vm2724_vm15, %v6067_v36, %v2723_v52  ;;  %v2296_v19 = vsub.f32 0.0, %v6142_v51 }
 0x2f1   :  { %v3263_v2 = vmul.f32 %v7817_v7, %v2735_v9  ;;  %3455 = vst [vmem:[#allocation10 + $0x20] sm:$0xff] %v3391_v44  ;;  %v6160_v3 = vadd.f32 1e-16, %v2495_v32  ;;  %4278 = vlog2.f32 %v1993_v11  ;;  %v4273_v17 = vpop.eup %4272  ;;  %v2728_v27 = vsel %vm2726_vm0, %v2727_v56, %v2725_v47  ;;  %v1997_v62 = vpop.xlane.xlu0 %1996  ;;  %v6193_v56 = vld [vmem:[#allocation5 + $0x30] sm:$0xff]   ;;  %v6207_v32 = vld [vmem:[#allocation5 + $0x40] sm:$0xff]  }
 0x2f2   :  { %v2362_v14 = vmul.f32 %v5873_v45, %v2294_v55  ;;  %v2365_v39 = vmul.f32 %v5873_v45, %v2297_v49  ;;  %v7818_v31 = vunpack.c.l.bf16 %v5943_v18  ;;  %v2744_v30 = vmul.f32 %v4273_v17, %v6091_v20  ;;  %v2003_v40 = vpop.xlane.xlu1 %2002 }
 0x2f3   :  { %v3327_v54 = vadd.f32 %v3263_v2, %v5753_v26  ;;  %v2748_v29 = vand.u32 2147483648, %v6091_v20  ;;  %4280 = vrsqrt.f32 %v6160_v3  ;;  %vm2738_vm4 = vcmp.eq.f32.partialorder %v6106_v13, inf }
 0x2f4   :  { %v3262_v15 = vmul.f32 %v7818_v31, %v2728_v27  ;;  %v2741_v36 = vand.u32 2147483648, %v6106_v13  ;;  %v2430_v59 = vadd.f32 %v5895_v25, %v2362_v14  ;;  %v4275_v12 = vpop.eup %4274  ;;  %v2746_v41 = vsel %vm2745_vm1, %v6091_v20, %v2744_v30 }
 0x2f5   :  { %v3394_v26 = vsel %vm3386_vm2, %v5976_v4, %v3327_v54  ;;  %v2433_v48 = vadd.f32 %v5895_v25, %v2365_v39  ;;  %v2364_v21 = vmul.f32 %v5873_v45, %v2296_v19  ;;  %v2749_v4 = vsel %vm2747_vm3, %v2748_v29, %v2746_v41  ;;  %v2001_v19 = vpop.xlane.xlu0 %2000 }
 0x2f6   :  { %3458 = vst [vmem:[#allocation10 + $0x38] sm:$0xff] %v3394_v26  ;;  %v3326_v18 = vadd.f32 %v3262_v15, %v5745_v50  ;;  %v2737_v38 = vmul.f32 %v4275_v12, %v6106_v13  ;;  %v2494_v1 = vmax.f32 %v2430_v59, 0.0  ;;  %4282 = vlog2.f32 %v1999_v61  ;;  %v2007_v14 = vpop.xlane.xlu1 %2006 }
 0x2f7   :  { %v7819_v16 = vunpack.c.h.bf16 %v5952_v37  ;;  %v2497_v5 = vmax.f32 %v2433_v48, 0.0  ;;  %v2432_v53 = vadd.f32 %v5895_v25, %v2364_v21  ;;  %vm2740_vm5 = vcmp.eq.f32.partialorder %v6106_v13, 0.0 }
 0x2f8   :  { %v3393_v50 = vsel %vm3386_vm2, %v5991_v43, %v3326_v18  ;;  %v4277_v63 = vpop.eup %4276  ;;  %v2739_v20 = vsel %vm2738_vm4, %v6106_v13, %v2737_v38  ;;  %v6200_v23 = vadd.f32 1e-16, %v2494_v1  ;;  %v6202_v43 = vld [vmem:[#allocation5 + $0x38] sm:$0xff]   ;;  %4284 = vlog2.f32 %v1997_v62 }
 0x2f9   :  { %v3265_v10 = vmul.f32 %v7819_v16, %v2749_v4  ;;  %3457 = vst [vmem:[#allocation10 + $0x30] sm:$0xff] %v3393_v50  ;;  %v2742_v22 = vsel %vm2740_vm5, %v2741_v36, %v2739_v20  ;;  %v6205_v9 = vadd.f32 1e-16, %v2497_v5  ;;  %v2496_v52 = vmax.f32 %v2432_v53, 0.0  ;;  %v7822_v20 = vld [vmem:[#allocation96_spill] sm:$0xff] }
 0x2fa   :  { %v7820_v44 = vunpack.c.l.bf16 %v5952_v37  ;;  %4286 = vrsqrt.f32 %v6200_v23  ;;  %v3614_v13 = vunpack.c.h.bf16 %v6193_v56  ;;  %v3613_v2 = vunpack.c.l.bf16 %v6193_v56  ;;  %v2011_v1 = vpop.xlane.xlu1 %2010 }
 0x2fb   :  { %v3329_v11 = vadd.f32 %v3265_v10, %v5769_v34  ;;  %v4279_v55 = vpop.eup %4278  ;;  %4288 = vrsqrt.f32 %v6205_v9  ;;  %v3618_v49 = vunpack.c.h.bf16 %v6202_v43  ;;  %v3617_v47 = vunpack.c.l.bf16 %v6202_v43 }
 0x2fc   :  { %v3264_v7 = vmul.f32 %v7820_v44, %v2742_v22  ;;  %vm2759_vm6 = vcmp.eq.f32.partialorder %v6160_v3, inf  ;;  %v6222_v61 = vadd.f32 1e-16, %v2496_v52  ;;  %v3622_v17 = vunpack.c.h.bf16 %v6207_v32 }
 0x2fd   :  { %v3396_v34 = vsel %vm3386_vm2, %v6002_v0, %v3329_v11  ;;  %v4281_v54 = vpop.eup %4280  ;;  %vm2761_vm7 = vcmp.eq.f32.partialorder %v6160_v3, 0.0  ;;  %v2123_v0 = vmul.f32 0.6931472, %v4277_v63  ;;  %v2121_v27 = vmul.f32 0.6931472, %v4279_v55 }
 0x2fe   :  { %3460 = vst [vmem:[#allocation10 + $0x48] sm:$0xff] %v3396_v34  ;;  %v3328_v37 = vadd.f32 %v3264_v7, %v5761_v42  ;;  %4290 = vlog2.f32 %v2003_v40  ;;  %v2758_v31 = vmul.f32 %v4281_v54, %v6160_v3  ;;  %v2762_v42 = vand.u32 2147483648, %v6160_v3 }
 0x2ff   :  { %4292 = vrsqrt.f32 %v6222_v61  ;;  %vm2752_vm8 = vcmp.eq.f32.partialorder %v6200_v23, inf  ;;  %vm2754_vm9 = vcmp.eq.f32.partialorder %v6200_v23, 0.0  ;;  %v6235_v15 = vadd.f32 %v2123_v0, %v5494_v6 }
 0x300   :  { %v3395_v39 = vsel %vm3386_vm2, %v6005_v24, %v3328_v37  ;;  %v6238_v30 = vadd.f32 %v2121_v27, %v5490_v58  ;;  %v4283_v29 = vpop.eup %4282  ;;  %v2760_v24 = vsel %vm2759_vm6, %v6160_v3, %v2758_v31  ;;  %v2755_v26 = vand.u32 2147483648, %v6200_v23  ;;  %v2005_v58 = vpop.xlane.xlu0 %2004 }
 0x301   :  { %3459 = vst [vmem:[#allocation10 + $0x40] sm:$0xff] %v3395_v39  ;;  %vm2773_vm10 = vcmp.eq.f32.partialorder %v6205_v9, inf  ;;  %4294 = vlog2.f32 %v2001_v19  ;;  %v2763_v36 = vsel %vm2761_vm7, %v2762_v42, %v2760_v24  ;;  %v2299_v59 = vsub.f32 0.0, %v6235_v15 }
 0x302   :  { %v2298_v6 = vsub.f32 0.0, %v6238_v30  ;;  %v2127_v12 = vmul.f32 0.6931472, %v4283_v29  ;;  %v4285_v18 = vpop.eup %4284  ;;  %v7821_v41 = vunpack.c.h.bf16 %v5966_v8  ;;  %vm2775_vm11 = vcmp.eq.f32.partialorder %v6205_v9, 0.0 }
 0x303   :  { %v2776_v21 = vand.u32 2147483648, %v6205_v9  ;;  %4296 = vlog2.f32 %v2007_v14  ;;  %v2367_v62 = vmul.f32 %v5873_v45, %v2299_v59  ;;  %v2125_v38 = vmul.f32 0.6931472, %v4285_v18  ;;  %v7825_v18 = vld [vmem:[#allocation27_spill] sm:$0xff] }
 0x304   :  { %v3267_v48 = vmul.f32 %v7821_v41, %v2763_v36  ;;  %v2366_v3 = vmul.f32 %v5873_v45, %v2298_v6  ;;  %v6256_v4 = vadd.f32 %v2127_v12, %v5502_v35  ;;  %v4287_v50 = vpop.eup %4286  ;;  %vm2766_vm12 = vcmp.eq.f32.partialorder %v6222_v61, inf  ;;  %v6303_v12 = vld [vmem:[#allocation5 + $0x50] sm:$0xff]  }
 0x305   :  { %vm2768_vm13 = vcmp.eq.f32.partialorder %v6222_v61, 0.0  ;;  %4298 = vlog2.f32 %v2005_v58  ;;  %v4289_v10 = vpop.eup %4288  ;;  %v2751_v5 = vmul.f32 %v4287_v50, %v6200_v23  ;;  %v2435_v53 = vadd.f32 %v5895_v25, %v2367_v62 }
 0x306   :  { %v3331_v16 = vadd.f32 %v3267_v48, %v5781_v60  ;;  %v2434_v40 = vadd.f32 %v5895_v25, %v2366_v3  ;;  %v2301_v35 = vsub.f32 0.0, %v6256_v4  ;;  %v2772_v60 = vmul.f32 %v4289_v10, %v6205_v9 }
 0x307   :  { %v6270_v11 = vadd.f32 %v2125_v38, %v7822_v20  ;;  %4300 = vlog2.f32 %v2011_v1  ;;  %v2753_v52 = vsel %vm2752_vm8, %v6200_v23, %v2751_v5  ;;  %v2499_v44 = vmax.f32 %v2435_v53, 0.0  ;;  %v6290_v23 = vld [vmem:[#allocation5 + $0x48] sm:$0xff]   ;;  %v2009_v1 = vpop.xlane.xlu0 %2008  ;;  %v7827_v53 = vld [vmem:[#allocation98_spill] sm:$0xff] }
 0x308   :  { %v3398_v63 = vsel %vm3386_vm2, %v6072_v57, %v3331_v16  ;;  %v4291_v22 = vpop.eup %4290  ;;  %v2498_v7 = vmax.f32 %v2434_v40, 0.0  ;;  %v2369_v55 = vmul.f32 %v5873_v45, %v2301_v35  ;;  %v2756_v57 = vsel %vm2754_vm9, %v2755_v26, %v2753_v52 }
 0x309   :  { %3462 = vst [vmem:[#allocation10 + $0x58] sm:$0xff] %v3398_v63  ;;  %v4293_v34 = vpop.eup %4292  ;;  %v2774_v19 = vsel %vm2773_vm10, %v6205_v9, %v2772_v60  ;;  %v2769_v37 = vand.u32 2147483648, %v6222_v61  ;;  %v2300_v54 = vsub.f32 0.0, %v6270_v11  ;;  %v7823_v0 = vunpack.c.l.bf16 %v5966_v8  ;;  %v7824_v8 = vld [vmem:[#allocation25_spill] sm:$0xff]  ;;  %v6327_v63 = vld [vmem:[#allocation5 + $0x58] sm:$0xff]  }
 0x30a   :  { %v2777_v14 = vsel %vm2775_vm11, %v2776_v21, %v2774_v19  ;;  %v2765_v39 = vmul.f32 %v4293_v34, %v6222_v61  ;;  %v6288_v31 = vadd.f32 1e-16, %v2499_v44  ;;  %v6294_v24 = vadd.f32 1e-16, %v2498_v7 }
 0x30b   :  { %v3266_v27 = vmul.f32 %v7823_v0, %v2756_v57  ;;  %v4295_v42 = vpop.eup %4294  ;;  %v3269_v29 = vmul.f32 %v3614_v13, %v2777_v14  ;;  %v2437_v26 = vadd.f32 %v5895_v25, %v2369_v55  ;;  %v2131_v36 = vmul.f32 0.6931472, %v4291_v22  ;;  %v7828_v55 = vld [vmem:[#allocation97_spill] sm:$0xff]  ;;  %v2015_v57 = vpop.xlane.xlu1 %2014 }
 0x30c   :  { %v2767_v9 = vsel %vm2766_vm12, %v6222_v61, %v2765_v39  ;;  %4302 = vrsqrt.f32 %v6288_v31  ;;  %v2368_v6 = vmul.f32 %v5873_v45, %v2300_v54  ;;  %v3621_v48 = vunpack.c.l.bf16 %v6207_v32  ;;  %v7830_v39 = vld [vmem:[#allocation99_spill] sm:$0xff]  ;;  %v7835_v32 = vld [vmem:[#allocation30_spill] sm:$0xff] }
 0x30d   :  { %v3330_v59 = vadd.f32 %v3266_v27, %v7824_v8  ;;  %v4297_v58 = vpop.eup %4296  ;;  %v3333_v13 = vadd.f32 %v3269_v29, %v7825_v18  ;;  %v2770_v41 = vsel %vm2768_vm13, %v2769_v37, %v2767_v9  ;;  %v3626_v21 = vunpack.c.h.bf16 %v6290_v23  ;;  %v7829_v27 = vld [vmem:[#allocation100_spill] sm:$0xff] }
 0x30e   :  { %v3268_v3 = vmul.f32 %v3613_v2, %v2770_v41  ;;  %4304 = vrsqrt.f32 %v6294_v24  ;;  %v3625_v38 = vunpack.c.l.bf16 %v6290_v23  ;;  %v2501_v16 = vmax.f32 %v2437_v26, 0.0  ;;  %v2013_v26 = vpop.xlane.xlu0 %2012 }
 0x30f   :  { %v3397_v62 = vsel %vm3386_vm2, %v6132_v28, %v3330_v59  ;;  %v4299_v50 = vpop.eup %4298  ;;  %v3400_v61 = vsel %vm3386_vm2, %v6135_v33, %v3333_v13  ;;  %v3630_v10 = vunpack.c.h.bf16 %v6303_v12  ;;  %v3629_v5 = vunpack.c.l.bf16 %v6303_v12  ;;  %v7826_v28 = vld [vmem:[#allocation26_spill] sm:$0xff] }
 0x310   :  { %3461 = vst [vmem:[#allocation10 + $0x50] sm:$0xff] %v3397_v62  ;;  %3464 = vst [vmem:[#allocation10 + $0x68] sm:$0xff] %v3400_v61  ;;  %v3332_v56 = vadd.f32 %v3268_v3, %v7826_v28  ;;  %v2436_v2 = vadd.f32 %v5895_v25, %v2368_v6  ;;  %v6325_v40 = vadd.f32 %v2131_v36, %v7827_v53  ;;  %v2129_v35 = vmul.f32 0.6931472, %v4295_v42  ;;  %v7831_v62 = vld [vmem:[#allocation61_spill] sm:$0xff] }
 0x311   :  { %v4301_v60 = vpop.eup %4300  ;;  %v6329_v20 = vadd.f32 1e-16, %v2501_v16  ;;  %v2135_v33 = vmul.f32 0.6931472, %v4297_v58  ;;  %v2133_v22 = vmul.f32 0.6931472, %v4299_v50  ;;  %4306 = vlog2.f32 %v2009_v1 }
 0x312   :  { %v3399_v52 = vsel %vm3386_vm2, %v6142_v51, %v3332_v56  ;;  %v2500_v44 = vmax.f32 %v2436_v2, 0.0  ;;  %v2303_v7 = vsub.f32 0.0, %v6325_v40  ;;  %v6336_v34 = vadd.f32 %v2129_v35, %v7828_v55 }
 0x313   :  { %3463 = vst [vmem:[#allocation10 + $0x60] sm:$0xff] %v3399_v52  ;;  %vm2787_vm14 = vcmp.eq.f32.partialorder %v6288_v31, inf  ;;  %4308 = vrsqrt.f32 %v6329_v20  ;;  %v3634_v19 = vunpack.c.h.bf16 %v6327_v63  ;;  %v3633_v37 = vunpack.c.l.bf16 %v6327_v63 }
 0x314   :  { %v6342_v54 = vadd.f32 1e-16, %v2500_v44  ;;  %v2371_v51 = vmul.f32 %v5873_v45, %v2303_v7  ;;  %v2302_v0 = vsub.f32 0.0, %v6336_v34  ;;  %v6347_v14 = vadd.f32 %v2135_v33, %v7829_v27 }
 0x315   :  { %vm2789_vm15 = vcmp.eq.f32.partialorder %v6288_v31, 0.0  ;;  %v6351_v42 = vadd.f32 %v2133_v22, %v7830_v39  ;;  %v2139_v29 = vmul.f32 0.6931472, %v4301_v60  ;;  %4310 = vlog2.f32 %v2015_v57  ;;  %v7832_v57 = vld [vmem:[#allocation29_spill] sm:$0xff] }
 0x316   :  { %v4303_v36 = vpop.eup %4302  ;;  %v2790_v8 = vand.u32 2147483648, %v6288_v31  ;;  %vm2780_vm0 = vcmp.eq.f32.partialorder %v6294_v24, inf  ;;  %vm2782_vm1 = vcmp.eq.f32.partialorder %v6294_v24, 0.0  ;;  %4312 = vrsqrt.f32 %v6342_v54 }
 0x317   :  { %v2786_v59 = vmul.f32 %v4303_v36, %v6288_v31  ;;  %v2439_v9 = vadd.f32 %v5895_v25, %v2371_v51  ;;  %v2370_v6 = vmul.f32 %v5873_v45, %v2302_v0  ;;  %v2305_v58 = vsub.f32 0.0, %v6347_v14  ;;  %v7833_v36 = vld [vmem:[#allocation28_spill] sm:$0xff] }
 0x318   :  { %v4305_v18 = vpop.eup %4304  ;;  %v2783_v13 = vand.u32 2147483648, %v6294_v24  ;;  %v2304_v41 = vsub.f32 0.0, %v6351_v42  ;;  %v6364_v3 = vadd.f32 %v2139_v29, %v7831_v62  ;;  %4314 = vlog2.f32 %v2013_v26 }
 0x319   :  { %v2788_v1 = vsel %vm2787_vm14, %v6288_v31, %v2786_v59  ;;  %v2779_v50 = vmul.f32 %v4305_v18, %v6294_v24  ;;  %v2503_v61 = vmax.f32 %v2439_v9, 0.0  ;;  %v2438_v16 = vadd.f32 %v5895_v25, %v2370_v6  ;;  %v2019_v18 = vpop.xlane.xlu1 %2018 }
 0x31a   :  { %v2791_v28 = vsel %vm2789_vm15, %v2790_v8, %v2788_v1  ;;  %v2373_v56 = vmul.f32 %v5873_v45, %v2305_v58  ;;  %v2372_v2 = vmul.f32 %v5873_v45, %v2304_v41  ;;  %v2307_v53 = vsub.f32 0.0, %v6364_v3 }
 0x31b   :  { %v4307_v35 = vpop.eup %4306  ;;  %v3271_v60 = vmul.f32 %v3618_v49, %v2791_v28  ;;  %v2781_v33 = vsel %vm2780_vm0, %v6294_v24, %v2779_v50  ;;  %v6381_v22 = vadd.f32 1e-16, %v2503_v61  ;;  %v2502_v52 = vmax.f32 %v2438_v16, 0.0  ;;  %v2017_v16 = vpop.xlane.xlu0 %2016  ;;  %v7834_v28 = vld [vmem:[#allocation31_spill] sm:$0xff] }
 0x31c   :  { %v2784_v31 = vsel %vm2782_vm1, %v2783_v13, %v2781_v33  ;;  %vm2801_vm3 = vcmp.eq.f32.partialorder %v6329_v20, inf  ;;  %v2441_v44 = vadd.f32 %v5895_v25, %v2373_v56  ;;  %v2440_v7 = vadd.f32 %v5895_v25, %v2372_v2 }
 0x31d   :  { %v4309_v55 = vpop.eup %4308  ;;  %v3335_v51 = vadd.f32 %v3271_v60, %v7832_v57  ;;  %v3270_v49 = vmul.f32 %v3617_v47, %v2784_v31  ;;  %vm2803_vm4 = vcmp.eq.f32.partialorder %v6329_v20, 0.0  ;;  %4316 = vrsqrt.f32 %v6381_v22  ;;  %v7838_v57 = vld [vmem:[#allocation63_spill] sm:$0xff] }
 0x31e   :  { %v2800_v0 = vmul.f32 %v4309_v55, %v6329_v20  ;;  %v2804_v24 = vand.u32 2147483648, %v6329_v20  ;;  %v6395_v27 = vadd.f32 1e-16, %v2502_v52  ;;  %v2375_v39 = vmul.f32 %v5873_v45, %v2307_v53  ;;  %v7836_v52 = vld [vmem:[#allocation60_spill] sm:$0xff]  ;;  %v2023_v55 = vpop.xlane.xlu1 %2022 }
 0x31f   :  { %v4311_v29 = vpop.eup %4310  ;;  %v3402_v26 = vsel %vm3386_vm2, %v6235_v15, %v3335_v51  ;;  %v3334_v43 = vadd.f32 %v3270_v49, %v7833_v36  ;;  %v2505_v47 = vmax.f32 %v2441_v44, 0.0  ;;  %v2504_v8 = vmax.f32 %v2440_v7, 0.0  ;;  %v7837_v44 = vld [vmem:[#allocation64_spill] sm:$0xff] }
 0x320   :  { %v4313_v59 = vpop.eup %4312  ;;  %3466 = vst [vmem:[#allocation10 + $0x78] sm:$0xff] %v3402_v26  ;;  %v2802_v9 = vsel %vm2801_vm3, %v6329_v20, %v2800_v0  ;;  %vm2794_vm5 = vcmp.eq.f32.partialorder %v6342_v54, inf  ;;  %vm2796_vm6 = vcmp.eq.f32.partialorder %v6342_v54, 0.0  ;;  %4318 = vrsqrt.f32 %v6395_v27 }
 0x321   :  { %v3401_v45 = vsel %vm3386_vm2, %v6238_v30, %v3334_v43  ;;  %v2805_v15 = vsel %vm2803_vm4, %v2804_v24, %v2802_v9  ;;  %v2793_v6 = vmul.f32 %v4313_v59, %v6342_v54  ;;  %v2797_v58 = vand.u32 2147483648, %v6342_v54 }
 0x322   :  { %v4315_v13 = vpop.eup %4314  ;;  %3465 = vst [vmem:[#allocation10 + $0x70] sm:$0xff] %v3401_v45  ;;  %v3273_v41 = vmul.f32 %v3622_v17, %v2805_v15  ;;  %vm2815_vm7 = vcmp.eq.f32.partialorder %v6381_v22, inf  ;;  %v6418_v62 = vadd.f32 1e-16, %v2505_v47  ;;  %v6420_v1 = vadd.f32 1e-16, %v2504_v8 }
 0x323   :  { %v2795_v30 = vsel %vm2794_vm5, %v6342_v54, %v2793_v6  ;;  %v2443_v20 = vadd.f32 %v5895_v25, %v2375_v39  ;;  %v2137_v50 = vmul.f32 0.6931472, %v4307_v35  ;;  %v2143_v61 = vmul.f32 0.6931472, %v4311_v29  ;;  %v2021_v29 = vpop.xlane.xlu0 %2020  ;;  %v6476_v45 = vld [vmem:[%s7507_s4 + $0x3] ss:$0 sm:$0xff] }
 0x324   :  { %v3337_v56 = vadd.f32 %v3273_v41, %v7834_v28  ;;  %v2798_v2 = vsel %vm2796_vm6, %v2797_v58, %v2795_v30  ;;  %4320 = vrsqrt.f32 %v6418_v62  ;;  %v2141_v17 = vmul.f32 0.6931472, %v4315_v13  ;;  %v7839_v13 = vld [vmem:[#allocation33_spill] sm:$0xff] }
 0x325   :  { %v3272_v53 = vmul.f32 %v3621_v48, %v2798_v2  ;;  %vm2817_vm8 = vcmp.eq.f32.partialorder %v6381_v22, 0.0  ;;  %v2818_v60 = vand.u32 2147483648, %v6381_v22  ;;  %4322 = vrsqrt.f32 %v6420_v1 }
 0x326   :  { %v3404_v25 = vsel %vm3386_vm2, %v6256_v4, %v3337_v56  ;;  %vm2808_vm9 = vcmp.eq.f32.partialorder %v6395_v27, inf  ;;  %vm2810_vm10 = vcmp.eq.f32.partialorder %v6395_v27, 0.0  ;;  %v2811_v54 = vand.u32 2147483648, %v6395_v27 }
 0x327   :  { %v4317_v35 = vpop.eup %4316  ;;  %3468 = vst [vmem:[#allocation10 + $0x88] sm:$0xff] %v3404_v25  ;;  %v3336_v48 = vadd.f32 %v3272_v53, %v7835_v32  ;;  %v2507_v33 = vmax.f32 %v2443_v20, 0.0  ;;  %v6441_v31 = vadd.f32 %v2137_v50, %v7836_v52  ;;  %v6444_v7 = vadd.f32 %v2143_v61, %v7837_v44  ;;  %v6490_v20 = vld [vmem:[%s7507_s4 + $0x4] ss:$0 sm:$0xff]  ;;  %v7840_v25 = vld [vmem:[#allocation32_spill] sm:$0xff] }
 0x328   :  { %v2814_v4 = vmul.f32 %v4317_v35, %v6381_v22  ;;  %vm2829_vm11 = vcmp.eq.f32.partialorder %v6418_v62, inf  ;;  %v6449_v51 = vadd.f32 %v2141_v17, %v7838_v57  ;;  %4324 = vlog2.f32 %v2019_v18  ;;  %v6515_v44 = vld [vmem:[#allocation5 + $0x68] sm:$0xff]  }
 0x329   :  { %v3403_v49 = vsel %vm3386_vm2, %v6270_v11, %v3336_v48  ;;  %vm2831_vm12 = vcmp.eq.f32.partialorder %v6418_v62, 0.0  ;;  %v6455_v0 = vadd.f32 1e-16, %v2507_v33  ;;  %v2306_v24 = vsub.f32 0.0, %v6441_v31 }
 0x32a   :  { %v2309_v39 = vsub.f32 0.0, %v6444_v7  ;;  %v4319_v26 = vpop.eup %4318  ;;  %3467 = vst [vmem:[#allocation10 + $0x80] sm:$0xff] %v3403_v49  ;;  %v2816_v36 = vsel %vm2815_vm7, %v6381_v22, %v2814_v4  ;;  %v2832_v43 = vand.u32 2147483648, %v6418_v62  ;;  %v2308_v47 = vsub.f32 0.0, %v6449_v51 }
 0x32b   :  { %4326 = vlog2.f32 %v2017_v16  ;;  %v2819_v11 = vsel %vm2817_vm8, %v2818_v60, %v2816_v36  ;;  %v2807_v8 = vmul.f32 %v4319_v26, %v6395_v27  ;;  %vm2822_vm13 = vcmp.eq.f32.partialorder %v6420_v1, inf  ;;  %v7841_v26 = vld [vmem:[#allocation35_spill] sm:$0xff] }
 0x32c   :  { %4328 = vrsqrt.f32 %v6455_v0  ;;  %v3275_v59 = vmul.f32 %v3626_v21, %v2819_v11  ;;  %vm2824_vm14 = vcmp.eq.f32.partialorder %v6420_v1, 0.0  ;;  %v2825_v9 = vand.u32 2147483648, %v6420_v1  ;;  %v2027_v21 = vpop.xlane.xlu1 %2026 }
 0x32d   :  { %v2374_v22 = vmul.f32 %v6476_v45, %v2306_v24  ;;  %v2809_v15 = vsel %vm2808_vm9, %v6395_v27, %v2807_v8  ;;  %v2377_v6 = vmul.f32 %v6476_v45, %v2309_v39  ;;  %v2376_v58 = vmul.f32 %v6476_v45, %v2308_v47  ;;  %v2025_v27 = vpop.xlane.xlu0 %2024 }
 0x32e   :  { %4330 = vlog2.f32 %v2023_v55  ;;  %v4321_v18 = vpop.eup %4320  ;;  %v3339_v41 = vadd.f32 %v3275_v59, %v7839_v13  ;;  %v2812_v30 = vsel %vm2810_vm10, %v2811_v54, %v2809_v15  ;;  %vm2843_vm15 = vcmp.eq.f32.partialorder %v6455_v0, inf }
 0x32f   :  { %v2442_v50 = vadd.f32 %v6490_v20, %v2374_v22  ;;  %4332 = vlog2.f32 %v2021_v29  ;;  %v4323_v61 = vpop.eup %4322  ;;  %v3274_v16 = vmul.f32 %v3625_v38, %v2812_v30  ;;  %v2828_v28 = vmul.f32 %v4321_v18, %v6418_v62  ;;  %v6506_v38 = vld [vmem:[#allocation5 + $0x60] sm:$0xff]  }
 0x330   :  { %v2445_v56 = vadd.f32 %v6490_v20, %v2377_v6  ;;  %v2444_v2 = vadd.f32 %v6490_v20, %v2376_v58  ;;  %v3406_v17 = vsel %vm3386_vm2, %v6325_v40, %v3339_v41  ;;  %v2821_v53 = vmul.f32 %v4323_v61, %v6420_v1  ;;  %v2031_v13 = vpop.xlane.xlu1 %2030  ;;  %v7843_v30 = vld [vmem:[#allocation67_spill] sm:$0xff]  ;;  %v7844_v61 = vld [vmem:[#allocation66_spill] sm:$0xff] }
 0x331   :  { %v2506_v60 = vmax.f32 %v2442_v50, 0.0  ;;  %4334 = vlog2.f32 %v2027_v21  ;;  %3470 = vst [vmem:[#allocation10 + $0x98] sm:$0xff] %v3406_v17  ;;  %v3338_v54 = vadd.f32 %v3274_v16, %v7840_v25  ;;  %v2830_v23 = vsel %vm2829_vm11, %v6418_v62, %v2828_v28  ;;  %v2029_v47 = vpop.xlane.xlu0 %2028 }
 0x332   :  { %v2509_v35 = vmax.f32 %v2445_v56, 0.0  ;;  %v2508_v32 = vmax.f32 %v2444_v2, 0.0  ;;  %v4325_v48 = vpop.eup %4324  ;;  %v2833_v33 = vsel %vm2831_vm12, %v2832_v43, %v2830_v23  ;;  %v2823_v40 = vsel %vm2822_vm13, %v6420_v1, %v2821_v53  ;;  %v7842_v1 = vld [vmem:[#allocation34_spill] sm:$0xff] }
 0x333   :  { %v6513_v52 = vadd.f32 1e-16, %v2506_v60  ;;  %4336 = vlog2.f32 %v2025_v27  ;;  %v3405_v55 = vsel %vm3386_vm2, %v6336_v34, %v3338_v54  ;;  %v3277_v4 = vmul.f32 %v3630_v10, %v2833_v33  ;;  %v7845_v56 = vld [vmem:[#allocation70_spill] sm:$0xff]  ;;  %v7846_v60 = vld [vmem:[#allocation39_spill] sm:$0xff] }
 0x334   :  { %v2826_v62 = vsel %vm2824_vm14, %v2825_v9, %v2823_v40  ;;  %v6524_v57 = vadd.f32 1e-16, %v2509_v35  ;;  %3469 = vst [vmem:[#allocation10 + $0x90] sm:$0xff] %v3405_v55  ;;  %v3638_v39 = vunpack.c.h.bf16 %v6506_v38  ;;  %v3637_v29 = vunpack.c.l.bf16 %v6506_v38  ;;  %v7847_v35 = vld [vmem:[#allocation69_spill] sm:$0xff]  ;;  %v2035_v40 = vpop.xlane.xlu1 %2034 }
 0x335   :  { %v4327_v49 = vpop.eup %4326  ;;  %v3276_v24 = vmul.f32 %v3629_v5, %v2826_v62  ;;  %4338 = vrsqrt.f32 %v6513_v52  ;;  %v3341_v36 = vadd.f32 %v3277_v4, %v7841_v26  ;;  %v3642_v10 = vunpack.c.h.bf16 %v6515_v44  ;;  %v2033_v28 = vpop.xlane.xlu0 %2032 }
 0x336   :  { %v4329_v34 = vpop.eup %4328  ;;  %4340 = vrsqrt.f32 %v6524_v57  ;;  %vm2845_vm0 = vcmp.eq.f32.partialorder %v6455_v0, 0.0  ;;  %v2846_v5 = vand.u32 2147483648, %v6455_v0  ;;  %v6542_v59 = vadd.f32 1e-16, %v2508_v32 }
 0x337   :  { %v3340_v43 = vadd.f32 %v3276_v24, %v7842_v1  ;;  %v2842_v12 = vmul.f32 %v4329_v34, %v6455_v0  ;;  %v3408_v8 = vsel %vm3386_vm2, %v6347_v14, %v3341_v36  ;;  %v2147_v9 = vmul.f32 0.6931472, %v4325_v48  ;;  %v7848_v48 = vld [vmem:[#allocation73_spill] sm:$0xff] }
 0x338   :  { %v4331_v11 = vpop.eup %4330  ;;  %v2145_v22 = vmul.f32 0.6931472, %v4327_v49  ;;  %3472 = vst [vmem:[#allocation10 + $0xa8] sm:$0xff] %v3408_v8  ;;  %vm2836_vm1 = vcmp.eq.f32.partialorder %v6513_v52, inf  ;;  %vm2838_vm3 = vcmp.eq.f32.partialorder %v6513_v52, 0.0  ;;  %v2839_v14 = vand.u32 2147483648, %v6513_v52 }
 0x339   :  { %v4333_v15 = vpop.eup %4332  ;;  %v3407_v6 = vsel %vm3386_vm2, %v6351_v42, %v3340_v43  ;;  %v2844_v58 = vsel %vm2843_vm15, %v6455_v0, %v2842_v12  ;;  %v2151_v21 = vmul.f32 0.6931472, %v4331_v11  ;;  %vm2857_vm4 = vcmp.eq.f32.partialorder %v6524_v57, inf }
 0x33a   :  { %3471 = vst [vmem:[#allocation10 + $0xa0] sm:$0xff] %v3407_v6  ;;  %v2847_v18 = vsel %vm2845_vm0, %v2846_v5, %v2844_v58  ;;  %4342 = vrsqrt.f32 %v6542_v59  ;;  %vm2859_vm5 = vcmp.eq.f32.partialorder %v6524_v57, 0.0  ;;  %v2860_v0 = vand.u32 2147483648, %v6524_v57 }
 0x33b   :  { %v4335_v41 = vpop.eup %4334  ;;  %v3279_v42 = vmul.f32 %v3634_v19, %v2847_v18  ;;  %v6560_v50 = vadd.f32 %v2147_v9, %v7843_v30  ;;  %v6563_v16 = vadd.f32 %v2145_v22, %v7844_v61  ;;  %v6566_v2 = vadd.f32 %v2151_v21, %v7845_v56  ;;  %v7849_v56 = vld [vmem:[#allocation37_spill] sm:$0xff] }
 0x33c   :  { %v2149_v27 = vmul.f32 0.6931472, %v4333_v15  ;;  %v2155_v17 = vmul.f32 0.6931472, %v4335_v41  ;;  %4344 = vlog2.f32 %v2029_v47  ;;  %vm2850_vm6 = vcmp.eq.f32.partialorder %v6542_v59, inf }
 0x33d   :  { %v4337_v53 = vpop.eup %4336  ;;  %v3343_v19 = vadd.f32 %v3279_v42, %v7846_v60  ;;  %v2311_v25 = vsub.f32 0.0, %v6560_v50  ;;  %v2310_v54 = vsub.f32 0.0, %v6563_v16  ;;  %4346 = vlog2.f32 %v2031_v13 }
 0x33e   :  { %v2313_v23 = vsub.f32 0.0, %v6566_v2  ;;  %v6574_v32 = vadd.f32 %v2149_v27, %v7847_v35  ;;  %v6577_v33 = vadd.f32 %v2155_v17, %v7848_v48  ;;  %4348 = vlog2.f32 %v2033_v28  ;;  %v7851_v48 = vld [vmem:[#allocation72_spill] sm:$0xff] }
 0x33f   :  { %v4339_v55 = vpop.eup %4338  ;;  %v3410_v4 = vsel %vm3386_vm2, %v6364_v3, %v3343_v19  ;;  %v2379_v62 = vmul.f32 %v6476_v45, %v2311_v25  ;;  %v2378_v49 = vmul.f32 %v6476_v45, %v2310_v54  ;;  %v2153_v24 = vmul.f32 0.6931472, %v4337_v53  ;;  %v6624_v53 = vld [vmem:[#allocation5 + $0x70] sm:$0xff]   ;;  %v6626_v19 = vld [vmem:[#allocation5 + $0x78] sm:$0xff]  }
 0x340   :  { %v4341_v34 = vpop.eup %4340  ;;  %3474 = vst [vmem:[#allocation10 + $0xb8] sm:$0xff] %v3410_v4  ;;  %v2835_v26 = vmul.f32 %v4339_v55, %v6513_v52  ;;  %v2381_v36 = vmul.f32 %v6476_v45, %v2313_v23  ;;  %v2312_v1 = vsub.f32 0.0, %v6574_v32  ;;  %v2315_v43 = vsub.f32 0.0, %v6577_v33 }
 0x341   :  { %v2856_v12 = vmul.f32 %v4341_v34, %v6524_v57  ;;  %v2447_v5 = vadd.f32 %v6490_v20, %v2379_v62  ;;  %v2446_v3 = vadd.f32 %v6490_v20, %v2378_v49  ;;  %4350 = vlog2.f32 %v2035_v40  ;;  %v7852_v34 = vld [vmem:[#allocation41_spill] sm:$0xff] }
 0x342   :  { %v2837_v47 = vsel %vm2836_vm1, %v6513_v52, %v2835_v26  ;;  %v2449_v11 = vadd.f32 %v6490_v20, %v2381_v36  ;;  %v2380_v8 = vmul.f32 %v6476_v45, %v2312_v1  ;;  %v2383_v9 = vmul.f32 %v6476_v45, %v2315_v43 }
 0x343   :  { %v2840_v22 = vsel %vm2838_vm3, %v2839_v14, %v2837_v47  ;;  %v2858_v15 = vsel %vm2857_vm4, %v6524_v57, %v2856_v12  ;;  %v2511_v6 = vmax.f32 %v2447_v5, 0.0  ;;  %v2510_v58 = vmax.f32 %v2446_v3, 0.0  ;;  %v2037_v12 = vpop.xlane.xlu0 %2036 }
 0x344   :  { %v4343_v21 = vpop.eup %4342  ;;  %v3278_v18 = vmul.f32 %v3633_v37, %v2840_v22  ;;  %v2861_v13 = vsel %vm2859_vm5, %v2860_v0, %v2858_v15  ;;  %v2513_v41 = vmax.f32 %v2449_v11, 0.0  ;;  %v2448_v42 = vadd.f32 %v6490_v20, %v2380_v8  ;;  %v7850_v0 = vld [vmem:[#allocation43_spill] sm:$0xff] }
 0x345   :  { %v3281_v52 = vmul.f32 %v3638_v39, %v2861_v13  ;;  %v2849_v14 = vmul.f32 %v4343_v21, %v6542_v59  ;;  %v6610_v30 = vadd.f32 1e-16, %v2511_v6  ;;  %v6612_v61 = vadd.f32 1e-16, %v2510_v58  ;;  %v2039_v58 = vpop.xlane.xlu1 %2038 }
 0x346   :  { %v4345_v28 = vpop.eup %4344  ;;  %v3342_v27 = vadd.f32 %v3278_v18, %v7849_v56  ;;  %vm2852_vm7 = vcmp.eq.f32.partialorder %v6542_v59, 0.0  ;;  %v2853_v63 = vand.u32 2147483648, %v6542_v59  ;;  %v6617_v37 = vadd.f32 1e-16, %v2513_v41 }
 0x347   :  { %v4347_v57 = vpop.eup %4346  ;;  %v3345_v17 = vadd.f32 %v3281_v52, %v7850_v0  ;;  %v2851_v39 = vsel %vm2850_vm6, %v6542_v59, %v2849_v14  ;;  %4352 = vrsqrt.f32 %v6610_v30  ;;  %v2512_v60 = vmax.f32 %v2448_v42, 0.0  ;;  %v7855_v14 = vld [vmem:[#allocation79_spill] sm:$0xff]  ;;  %v2041_v56 = vpop.xlane.xlu0 %2040 }
 0x348   :  { %v4349_v25 = vpop.eup %4348  ;;  %v3409_v54 = vsel %vm3386_vm2, %v6441_v31, %v3342_v27  ;;  %v2854_v23 = vsel %vm2852_vm7, %v2853_v63, %v2851_v39  ;;  %v2451_v35 = vadd.f32 %v6490_v20, %v2383_v9  ;;  %v6633_v40 = vadd.f32 %v2153_v24, %v7851_v48  ;;  %v7853_v9 = vld [vmem:[#allocation75_spill] sm:$0xff] }
 0x349   :  { %3473 = vst [vmem:[#allocation10 + $0xb0] sm:$0xff] %v3409_v54  ;;  %v3412_v59 = vsel %vm3386_vm2, %v6444_v7, %v3345_v17  ;;  %v3280_v55 = vmul.f32 %v3637_v29, %v2854_v23  ;;  %v3641_v4 = vunpack.c.l.bf16 %v6515_v44  ;;  %4354 = vrsqrt.f32 %v6612_v61 }
 0x34a   :  { %3476 = vst [vmem:[#allocation10 + $0xc8] sm:$0xff] %v3412_v59  ;;  %v3646_v31 = vunpack.c.h.bf16 %v6624_v53  ;;  %4356 = vrsqrt.f32 %v6617_v37  ;;  %v3645_v62 = vunpack.c.l.bf16 %v6624_v53  ;;  %v3650_v49 = vunpack.c.h.bf16 %v6626_v19  ;;  %v7860_v53 = vld [vmem:[#allocation48_spill] sm:$0xff] }
 0x34b   :  { %v4351_v24 = vpop.eup %4350  ;;  %v3344_v26 = vadd.f32 %v3280_v55, %v7852_v34  ;;  %vm2871_vm8 = vcmp.eq.f32.partialorder %v6610_v30, inf  ;;  %v6648_v7 = vadd.f32 1e-16, %v2512_v60  ;;  %v3649_v38 = vunpack.c.l.bf16 %v6626_v19 }
 0x34c   :  { %vm2873_vm9 = vcmp.eq.f32.partialorder %v6610_v30, 0.0  ;;  %v2515_v29 = vmax.f32 %v2451_v35, 0.0  ;;  %v2314_v36 = vsub.f32 0.0, %v6633_v40  ;;  %v2157_v1 = vmul.f32 0.6931472, %v4345_v28  ;;  %v7856_v35 = vld [vmem:[#allocation81_spill] sm:$0xff] }
 0x34d   :  { %v2159_v43 = vmul.f32 0.6931472, %v4347_v57  ;;  %v3411_v5 = vsel %vm3386_vm2, %v6449_v51, %v3344_v26  ;;  %v2874_v3 = vand.u32 2147483648, %v6610_v30  ;;  %vm2864_vm10 = vcmp.eq.f32.partialorder %v6612_v61, inf  ;;  %v7854_v51 = vld [vmem:[#allocation77_spill] sm:$0xff] }
 0x34e   :  { %4358 = vrsqrt.f32 %v6648_v7  ;;  %3475 = vst [vmem:[#allocation10 + $0xc0] sm:$0xff] %v3411_v5  ;;  %vm2866_vm11 = vcmp.eq.f32.partialorder %v6612_v61, 0.0  ;;  %v2867_v47 = vand.u32 2147483648, %v6612_v61  ;;  %v6661_v11 = vadd.f32 1e-16, %v2515_v29 }
 0x34f   :  { %v2382_v8 = vmul.f32 %v6476_v45, %v2314_v36  ;;  %v6665_v22 = vadd.f32 %v2157_v1, %v7853_v9  ;;  %vm2885_vm12 = vcmp.eq.f32.partialorder %v6617_v37, inf  ;;  %v6669_v15 = vadd.f32 %v2159_v43, %v7854_v51 }
 0x350   :  { %v2161_v6 = vmul.f32 0.6931472, %v4349_v25  ;;  %4360 = vlog2.f32 %v2037_v12  ;;  %vm2887_vm13 = vcmp.eq.f32.partialorder %v6617_v37, 0.0  ;;  %v2888_v21 = vand.u32 2147483648, %v6617_v37  ;;  %v7857_v12 = vld [vmem:[#allocation47_spill] sm:$0xff] }
 0x351   :  { %4362 = vrsqrt.f32 %v6661_v11  ;;  %v2163_v18 = vmul.f32 0.6931472, %v4351_v24  ;;  %v4353_v13 = vpop.eup %4352  ;;  %vm2878_vm14 = vcmp.eq.f32.partialorder %v6648_v7, inf  ;;  %v2450_v41 = vadd.f32 %v6490_v20, %v2382_v8 }
 0x352   :  { %v2316_v42 = vsub.f32 0.0, %v6665_v22  ;;  %v2317_v52 = vsub.f32 0.0, %v6669_v15  ;;  %v6679_v28 = vadd.f32 %v2161_v6, %v7855_v14  ;;  %v2870_v27 = vmul.f32 %v4353_v13, %v6610_v30  ;;  %v6735_v14 = vld [vmem:[#allocation5 + $0x80] sm:$0xff]  }
 0x353   :  { %vm2880_vm15 = vcmp.eq.f32.partialorder %v6648_v7, 0.0  ;;  %v2881_v63 = vand.u32 2147483648, %v6648_v7  ;;  %4364 = vlog2.f32 %v2039_v58  ;;  %v4355_v57 = vpop.eup %4354  ;;  %v2514_v0 = vmax.f32 %v2450_v41, 0.0  ;;  %v7859_v41 = vld [vmem:[#allocation49_spill] sm:$0xff] }
 0x354   :  { %v2384_v17 = vmul.f32 %v6476_v45, %v2316_v42  ;;  %v2385_v39 = vmul.f32 %v6476_v45, %v2317_v52  ;;  %v2318_v60 = vsub.f32 0.0, %v6679_v28  ;;  %v4357_v25 = vpop.eup %4356  ;;  %v2872_v54 = vsel %vm2871_vm8, %v6610_v30, %v2870_v27 }
 0x355   :  { %v2863_v23 = vmul.f32 %v4355_v57, %v6612_v61  ;;  %v6692_v48 = vadd.f32 %v2163_v18, %v7856_v35  ;;  %4366 = vlog2.f32 %v2041_v56  ;;  %v2875_v59 = vsel %vm2873_vm9, %v2874_v3, %v2872_v54 }
 0x356   :  { %v2884_v55 = vmul.f32 %v4357_v25, %v6617_v37  ;;  %v6697_v24 = vadd.f32 1e-16, %v2514_v0  ;;  %v2452_v34 = vadd.f32 %v6490_v20, %v2384_v17  ;;  %v3283_v26 = vmul.f32 %v3642_v10, %v2875_v59  ;;  %v6746_v17 = vld [vmem:[#allocation5 + $0x88] sm:$0xff]  }
 0x357   :  { %v2865_v29 = vsel %vm2864_vm10, %v6612_v61, %v2863_v23  ;;  %vm2899_vm0 = vcmp.eq.f32.partialorder %v6661_v11, inf  ;;  %v2453_v36 = vadd.f32 %v6490_v20, %v2385_v39  ;;  %v2386_v10 = vmul.f32 %v6476_v45, %v2318_v60  ;;  %v2043_v23 = vpop.xlane.xlu1 %2042 }
 0x358   :  { %v4359_v1 = vpop.eup %4358  ;;  %v2868_v30 = vsel %vm2866_vm11, %v2867_v47, %v2865_v29  ;;  %v2886_v43 = vsel %vm2885_vm12, %v6617_v37, %v2884_v55  ;;  %4368 = vrsqrt.f32 %v6697_v24  ;;  %v3347_v5 = vadd.f32 %v3283_v26, %v7857_v12  ;;  %v7861_v29 = vld [vmem:[#allocation51_spill] sm:$0xff] }
 0x359   :  { %v3282_v3 = vmul.f32 %v3641_v4, %v2868_v30  ;;  %v2889_v8 = vsel %vm2887_vm13, %v2888_v21, %v2886_v43  ;;  %v2877_v9 = vmul.f32 %v4359_v1, %v6648_v7  ;;  %v2902_v51 = vand.u32 2147483648, %v6661_v11  ;;  %v7858_v4 = vld [vmem:[#allocation45_spill] sm:$0xff] }
 0x35a   :  { %v4361_v61 = vpop.eup %4360  ;;  %v3285_v47 = vmul.f32 %v3646_v31, %v2889_v8  ;;  %v2516_v6 = vmax.f32 %v2452_v34, 0.0  ;;  %v2319_v58 = vsub.f32 0.0, %v6692_v48  ;;  %v3414_v44 = vsel %vm3386_vm2, %v6560_v50, %v3347_v5  ;;  %v7862_v5 = vld [vmem:[#allocation83_spill] sm:$0xff]  ;;  %v7863_v8 = vld [vmem:[#allocation85_spill] sm:$0xff] }
 0x35b   :  { %v4363_v18 = vpop.eup %4362  ;;  %v3346_v13 = vadd.f32 %v3282_v3, %v7858_v4  ;;  %v2879_v37 = vsel %vm2878_vm14, %v6648_v7, %v2877_v9  ;;  %v2517_v21 = vmax.f32 %v2453_v36, 0.0  ;;  %3478 = vst [vmem:[#allocation10 + $0xd8] sm:$0xff] %v3414_v44  ;;  %v2454_v7 = vadd.f32 %v6490_v20, %v2386_v10 }
 0x35c   :  { %v3349_v31 = vadd.f32 %v3285_v47, %v7859_v41  ;;  %v2882_v42 = vsel %vm2880_vm15, %v2881_v63, %v2879_v37  ;;  %v2898_v52 = vmul.f32 %v4363_v18, %v6661_v11  ;;  %v6737_v56 = vadd.f32 1e-16, %v2516_v6  ;;  %v2061_v6 = vpop.xlane.xlu0 %2060 }
 0x35d   :  { %v4365_v50 = vpop.eup %4364  ;;  %v3413_v27 = vsel %vm3386_vm2, %v6563_v16, %v3346_v13  ;;  %v3284_v57 = vmul.f32 %v3645_v62, %v2882_v42  ;;  %v6744_v0 = vadd.f32 1e-16, %v2517_v21  ;;  %vm2901_vm1 = vcmp.eq.f32.partialorder %v6661_v11, 0.0  ;;  %v7865_v42 = vld [vmem:[#allocation50_spill] sm:$0xff] }
 0x35e   :  { %3477 = vst [vmem:[#allocation10 + $0xd0] sm:$0xff] %v3413_v27  ;;  %v3416_v63 = vsel %vm3386_vm2, %v6566_v2, %v3349_v31  ;;  %v2900_v39 = vsel %vm2899_vm0, %v6661_v11, %v2898_v52  ;;  %4370 = vrsqrt.f32 %v6737_v56  ;;  %v3653_v25 = vunpack.c.l.bf16 %v6735_v14  ;;  %v2063_v27 = vpop.xlane.xlu1 %2062 }
 0x35f   :  { %v4367_v16 = vpop.eup %4366  ;;  %3480 = vst [vmem:[#allocation10 + $0xe8] sm:$0xff] %v3416_v63  ;;  %v3348_v62 = vadd.f32 %v3284_v57, %v7860_v53  ;;  %v2903_v60 = vsel %vm2901_vm1, %v2902_v51, %v2900_v39  ;;  %v3654_v54 = vunpack.c.h.bf16 %v6735_v14  ;;  %vm2892_vm3 = vcmp.eq.f32.partialorder %v6697_v24, inf }
 0x360   :  { %v3287_v2 = vmul.f32 %v3650_v49, %v2903_v60  ;;  %4372 = vrsqrt.f32 %v6744_v0  ;;  %v3657_v11 = vunpack.c.l.bf16 %v6746_v17  ;;  %v2895_v59 = vand.u32 2147483648, %v6697_v24 }
 0x361   :  { %v3415_v35 = vsel %vm3386_vm2, %v6574_v32, %v3348_v62  ;;  %v2518_v55 = vmax.f32 %v2454_v7, 0.0  ;;  %v2387_v34 = vmul.f32 %v6476_v45, %v2319_v58  ;;  %v2165_v36 = vmul.f32 0.6931472, %v4361_v61  ;;  %v7864_v61 = vld [vmem:[#allocation87_spill] sm:$0xff] }
 0x362   :  { %v4369_v26 = vpop.eup %4368  ;;  %3479 = vst [vmem:[#allocation10 + $0xe0] sm:$0xff] %v3415_v35  ;;  %v3351_v49 = vadd.f32 %v3287_v2, %v7861_v29  ;;  %v2167_v1 = vmul.f32 0.6931472, %v4365_v50  ;;  %v2169_v30 = vmul.f32 0.6931472, %v4367_v16  ;;  %4374 = vlog2.f32 %v2043_v23  ;;  %v2045_v23 = vpop.xlane.xlu0 %2044 }
 0x363   :  { %v2891_v43 = vmul.f32 %v4369_v26, %v6697_v24  ;;  %v6772_v10 = vadd.f32 1e-16, %v2518_v55  ;;  %v2455_v12 = vadd.f32 %v6490_v20, %v2387_v34  ;;  %v6779_v3 = vadd.f32 %v2165_v36, %v7862_v5  ;;  %v7866_v36 = vld [vmem:[#allocation52_spill] sm:$0xff] }
 0x364   :  { %v3418_v32 = vsel %vm3386_vm2, %v6577_v33, %v3351_v49  ;;  %v6782_v9 = vadd.f32 %v2167_v1, %v7863_v8  ;;  %v6785_v47 = vadd.f32 %v2169_v30, %v7864_v61  ;;  %vm2894_vm4 = vcmp.eq.f32.partialorder %v6697_v24, 0.0  ;;  %v6843_v8 = vld [vmem:[#allocation5 + $0x98] sm:$0xff]  }
 0x365   :  { %3482 = vst [vmem:[#allocation10 + $0xf8] sm:$0xff] %v3418_v32  ;;  %v2893_v51 = vsel %vm2892_vm3, %v6697_v24, %v2891_v43  ;;  %4376 = vrsqrt.f32 %v6772_v10  ;;  %v3658_v33 = vunpack.c.h.bf16 %v6746_v17  ;;  %vm2906_vm5 = vcmp.eq.f32.partialorder %v6737_v56, inf }
 0x366   :  { %v2896_v58 = vsel %vm2894_vm4, %v2895_v59, %v2893_v51  ;;  %v2519_v18 = vmax.f32 %v2455_v12, 0.0  ;;  %v2320_v44 = vsub.f32 0.0, %v6779_v3  ;;  %vm2908_vm6 = vcmp.eq.f32.partialorder %v6737_v56, 0.0  ;;  %v2067_v12 = vpop.xlane.xlu1 %2066 }
 0x367   :  { %v3286_v4 = vmul.f32 %v3649_v38, %v2896_v58  ;;  %v2321_v13 = vsub.f32 0.0, %v6782_v9  ;;  %v2322_v24 = vsub.f32 0.0, %v6785_v47  ;;  %v2909_v21 = vand.u32 2147483648, %v6737_v56 }
 0x368   :  { %v4371_v37 = vpop.eup %4370  ;;  %v6801_v41 = vadd.f32 1e-16, %v2519_v18  ;;  %v2388_v31 = vmul.f32 %v6476_v45, %v2320_v44  ;;  %4378 = vlog2.f32 %v2061_v6  ;;  %vm2913_vm7 = vcmp.eq.f32.partialorder %v6744_v0, inf  ;;  %v7868_v6 = vld [vmem:[#allocation101_spill] sm:$0xff] }
 0x369   :  { %v3350_v52 = vadd.f32 %v3286_v4, %v7865_v42  ;;  %v2905_v50 = vmul.f32 %v4371_v37, %v6737_v56  ;;  %v2389_v19 = vmul.f32 %v6476_v45, %v2321_v13  ;;  %v2390_v38 = vmul.f32 %v6476_v45, %v2322_v24 }
 0x36a   :  { %v4373_v57 = vpop.eup %4372  ;;  %vm2915_vm8 = vcmp.eq.f32.partialorder %v6744_v0, 0.0  ;;  %v2916_v7 = vand.u32 2147483648, %v6744_v0  ;;  %4380 = vrsqrt.f32 %v6801_v41  ;;  %v2456_v53 = vadd.f32 %v6490_v20, %v2388_v31 }
 0x36b   :  { %v3417_v63 = vsel %vm3386_vm2, %v6633_v40, %v3350_v52  ;;  %v2907_v39 = vsel %vm2906_vm5, %v6737_v56, %v2905_v50  ;;  %v2912_v16 = vmul.f32 %v4373_v57, %v6744_v0  ;;  %v2457_v60 = vadd.f32 %v6490_v20, %v2389_v19  ;;  %v2047_v50 = vpop.xlane.xlu1 %2046 }
 0x36c   :  { %3481 = vst [vmem:[#allocation10 + $0xf0] sm:$0xff] %v3417_v63  ;;  %v2910_v62 = vsel %vm2908_vm6, %v2909_v21, %v2907_v39  ;;  %v2458_v2 = vadd.f32 %v6490_v20, %v2390_v38  ;;  %4382 = vlog2.f32 %v2063_v27  ;;  %v4375_v35 = vpop.eup %4374  ;;  %vm2920_vm9 = vcmp.eq.f32.partialorder %v6772_v10, inf  ;;  %v2065_v21 = vpop.xlane.xlu0 %2064  ;;  %v7869_v38 = vld [vmem:[#allocation54_spill] sm:$0xff] }
 0x36d   :  { %v3288_v40 = vmul.f32 %v3653_v25, %v2910_v62  ;;  %v2914_v59 = vsel %vm2913_vm7, %v6744_v0, %v2912_v16  ;;  %v2520_v55 = vmax.f32 %v2456_v53, 0.0  ;;  %v2521_v34 = vmax.f32 %v2457_v60, 0.0  ;;  %v6835_v25 = vld [vmem:[#allocation5 + $0x90] sm:$0xff]   ;;  %v7870_v62 = vld [vmem:[#allocation102_spill] sm:$0xff] }
 0x36e   :  { %v2917_v56 = vsel %vm2915_vm8, %v2916_v7, %v2914_v59  ;;  %v2522_v26 = vmax.f32 %v2458_v2, 0.0  ;;  %v2171_v29 = vmul.f32 0.6931472, %v4375_v35  ;;  %4384 = vlog2.f32 %v2045_v23 }
 0x36f   :  { %v4377_v49 = vpop.eup %4376  ;;  %v3352_v1 = vadd.f32 %v3288_v40, %v7866_v36  ;;  %v3289_v30 = vmul.f32 %v3654_v54, %v2917_v56  ;;  %v6837_v43 = vadd.f32 1e-16, %v2520_v55  ;;  %v2923_v0 = vand.u32 2147483648, %v6772_v10  ;;  %v7867_v54 = vld [vmem:[#allocation53_spill] sm:$0xff]  ;;  %v7871_v40 = vld [vmem:[#allocation103_spill] sm:$0xff] }
 0x370   :  { %v2919_v32 = vmul.f32 %v4377_v49, %v6772_v10  ;;  %v6841_v5 = vadd.f32 1e-16, %v2521_v34  ;;  %v6845_v61 = vadd.f32 1e-16, %v2522_v26  ;;  %v6853_v58 = vadd.f32 %v2171_v29, %v7868_v6  ;;  %v7872_v34 = vld [vmem:[#allocation55_spill] sm:$0xff]  ;;  %v2071_v49 = vpop.xlane.xlu1 %2070 }
 0x371   :  { %v3419_v14 = vsel %vm3386_vm2, %v6665_v22, %v3352_v1  ;;  %v3353_v51 = vadd.f32 %v3289_v30, %v7867_v54  ;;  %4386 = vrsqrt.f32 %v6837_v43  ;;  %vm2922_vm10 = vcmp.eq.f32.partialorder %v6772_v10, 0.0 }
 0x372   :  { %v4379_v18 = vpop.eup %4378  ;;  %3483 = vst [vmem:[#allocation10 + $0x100] sm:$0xff] %v3419_v14  ;;  %v2921_v44 = vsel %vm2920_vm9, %v6772_v10, %v2919_v32  ;;  %v3661_v4 = vunpack.c.l.bf16 %v6835_v25  ;;  %4388 = vrsqrt.f32 %v6841_v5  ;;  %v3662_v24 = vunpack.c.h.bf16 %v6835_v25 }
 0x373   :  { %v3420_v22 = vsel %vm3386_vm2, %v6669_v15, %v3353_v51  ;;  %v2924_v13 = vsel %vm2922_vm10, %v2923_v0, %v2921_v44  ;;  %v3665_v37 = vunpack.c.l.bf16 %v6843_v8  ;;  %vm2927_vm11 = vcmp.eq.f32.partialorder %v6801_v41, inf }
 0x374   :  { %v4381_v31 = vpop.eup %4380  ;;  %3484 = vst [vmem:[#allocation10 + $0x108] sm:$0xff] %v3420_v22  ;;  %v3290_v42 = vmul.f32 %v3657_v11, %v2924_v13  ;;  %vm2929_vm12 = vcmp.eq.f32.partialorder %v6801_v41, 0.0  ;;  %4390 = vrsqrt.f32 %v6845_v61  ;;  %v2930_v15 = vand.u32 2147483648, %v6801_v41 }
 0x375   :  { %v2926_v10 = vmul.f32 %v4381_v31, %v6801_v41  ;;  %vm2934_vm13 = vcmp.eq.f32.partialorder %v6837_v43, inf  ;;  %v2323_v52 = vsub.f32 0.0, %v6853_v58  ;;  %vm2936_vm14 = vcmp.eq.f32.partialorder %v6837_v43, 0.0 }
 0x376   :  { %v4383_v19 = vpop.eup %4382  ;;  %v3354_v27 = vadd.f32 %v3290_v42, %v7869_v38  ;;  %v2189_v11 = vmul.f32 0.6931472, %v4379_v18  ;;  %4392 = vlog2.f32 %v2067_v12  ;;  %v2937_v7 = vand.u32 2147483648, %v6837_v43  ;;  %v7873_v12 = vld [vmem:[#allocation104_spill] sm:$0xff] }
 0x377   :  { %v2928_v57 = vsel %vm2927_vm11, %v6801_v41, %v2926_v10  ;;  %v2391_v63 = vmul.f32 %v6476_v45, %v2323_v52  ;;  %v2191_v39 = vmul.f32 0.6931472, %v4383_v19  ;;  %4394 = vlog2.f32 %v2065_v21  ;;  %v7874_v38 = vld [vmem:[#allocation56_spill] sm:$0xff] }
 0x378   :  { %v3421_v16 = vsel %vm3386_vm2, %v6679_v28, %v3354_v27  ;;  %v2931_v53 = vsel %vm2929_vm12, %v2930_v15, %v2928_v57  ;;  %v6886_v60 = vadd.f32 %v2189_v11, %v7870_v62  ;;  %v4385_v2 = vpop.eup %4384  ;;  %vm2941_vm15 = vcmp.eq.f32.partialorder %v6841_v5, inf  ;;  %v2069_v28 = vpop.xlane.xlu0 %2068  ;;  %v7875_v57 = vld [vmem:[#allocation57_spill] sm:$0xff] }
 0x379   :  { %3485 = vst [vmem:[#allocation10 + $0x110] sm:$0xff] %v3421_v16  ;;  %v3291_v23 = vmul.f32 %v3658_v33, %v2931_v53  ;;  %v2459_v35 = vadd.f32 %v6490_v20, %v2391_v63  ;;  %v6893_v59 = vadd.f32 %v2191_v39, %v7871_v40  ;;  %vm2943_vm0 = vcmp.eq.f32.partialorder %v6841_v5, 0.0  ;;  %v7877_v40 = vld [vmem:[#allocation58_spill] sm:$0xff] }
 0x37a   :  { %v2332_v41 = vsub.f32 0.0, %v6886_v60  ;;  %v2173_v55 = vmul.f32 0.6931472, %v4385_v2  ;;  %4396 = vlog2.f32 %v2047_v50  ;;  %v2944_v17 = vand.u32 2147483648, %v6841_v5  ;;  %v6949_v2 = vld [vmem:[%s7507_s4 + $0x2] ss:$0 sm:$0xff] }
 0x37b   :  { %v4387_v56 = vpop.eup %4386  ;;  %v3355_v26 = vadd.f32 %v3291_v23, %v7872_v34  ;;  %v2523_v33 = vmax.f32 %v2459_v35, 0.0  ;;  %v2333_v29 = vsub.f32 0.0, %v6893_v59  ;;  %4398 = vlog2.f32 %v2069_v28  ;;  %v7876_v23 = vld [vmem:[#allocation90_spill] sm:$0xff]  ;;  %v6959_v28 = vld [vmem:[#allocation5 + $0xc0] sm:$0xff]  }
 0x37c   :  { %v4389_v36 = vpop.eup %4388  ;;  %v2933_v1 = vmul.f32 %v4387_v56, %v6837_v43  ;;  %v2400_v30 = vmul.f32 %v6476_v45, %v2332_v41  ;;  %v6903_v32 = vadd.f32 %v2173_v55, %v7873_v12  ;;  %4400 = vlog2.f32 %v2071_v49  ;;  %v6962_v41 = vld [vmem:[#allocation5 + $0xa0] sm:$0xff]  }
 0x37d   :  { %v3422_v0 = vsel %vm3386_vm2, %v6692_v48, %v3355_v26  ;;  %v2940_v14 = vmul.f32 %v4389_v36, %v6841_v5  ;;  %v6909_v54 = vadd.f32 1e-16, %v2523_v33  ;;  %v2401_v51 = vmul.f32 %v6476_v45, %v2333_v29  ;;  %v7878_v56 = vld [vmem:[#allocation91_spill] sm:$0xff]  ;;  %v7879_v29 = vld [vmem:[#allocation105_spill] sm:$0xff]  ;;  %v7880_v36 = vld [vmem:[#allocation106_spill] sm:$0xff] }
 0x37e   :  { %v4391_v6 = vpop.eup %4390  ;;  %3486 = vst [vmem:[#allocation10 + $0x118] sm:$0xff] %v3422_v0  ;;  %v2935_v18 = vsel %vm2934_vm13, %v6837_v43, %v2933_v1  ;;  %v2468_v44 = vadd.f32 %v6490_v20, %v2400_v30  ;;  %v2324_v22 = vsub.f32 0.0, %v6903_v32  ;;  %vm2948_vm1 = vcmp.eq.f32.partialorder %v6845_v61, inf }
 0x37f   :  { %v2938_v48 = vsel %vm2936_vm14, %v2937_v7, %v2935_v18  ;;  %v2942_v13 = vsel %vm2941_vm15, %v6841_v5, %v2940_v14  ;;  %v2947_v21 = vmul.f32 %v4391_v6, %v6845_v61  ;;  %4402 = vrsqrt.f32 %v6909_v54 }
 0x380   :  { %v4393_v31 = vpop.eup %4392  ;;  %v3292_v42 = vmul.f32 %v3661_v4, %v2938_v48  ;;  %v2945_v10 = vsel %vm2943_vm0, %v2944_v17, %v2942_v13  ;;  %v2951_v43 = vand.u32 2147483648, %v6845_v61  ;;  %vm2950_vm3 = vcmp.eq.f32.partialorder %v6845_v61, 0.0 }
 0x381   :  { %v3293_v15 = vmul.f32 %v3662_v24, %v2945_v10  ;;  %v2949_v52 = vsel %vm2948_vm1, %v6845_v61, %v2947_v21  ;;  %v2532_v50 = vmax.f32 %v2468_v44, 0.0  ;;  %v4395_v19 = vpop.eup %4394  ;;  %v2469_v4 = vadd.f32 %v6490_v20, %v2401_v51  ;;  %v7881_v44 = vld [vmem:[#allocation107_spill] sm:$0xff] }
 0x382   :  { %v3356_v27 = vadd.f32 %v3292_v42, %v7874_v38  ;;  %v2952_v11 = vsel %vm2950_vm3, %v2951_v43, %v2949_v52  ;;  %v2392_v5 = vmul.f32 %v6476_v45, %v2324_v22  ;;  %v2195_v24 = vmul.f32 0.6931472, %v4393_v31  ;;  %v2049_v31 = vpop.xlane.xlu0 %2048  ;;  %v7882_v38 = vld [vmem:[#allocation108_spill] sm:$0xff] }
 0x383   :  { %v3357_v7 = vadd.f32 %v3293_v15, %v7875_v57  ;;  %v3294_v63 = vmul.f32 %v3665_v37, %v2952_v11  ;;  %v6940_v25 = vadd.f32 1e-16, %v2532_v50  ;;  %v2533_v16 = vmax.f32 %v2469_v4, 0.0  ;;  %v2075_v50 = vpop.xlane.xlu1 %2074  ;;  %v7883_v11 = vld [vmem:[#allocation109_spill] sm:$0xff] }
 0x384   :  { %v4397_v39 = vpop.eup %4396  ;;  %v3423_v61 = vsel %vm3386_vm2, %v6779_v3, %v3356_v27  ;;  %v2460_v53 = vadd.f32 %v6490_v20, %v2392_v5  ;;  %v2193_v62 = vmul.f32 0.6931472, %v4395_v19  ;;  %v6953_v37 = vadd.f32 %v6949_v2, %v7876_v23 }
 0x385   :  { %3487 = vst [vmem:[#allocation10 + $0x120] sm:$0xff] %v3423_v61  ;;  %v3424_v35 = vsel %vm3386_vm2, %v6782_v9, %v3357_v7  ;;  %v3358_v3 = vadd.f32 %v3294_v63, %v7877_v40  ;;  %4404 = vrsqrt.f32 %v6940_v25  ;;  %v4399_v55 = vpop.eup %4398  ;;  %v6966_v34 = vadd.f32 %v6949_v2, %v7878_v56  ;;  %v7884_v61 = vld [vmem:[#allocation59_spill] sm:$0xff] }
 0x386   :  { %3488 = vst [vmem:[#allocation10 + $0x128] sm:$0xff] %v3424_v35  ;;  %v3666_v26 = vunpack.c.h.bf16 %v6843_v8  ;;  %v6969_v17 = vadd.f32 1e-16, %v2533_v16  ;;  %v2524_v33 = vmax.f32 %v2460_v53, 0.0  ;;  %v6975_v49 = vadd.f32 %v2195_v24, %v7879_v29  ;;  %v4401_v12 = vpop.eup %4400 }
 0x387   :  { %v3425_v9 = vsel %vm3386_vm2, %v6785_v47, %v3358_v3  ;;  %v6978_v1 = vadd.f32 %v2193_v62, %v7880_v36  ;;  %v2175_v30 = vmul.f32 0.6931472, %v4397_v39  ;;  %v3685_v0 = vunpack.c.l.bf16 %v6959_v28 }
 0x388   :  { %3489 = vst [vmem:[#allocation10 + $0x130] sm:$0xff] %v3425_v9  ;;  %v3686_v8 = vunpack.c.h.bf16 %v6959_v28  ;;  %4406 = vrsqrt.f32 %v6969_v17  ;;  %v3669_v14 = vunpack.c.l.bf16 %v6962_v41  ;;  %v6984_v6 = vadd.f32 1e-16, %v2524_v33 }
 0x389   :  { %v4403_v51 = vpop.eup %4402  ;;  %v2335_v47 = vsub.f32 0.0, %v6975_v49  ;;  %v2334_v18 = vsub.f32 0.0, %v6978_v1  ;;  %v6989_v22 = vadd.f32 %v2175_v30, %v7881_v44  ;;  %vm2955_vm4 = vcmp.eq.f32.partialorder %v6909_v54, inf }
 0x38a   :  { %v2954_v48 = vmul.f32 %v4403_v51, %v6909_v54  ;;  %v2197_v13 = vmul.f32 0.6931472, %v4399_v55  ;;  %v2199_v21 = vmul.f32 0.6931472, %v4401_v12  ;;  %vm2957_vm5 = vcmp.eq.f32.partialorder %v6909_v54, 0.0 }
 0x38b   :  { %v2958_v42 = vand.u32 2147483648, %v6909_v54  ;;  %vm3018_vm6 = vcmp.eq.f32.partialorder %v6940_v25, inf  ;;  %4408 = vrsqrt.f32 %v6984_v6  ;;  %v2403_v43 = vmul.f32 %v6476_v45, %v2335_v47 }
 0x38c   :  { %v2956_v10 = vsel %vm2955_vm4, %v6909_v54, %v2954_v48  ;;  %v2402_v15 = vmul.f32 %v6476_v45, %v2334_v18  ;;  %v2325_v52 = vsub.f32 0.0, %v6989_v22  ;;  %v7002_v27 = vadd.f32 %v2197_v13, %v7882_v38  ;;  %v7045_v13 = vld [vmem:[#allocation5 + $0xc8] sm:$0xff]  }
 0x38d   :  { %v2959_v19 = vsel %vm2957_vm5, %v2958_v42, %v2956_v10  ;;  %v7005_v4 = vadd.f32 %v2199_v21, %v7883_v11  ;;  %4410 = vlog2.f32 %v2049_v31  ;;  %v2471_v57 = vadd.f32 %v6490_v20, %v2403_v43  ;;  %v7886_v38 = vld [vmem:[#allocation16_spill] sm:$0xff] }
 0x38e   :  { %v3295_v5 = vmul.f32 %v3666_v26, %v2959_v19  ;;  %v2470_v54 = vadd.f32 %v6490_v20, %v2402_v15  ;;  %v2393_v7 = vmul.f32 %v6476_v45, %v2325_v52  ;;  %vm3020_vm7 = vcmp.eq.f32.partialorder %v6940_v25, 0.0  ;;  %v7059_v52 = vld [vmem:[%s7507_s4 + $0x4] ss:$0 sm:$0xff] }
 0x38f   :  { %v4405_v63 = vpop.eup %4404  ;;  %v2336_v24 = vsub.f32 0.0, %v7002_v27  ;;  %v2337_v39 = vsub.f32 0.0, %v7005_v4  ;;  %4412 = vlog2.f32 %v2075_v50  ;;  %v2535_v62 = vmax.f32 %v2471_v57, 0.0  ;;  %v7067_v57 = vld [vmem:[#allocation5 + $0xd0] sm:$0xff]  }
 0x390   :  { %v3359_v16 = vadd.f32 %v3295_v5, %v7884_v61  ;;  %v3017_v53 = vmul.f32 %v4405_v63, %v6940_v25  ;;  %v2534_v23 = vmax.f32 %v2470_v54, 0.0  ;;  %v3021_v35 = vand.u32 2147483648, %v6940_v25 }
 0x391   :  { %vm3025_vm8 = vcmp.eq.f32.partialorder %v6969_v17, inf  ;;  %v2461_v40 = vadd.f32 %v6490_v20, %v2393_v7  ;;  %v2404_v3 = vmul.f32 %v6476_v45, %v2336_v24  ;;  %v7025_v33 = vadd.f32 1e-16, %v2535_v62 }
 0x392   :  { %v4407_v55 = vpop.eup %4406  ;;  %v3426_v56 = vsel %vm3386_vm2, %v6853_v58, %v3359_v16  ;;  %v3019_v26 = vsel %vm3018_vm6, %v6940_v25, %v3017_v53  ;;  %v7027_v9 = vadd.f32 1e-16, %v2534_v23  ;;  %v3028_v58 = vand.u32 2147483648, %v6969_v17  ;;  %v7885_v25 = vld [vmem:[#allocation15_spill] sm:$0xff]  ;;  %v7887_v16 = vld [vmem:[#allocation110_spill] sm:$0xff] }
 0x393   :  { %3490 = vst [vmem:[#allocation10 + $0x138] sm:$0xff] %v3426_v56  ;;  %v3022_v29 = vsel %vm3020_vm7, %v3021_v35, %v3019_v26  ;;  %v3024_v36 = vmul.f32 %v4407_v55, %v6969_v17  ;;  %v2525_v30 = vmax.f32 %v2461_v40, 0.0  ;;  %v2472_v12 = vadd.f32 %v6490_v20, %v2404_v3  ;;  %v7888_v23 = vld [vmem:[#allocation62_spill] sm:$0xff]  ;;  %v7889_v26 = vld [vmem:[#allocation111_spill] sm:$0xff] }
 0x394   :  { %v3304_v51 = vmul.f32 %v3685_v0, %v3022_v29  ;;  %4414 = vrsqrt.f32 %v7025_v33  ;;  %v2405_v47 = vmul.f32 %v6476_v45, %v2337_v39  ;;  %vm3027_vm9 = vcmp.eq.f32.partialorder %v6969_v17, 0.0  ;;  %v2073_v45 = vpop.xlane.xlu0 %2072  ;;  %v7075_v39 = vld [vmem:[#allocation5 + $0xa8] sm:$0xff]  }
 0x395   :  { %v4409_v18 = vpop.eup %4408  ;;  %v3026_v44 = vsel %vm3025_vm8, %v6969_v17, %v3024_v36  ;;  %vm2962_vm10 = vcmp.eq.f32.partialorder %v6984_v6, inf  ;;  %4416 = vrsqrt.f32 %v7027_v9  ;;  %vm2964_vm11 = vcmp.eq.f32.partialorder %v6984_v6, 0.0 }
 0x396   :  { %v3368_v20 = vadd.f32 %v3304_v51, %v7885_v25  ;;  %v3029_v0 = vsel %vm3027_vm9, %v3028_v58, %v3026_v44  ;;  %v2961_v48 = vmul.f32 %v4409_v18, %v6984_v6  ;;  %v2965_v17 = vand.u32 2147483648, %v6984_v6 }
 0x397   :  { %v4411_v21 = vpop.eup %4410  ;;  %v3305_v31 = vmul.f32 %v3686_v8, %v3029_v0  ;;  %v7050_v42 = vadd.f32 1e-16, %v2525_v30  ;;  %v2536_v10 = vmax.f32 %v2472_v12, 0.0  ;;  %v2473_v50 = vadd.f32 %v7059_v52, %v2405_v47  ;;  %v2051_v8 = vpop.xlane.xlu1 %2050 }
 0x398   :  { %v3435_v43 = vsel %vm3386_vm2, %v6886_v60, %v3368_v20  ;;  %v2963_v15 = vsel %vm2962_vm10, %v6984_v6, %v2961_v48  ;;  %v2177_v28 = vmul.f32 0.6931472, %v4411_v21  ;;  %v3690_v60 = vunpack.c.h.bf16 %v7045_v13  ;;  %v2077_v3 = vpop.xlane.xlu0 %2076 }
 0x399   :  { %v4413_v19 = vpop.eup %4412  ;;  %3499 = vst [vmem:[#allocation10 + $0x180] sm:$0xff] %v3435_v43  ;;  %v3369_v11 = vadd.f32 %v3305_v31, %v7886_v38  ;;  %v2966_v5 = vsel %vm2964_vm11, %v2965_v17, %v2963_v15  ;;  %4418 = vrsqrt.f32 %v7050_v42  ;;  %v3689_v7 = vunpack.c.l.bf16 %v7045_v13 }
 0x39a   :  { %v3296_v54 = vmul.f32 %v3669_v14, %v2966_v5  ;;  %v3670_v63 = vunpack.c.h.bf16 %v6962_v41  ;;  %v7073_v24 = vadd.f32 1e-16, %v2536_v10  ;;  %v2537_v61 = vmax.f32 %v2473_v50, 0.0  ;;  %v7891_v5 = vld [vmem:[#allocation17_spill] sm:$0xff] }
 0x39b   :  { %v3436_v6 = vsel %vm3386_vm2, %v6893_v59, %v3369_v11  ;;  %v7081_v53 = vadd.f32 %v2177_v28, %v7887_v16  ;;  %v2203_v62 = vmul.f32 0.6931472, %v4413_v19  ;;  %v3693_v35 = vunpack.c.l.bf16 %v7067_v57  ;;  %v2079_v12 = vpop.xlane.xlu1 %2078  ;;  %v7890_v19 = vld [vmem:[#allocation18_spill] sm:$0xff] }
 0x39c   :  { %3500 = vst [vmem:[#allocation10 + $0x188] sm:$0xff] %v3436_v6  ;;  %v3360_v14 = vadd.f32 %v3296_v54, %v7888_v23  ;;  %4420 = vrsqrt.f32 %v7073_v24  ;;  %v3694_v40 = vunpack.c.h.bf16 %v7067_v57  ;;  %v7087_v55 = vadd.f32 1e-16, %v2537_v61  ;;  %v2053_v31 = vpop.xlane.xlu0 %2052  ;;  %v7132_v6 = vld [vmem:[#allocation5 + $0xd8] sm:$0xff]  }
 0x39d   :  { %v3673_v56 = vunpack.c.l.bf16 %v7075_v39  ;;  %v2326_v59 = vsub.f32 0.0, %v7081_v53  ;;  %v7092_v29 = vadd.f32 %v2203_v62, %v7889_v26  ;;  %vm3039_vm12 = vcmp.eq.f32.partialorder %v7025_v33, inf }
 0x39e   :  { %v4415_v36 = vpop.eup %4414  ;;  %v3427_v30 = vsel %vm3386_vm2, %v6903_v32, %v3360_v14  ;;  %vm3041_vm13 = vcmp.eq.f32.partialorder %v7025_v33, 0.0  ;;  %4422 = vlog2.f32 %v2073_v45  ;;  %v3042_v47 = vand.u32 2147483648, %v7025_v33  ;;  %v7108_v32 = vld [vmem:[%s7507_s4 + $0x3] ss:$0 sm:$0xff] }
 0x39f   :  { %v4417_v51 = vpop.eup %4416  ;;  %3491 = vst [vmem:[#allocation10 + $0x140] sm:$0xff] %v3427_v30  ;;  %v3038_v58 = vmul.f32 %v4415_v36, %v7025_v33  ;;  %vm3032_vm14 = vcmp.eq.f32.partialorder %v7027_v9, inf  ;;  %4424 = vrsqrt.f32 %v7087_v55  ;;  %vm3034_vm15 = vcmp.eq.f32.partialorder %v7027_v9, 0.0 }
 0x3a0   :  { %v3031_v18 = vmul.f32 %v4417_v51, %v7027_v9  ;;  %v2394_v44 = vmul.f32 %v7108_v32, %v2326_v59  ;;  %v2339_v25 = vsub.f32 0.0, %v7092_v29  ;;  %v3035_v0 = vand.u32 2147483648, %v7027_v9 }
 0x3a1   :  { %v3040_v20 = vsel %vm3039_vm12, %v7025_v33, %v3038_v58  ;;  %vm2969_vm0 = vcmp.eq.f32.partialorder %v7050_v42, inf  ;;  %4426 = vlog2.f32 %v2051_v8  ;;  %vm2971_vm1 = vcmp.eq.f32.partialorder %v7050_v42, 0.0  ;;  %v2083_v8 = vpop.xlane.xlu1 %2082 }
 0x3a2   :  { %v3043_v48 = vsel %vm3041_vm13, %v3042_v47, %v3040_v20  ;;  %v3033_v13 = vsel %vm3032_vm14, %v7027_v9, %v3031_v18  ;;  %v2462_v45 = vadd.f32 %v7059_v52, %v2394_v44  ;;  %v2407_v21 = vmul.f32 %v7108_v32, %v2339_v25 }
 0x3a3   :  { %v4419_v17 = vpop.eup %4418  ;;  %v3307_v10 = vmul.f32 %v3690_v60, %v3043_v48  ;;  %v3036_v43 = vsel %vm3034_vm15, %v3035_v0, %v3033_v13  ;;  %4428 = vlog2.f32 %v2077_v3  ;;  %v2972_v38 = vand.u32 2147483648, %v7050_v42  ;;  %v7893_v0 = vld [vmem:[#allocation112_spill] sm:$0xff] }
 0x3a4   :  { %v3306_v15 = vmul.f32 %v3689_v7, %v3036_v43  ;;  %v2968_v50 = vmul.f32 %v4419_v17, %v7050_v42  ;;  %v2526_v28 = vmax.f32 %v2462_v45, 0.0  ;;  %v2475_v33 = vadd.f32 %v7059_v52, %v2407_v21 }
 0x3a5   :  { %v3371_v9 = vadd.f32 %v3307_v10, %v7890_v19  ;;  %vm3046_vm3 = vcmp.eq.f32.partialorder %v7073_v24, inf  ;;  %4430 = vlog2.f32 %v2079_v12  ;;  %v3049_v26 = vand.u32 2147483648, %v7073_v24  ;;  %v2055_v47 = vpop.xlane.xlu1 %2054 }
 0x3a6   :  { %v4421_v11 = vpop.eup %4420  ;;  %v3370_v60 = vadd.f32 %v3306_v15, %v7891_v5  ;;  %v2970_v54 = vsel %vm2969_vm0, %v7050_v42, %v2968_v50  ;;  %v7130_v7 = vadd.f32 1e-16, %v2526_v28  ;;  %v2539_v61 = vmax.f32 %v2475_v33, 0.0  ;;  %v7895_v50 = vld [vmem:[#allocation113_spill] sm:$0xff]  ;;  %v7896_v33 = vld [vmem:[#allocation20_spill] sm:$0xff] }
 0x3a7   :  { %v3438_v16 = vsel %vm3386_vm2, %v6975_v49, %v3371_v9  ;;  %v2973_v62 = vsel %vm2971_vm1, %v2972_v38, %v2970_v54  ;;  %v3045_v23 = vmul.f32 %v4421_v11, %v7073_v24  ;;  %4432 = vlog2.f32 %v2053_v31  ;;  %v2081_v49 = vpop.xlane.xlu0 %2080 }
 0x3a8   :  { %v4423_v14 = vpop.eup %4422  ;;  %3502 = vst [vmem:[#allocation10 + $0x198] sm:$0xff] %v3438_v16  ;;  %v3437_v3 = vsel %vm3386_vm2, %v6978_v1, %v3370_v60  ;;  %v3297_v59 = vmul.f32 %v3670_v63, %v2973_v62  ;;  %4434 = vrsqrt.f32 %v7130_v7  ;;  %vm3048_vm4 = vcmp.eq.f32.partialorder %v7073_v24, 0.0  ;;  %v7892_v1 = vld [vmem:[#allocation65_spill] sm:$0xff]  ;;  %v7898_v62 = vld [vmem:[#allocation115_spill] sm:$0xff] }
 0x3a9   :  { %v4425_v36 = vpop.eup %4424  ;;  %3501 = vst [vmem:[#allocation10 + $0x190] sm:$0xff] %v3437_v3  ;;  %v3047_v42 = vsel %vm3046_vm3, %v7073_v24, %v3045_v23  ;;  %v3698_v30 = vunpack.c.h.bf16 %v7132_v6  ;;  %v7152_v12 = vadd.f32 1e-16, %v2539_v61  ;;  %v2201_v58 = vmul.f32 0.6931472, %v4423_v14  ;;  %v2087_v38 = vpop.xlane.xlu1 %2086 }
 0x3aa   :  { %v3361_v41 = vadd.f32 %v3297_v59, %v7892_v1  ;;  %v3050_v63 = vsel %vm3048_vm4, %v3049_v26, %v3047_v42  ;;  %v3052_v51 = vmul.f32 %v4425_v36, %v7087_v55  ;;  %vm3053_vm5 = vcmp.eq.f32.partialorder %v7087_v55, inf }
 0x3ab   :  { %v4427_v18 = vpop.eup %4426  ;;  %v3308_v44 = vmul.f32 %v3693_v35, %v3050_v63  ;;  %v3056_v25 = vand.u32 2147483648, %v7087_v55  ;;  %4436 = vrsqrt.f32 %v7152_v12  ;;  %vm3055_vm6 = vcmp.eq.f32.partialorder %v7087_v55, 0.0  ;;  %v7894_v35 = vld [vmem:[#allocation19_spill] sm:$0xff]  ;;  %v2085_v43 = vpop.xlane.xlu0 %2084  ;;  %v7899_v63 = vld [vmem:[#allocation116_spill] sm:$0xff] }
 0x3ac   :  { %v3428_v24 = vsel %vm3386_vm2, %v6989_v22, %v3361_v41  ;;  %v3054_v20 = vsel %vm3053_vm5, %v7087_v55, %v3052_v51  ;;  %v7167_v48 = vadd.f32 %v2201_v58, %v7893_v0  ;;  %v2179_v31 = vmul.f32 0.6931472, %v4427_v18 }
 0x3ad   :  { %v4429_v13 = vpop.eup %4428  ;;  %3492 = vst [vmem:[#allocation10 + $0x148] sm:$0xff] %v3428_v24  ;;  %v3372_v45 = vadd.f32 %v3308_v44, %v7894_v35  ;;  %v3057_v21 = vsel %vm3055_vm6, %v3056_v25, %v3054_v20  ;;  %4438 = vlog2.f32 %v2083_v8  ;;  %vm2976_vm7 = vcmp.eq.f32.partialorder %v7130_v7, inf  ;;  %v7897_v8 = vld [vmem:[#allocation114_spill] sm:$0xff] }
 0x3ae   :  { %v3309_v17 = vmul.f32 %v3694_v40, %v3057_v21  ;;  %v2338_v10 = vsub.f32 0.0, %v7167_v48  ;;  %v2205_v22 = vmul.f32 0.6931472, %v4429_v13  ;;  %4440 = vlog2.f32 %v2081_v49  ;;  %v7225_v21 = vld [vmem:[#allocation5 + $0xe0] sm:$0xff]  }
 0x3af   :  { %v4431_v15 = vpop.eup %4430  ;;  %v3439_v55 = vsel %vm3386_vm2, %v7002_v27, %v3372_v45  ;;  %v7178_v28 = vadd.f32 %v2179_v31, %v7895_v50  ;;  %4442 = vlog2.f32 %v2055_v47  ;;  %vm2978_vm8 = vcmp.eq.f32.partialorder %v7130_v7, 0.0 }
 0x3b0   :  { %3503 = vst [vmem:[#allocation10 + $0x1a0] sm:$0xff] %v3439_v55  ;;  %v3373_v57 = vadd.f32 %v3309_v17, %v7896_v33  ;;  %v2406_v40 = vmul.f32 %v7108_v32, %v2338_v10  ;;  %v7183_v19 = vadd.f32 %v2205_v22, %v7897_v8  ;;  %v2207_v9 = vmul.f32 0.6931472, %v4431_v15  ;;  %v7241_v8 = vld [vmem:[#allocation5 + $0xb0] sm:$0xff]  }
 0x3b1   :  { %v4433_v11 = vpop.eup %4432  ;;  %v2979_v27 = vand.u32 2147483648, %v7130_v7  ;;  %v2327_v5 = vsub.f32 0.0, %v7178_v28  ;;  %4444 = vlog2.f32 %v2085_v43  ;;  %vm3067_vm9 = vcmp.eq.f32.partialorder %v7152_v12, inf  ;;  %v2057_v43 = vpop.xlane.xlu0 %2056 }
 0x3b2   :  { %v4435_v60 = vpop.eup %4434  ;;  %v3440_v54 = vsel %vm3386_vm2, %v7005_v4, %v3373_v57  ;;  %v2474_v61 = vadd.f32 %v7059_v52, %v2406_v40  ;;  %v2340_v16 = vsub.f32 0.0, %v7183_v19  ;;  %v7194_v23 = vadd.f32 %v2207_v9, %v7898_v62 }
 0x3b3   :  { %3504 = vst [vmem:[#allocation10 + $0x1a8] sm:$0xff] %v3440_v54  ;;  %v2975_v14 = vmul.f32 %v4435_v60, %v7130_v7  ;;  %v2395_v3 = vmul.f32 %v7108_v32, %v2327_v5  ;;  %v2181_v59 = vmul.f32 0.6931472, %v4433_v11  ;;  %4446 = vlog2.f32 %v2087_v38 }
 0x3b4   :  { %v2538_v26 = vmax.f32 %v2474_v61, 0.0  ;;  %v2408_v49 = vmul.f32 %v7108_v32, %v2340_v16  ;;  %v2341_v4 = vsub.f32 0.0, %v7194_v23  ;;  %v3070_v1 = vand.u32 2147483648, %v7152_v12 }
 0x3b5   :  { %v4437_v36 = vpop.eup %4436  ;;  %v2977_v42 = vsel %vm2976_vm7, %v7130_v7, %v2975_v14  ;;  %v2463_v41 = vadd.f32 %v7059_v52, %v2395_v3  ;;  %v7207_v51 = vadd.f32 %v2181_v59, %v7899_v63  ;;  %vm3069_vm10 = vcmp.eq.f32.partialorder %v7152_v12, 0.0  ;;  %v7901_v3 = vld [vmem:[#allocation117_spill] sm:$0xff] }
 0x3b6   :  { %v2980_v58 = vsel %vm2978_vm8, %v2979_v27, %v2977_v42  ;;  %v3066_v47 = vmul.f32 %v4437_v36, %v7152_v12  ;;  %v7212_v18 = vadd.f32 1e-16, %v2538_v26  ;;  %v2476_v44 = vadd.f32 %v7059_v52, %v2408_v49  ;;  %v7902_v26 = vld [vmem:[#allocation118_spill] sm:$0xff] }
 0x3b7   :  { %v4439_v25 = vpop.eup %4438  ;;  %v3298_v24 = vmul.f32 %v3673_v56, %v2980_v58  ;;  %v2527_v20 = vmax.f32 %v2463_v41, 0.0  ;;  %v2409_v0 = vmul.f32 %v7108_v32, %v2341_v4  ;;  %v2328_v13 = vsub.f32 0.0, %v7207_v51  ;;  %v7903_v4 = vld [vmem:[#allocation119_spill] sm:$0xff] }
 0x3b8   :  { %v4441_v35 = vpop.eup %4440  ;;  %v3068_v7 = vsel %vm3067_vm9, %v7152_v12, %v3066_v47  ;;  %v3697_v45 = vunpack.c.l.bf16 %v7132_v6  ;;  %4448 = vrsqrt.f32 %v7212_v18  ;;  %v3674_v10 = vunpack.c.h.bf16 %v7075_v39 }
 0x3b9   :  { %v4443_v31 = vpop.eup %4442  ;;  %v3362_v56 = vadd.f32 %v3298_v24, %v6953_v37  ;;  %v3071_v17 = vsel %vm3069_vm10, %v3070_v1, %v3068_v7  ;;  %v7229_v22 = vadd.f32 1e-16, %v2527_v20  ;;  %v2540_v55 = vmax.f32 %v2476_v44, 0.0  ;;  %v7904_v20 = vld [vmem:[#allocation120_spill] sm:$0xff] }
 0x3ba   :  { %v3311_v15 = vmul.f32 %v3698_v30, %v3071_v17  ;;  %v2477_v12 = vadd.f32 %v7059_v52, %v2409_v0  ;;  %v2396_v50 = vmul.f32 %v7108_v32, %v2328_v13  ;;  %v3701_v37 = vunpack.c.l.bf16 %v7225_v21  ;;  %v7900_v30 = vld [vmem:[#allocation22_spill] sm:$0xff]  ;;  %v7905_v13 = vld [vmem:[#allocation121_spill] sm:$0xff] }
 0x3bb   :  { %v4445_v33 = vpop.eup %4444  ;;  %v3429_v57 = vsel %vm3386_vm2, %v7081_v53, %v3362_v56  ;;  %4450 = vrsqrt.f32 %v7229_v22  ;;  %v3702_v40 = vunpack.c.h.bf16 %v7225_v21  ;;  %v7244_v38 = vadd.f32 1e-16, %v2540_v55  ;;  %v7909_v21 = vld [vmem:[#allocation24_spill] sm:$0xff] }
 0x3bc   :  { %3493 = vst [vmem:[#allocation10 + $0x150] sm:$0xff] %v3429_v57  ;;  %v3375_v9 = vadd.f32 %v3311_v15, %v7900_v30  ;;  %v2541_v11 = vmax.f32 %v2477_v12, 0.0  ;;  %4452 = vlog2.f32 %v2057_v43  ;;  %v2464_v5 = vadd.f32 %v7059_v52, %v2396_v50 }
 0x3bd   :  { %v4447_v27 = vpop.eup %4446  ;;  %v2211_v60 = vmul.f32 0.6931472, %v4439_v25  ;;  %v2209_v53 = vmul.f32 0.6931472, %v4441_v35  ;;  %v2183_v54 = vmul.f32 0.6931472, %v4443_v31  ;;  %4454 = vrsqrt.f32 %v7244_v38 }
 0x3be   :  { %v3442_v61 = vsel %vm3386_vm2, %v7092_v29, %v3375_v9  ;;  %vm3060_vm11 = vcmp.eq.f32.partialorder %v7212_v18, inf  ;;  %v3677_v16 = vunpack.c.l.bf16 %v7241_v8  ;;  %vm3062_vm12 = vcmp.eq.f32.partialorder %v7212_v18, 0.0 }
 0x3bf   :  { %3506 = vst [vmem:[#allocation10 + $0x1b8] sm:$0xff] %v3442_v61  ;;  %v7254_v62 = vadd.f32 1e-16, %v2541_v11  ;;  %v2528_v14 = vmax.f32 %v2464_v5, 0.0  ;;  %v7257_v59 = vadd.f32 %v2211_v60, %v7901_v3  ;;  %v7260_v49 = vadd.f32 %v2209_v53, %v7902_v26 }
 0x3c0   :  { %v7263_v29 = vadd.f32 %v2183_v54, %v7903_v4  ;;  %v2213_v36 = vmul.f32 0.6931472, %v4445_v33  ;;  %v2215_v42 = vmul.f32 0.6931472, %v4447_v27  ;;  %v3063_v1 = vand.u32 2147483648, %v7212_v18  ;;  %v7906_v54 = vld [vmem:[#allocation21_spill] sm:$0xff] }
 0x3c1   :  { %vm2983_vm13 = vcmp.eq.f32.partialorder %v7229_v22, inf  ;;  %vm2985_vm14 = vcmp.eq.f32.partialorder %v7229_v22, 0.0  ;;  %4456 = vrsqrt.f32 %v7254_v62  ;;  %v7269_v63 = vadd.f32 1e-16, %v2528_v14 }
 0x3c2   :  { %v4449_v41 = vpop.eup %4448  ;;  %v2343_v58 = vsub.f32 0.0, %v7257_v59  ;;  %v2342_v47 = vsub.f32 0.0, %v7260_v49  ;;  %v2329_v44 = vsub.f32 0.0, %v7263_v29  ;;  %v2986_v24 = vand.u32 2147483648, %v7229_v22 }
 0x3c3   :  { %v3059_v25 = vmul.f32 %v4449_v41, %v7212_v18  ;;  %v7277_v0 = vadd.f32 %v2213_v36, %v7904_v20  ;;  %v7280_v35 = vadd.f32 %v2215_v42, %v7905_v13  ;;  %vm3074_vm15 = vcmp.eq.f32.partialorder %v7244_v38, inf }
 0x3c4   :  { %vm3076_vm0 = vcmp.eq.f32.partialorder %v7244_v38, 0.0  ;;  %v3077_v7 = vand.u32 2147483648, %v7244_v38  ;;  %4458 = vrsqrt.f32 %v7269_v63  ;;  %vm3081_vm1 = vcmp.eq.f32.partialorder %v7254_v62, inf }
 0x3c5   :  { %v4451_v31 = vpop.eup %4450  ;;  %v3061_v56 = vsel %vm3060_vm11, %v7212_v18, %v3059_v25  ;;  %v2411_v17 = vmul.f32 %v7108_v32, %v2343_v58  ;;  %v2410_v43 = vmul.f32 %v7108_v32, %v2342_v47  ;;  %v2397_v15 = vmul.f32 %v7108_v32, %v2329_v44 }
 0x3c6   :  { %v4453_v55 = vpop.eup %4452  ;;  %v3064_v12 = vsel %vm3062_vm12, %v3063_v1, %v3061_v56  ;;  %v2982_v50 = vmul.f32 %v4451_v31, %v7229_v22  ;;  %v2344_v33 = vsub.f32 0.0, %v7277_v0  ;;  %v2345_v57 = vsub.f32 0.0, %v7280_v35 }
 0x3c7   :  { %v3310_v30 = vmul.f32 %v3697_v45, %v3064_v12  ;;  %v2479_v9 = vadd.f32 %v7059_v52, %v2411_v17  ;;  %v2478_v11 = vadd.f32 %v7059_v52, %v2410_v43  ;;  %v2465_v27 = vadd.f32 %v7059_v52, %v2397_v15  ;;  %v4455_v5 = vpop.eup %4454  ;;  %v7908_v43 = vld [vmem:[#allocation122_spill] sm:$0xff] }
 0x3c8   :  { %v2984_v18 = vsel %vm2983_vm13, %v7229_v22, %v2982_v50  ;;  %vm3083_vm3 = vcmp.eq.f32.partialorder %v7254_v62, 0.0  ;;  %v2412_v60 = vmul.f32 %v7108_v32, %v2344_v33  ;;  %v2413_v53 = vmul.f32 %v7108_v32, %v2345_v57  ;;  %v2089_v57 = vpop.xlane.xlu0 %2088 }
 0x3c9   :  { %v3374_v6 = vadd.f32 %v3310_v30, %v7906_v54  ;;  %v2987_v45 = vsel %vm2985_vm14, %v2986_v24, %v2984_v18  ;;  %v3073_v61 = vmul.f32 %v4455_v5, %v7244_v38  ;;  %v2543_v14 = vmax.f32 %v2479_v9, 0.0  ;;  %v7910_v9 = vld [vmem:[#allocation92_spill] sm:$0xff] }
 0x3ca   :  { %v3299_v3 = vmul.f32 %v3674_v10, %v2987_v45  ;;  %v3084_v26 = vand.u32 2147483648, %v7254_v62  ;;  %v2542_v4 = vmax.f32 %v2478_v11, 0.0  ;;  %v2185_v36 = vmul.f32 0.6931472, %v4453_v55  ;;  %v2059_v55 = vpop.xlane.xlu1 %2058 }
 0x3cb   :  { %v4457_v42 = vpop.eup %4456  ;;  %v3441_v1 = vsel %vm3386_vm2, %v7167_v48, %v3374_v6  ;;  %v3075_v22 = vsel %vm3074_vm15, %v7244_v38, %v3073_v61  ;;  %v7322_v41 = vadd.f32 1e-16, %v2543_v14  ;;  %v2529_v58 = vmax.f32 %v2465_v27, 0.0  ;;  %v7913_v61 = vld [vmem:[#allocation40_spill] sm:$0xff] }
 0x3cc   :  { %3505 = vst [vmem:[#allocation10 + $0x1b0] sm:$0xff] %v3441_v1  ;;  %v3363_v39 = vadd.f32 %v3299_v3, %v6966_v34  ;;  %v3078_v10 = vsel %vm3076_vm0, %v3077_v7, %v3075_v22  ;;  %v3080_v47 = vmul.f32 %v4457_v42, %v7254_v62  ;;  %v7328_v44 = vadd.f32 1e-16, %v2542_v4 }
 0x3cd   :  { %v3312_v48 = vmul.f32 %v3701_v37, %v3078_v10  ;;  %4460 = vrsqrt.f32 %v7322_v41  ;;  %v2480_v25 = vadd.f32 %v7059_v52, %v2412_v60  ;;  %v2481_v24 = vadd.f32 %v7059_v52, %v2413_v53  ;;  %v7907_v37 = vld [vmem:[#allocation23_spill] sm:$0xff]  ;;  %v7911_v53 = vld [vmem:[#allocation36_spill] sm:$0xff] }
 0x3ce   :  { %v4459_v20 = vpop.eup %4458  ;;  %v3430_v34 = vsel %vm3386_vm2, %v7178_v28, %v3363_v39  ;;  %v3082_v38 = vsel %vm3081_vm1, %v7254_v62, %v3080_v47  ;;  %vm2990_vm4 = vcmp.eq.f32.partialorder %v7269_v63, inf  ;;  %4462 = vrsqrt.f32 %v7328_v44 }
 0x3cf   :  { %3494 = vst [vmem:[#allocation10 + $0x158] sm:$0xff] %v3430_v34  ;;  %v3376_v13 = vadd.f32 %v3312_v48, %v7907_v37  ;;  %v3085_v7 = vsel %vm3083_vm3, %v3084_v26, %v3082_v38  ;;  %v2989_v31 = vmul.f32 %v4459_v20, %v7269_v63  ;;  %vm2992_vm5 = vcmp.eq.f32.partialorder %v7269_v63, 0.0  ;;  %v2091_v26 = vpop.xlane.xlu1 %2090 }
 0x3d0   :  { %v3313_v28 = vmul.f32 %v3702_v40, %v3085_v7  ;;  %v2993_v56 = vand.u32 2147483648, %v7269_v63  ;;  %v7351_v17 = vadd.f32 1e-16, %v2529_v58  ;;  %v7354_v15 = vadd.f32 %v2185_v36, %v7908_v43 }
 0x3d1   :  { %v3443_v62 = vsel %vm3386_vm2, %v7183_v19, %v3376_v13  ;;  %v2991_v12 = vsel %vm2990_vm4, %v7269_v63, %v2989_v31  ;;  %v2544_v50 = vmax.f32 %v2480_v25, 0.0  ;;  %v2545_v33 = vmax.f32 %v2481_v24, 0.0  ;;  %v3743_v63 = vld [vmem:[#allocation5 + $0xe8] sm:$0xff]   ;;  %v3744_v25 = vld [vmem:[#allocation5 + $0xf0] sm:$0xff]  }
 0x3d2   :  { %3507 = vst [vmem:[#allocation10 + $0x1c0] sm:$0xff] %v3443_v62  ;;  %v3377_v40 = vadd.f32 %v3313_v28, %v7909_v21  ;;  %v2994_v30 = vsel %vm2992_vm5, %v2993_v56, %v2991_v12  ;;  %4464 = vrsqrt.f32 %v7351_v17  ;;  %v2596_v11 = vadd.f32 %v6949_v2, %v7910_v9 }
 0x3d3   :  { %v3300_v27 = vmul.f32 %v3677_v16, %v2994_v30  ;;  %v7366_v5 = vadd.f32 1e-16, %v2544_v50  ;;  %v7371_v18 = vadd.f32 1e-16, %v2545_v33  ;;  %v2330_v60 = vsub.f32 0.0, %v7354_v15  ;;  %v7912_v16 = vld [vmem:[#allocation38_spill] sm:$0xff] }
 0x3d4   :  { %v3444_v19 = vsel %vm3386_vm2, %v7194_v23, %v3377_v40  ;;  %4466 = vlog2.f32 %v2089_v57  ;;  %v2610_v54 = vadd.f32 %v6949_v2, %v7911_v53  ;;  %v2611_v45 = vadd.f32 %v6949_v2, %v7912_v16  ;;  %v7914_v23 = vld [vmem:[#allocation93_spill] sm:$0xff] }
 0x3d5   :  { %3508 = vst [vmem:[#allocation10 + $0x1c8] sm:$0xff] %v3444_v19  ;;  %v3364_v6 = vadd.f32 %v3300_v27, %v2596_v11  ;;  %4468 = vrsqrt.f32 %v7366_v5  ;;  %v7381_v14 = vadd.f32 %v6949_v2, %v7913_v61  ;;  %v7385_v3 = vadd.f32 %v6949_v2, %v7914_v23  ;;  %v7915_v23 = vld [vmem:[#allocation124_spill] sm:$0xff] }
 0x3d6   :  { %4470 = vrsqrt.f32 %v7371_v18  ;;  %v3706_v42 = vunpack.c.h.bf16 %v3743_v63  ;;  %v3705_v1 = vunpack.c.l.bf16 %v3743_v63  ;;  %v2398_v22 = vmul.f32 %v7108_v32, %v2330_v60 }
 0x3d7   :  { %v4461_v4 = vpop.eup %4460  ;;  %v3431_v36 = vsel %vm3386_vm2, %v7207_v51, %v3364_v6  ;;  %vm3095_vm6 = vcmp.eq.f32.partialorder %v7322_v41, inf  ;;  %v3678_v10 = vunpack.c.h.bf16 %v7241_v8  ;;  %4472 = vlog2.f32 %v2059_v55 }
 0x3d8   :  { %v4463_v58 = vpop.eup %4462  ;;  %3495 = vst [vmem:[#allocation10 + $0x160] sm:$0xff] %v3431_v36  ;;  %v3094_v39 = vmul.f32 %v4461_v4, %v7322_v41  ;;  %v3098_v47 = vand.u32 2147483648, %v7322_v41  ;;  %v2466_v51 = vadd.f32 %v7059_v52, %v2398_v22  ;;  %4474 = vlog2.f32 %v2091_v26  ;;  %v7916_v36 = vld [vmem:[#allocation42_spill] sm:$0xff]  ;;  %v7917_v22 = vld [vmem:[#allocation125_spill] sm:$0xff] }
 0x3d9   :  { %v3087_v48 = vmul.f32 %v4463_v58, %v7328_v44  ;;  %vm3097_vm7 = vcmp.eq.f32.partialorder %v7322_v41, 0.0  ;;  %vm3088_vm8 = vcmp.eq.f32.partialorder %v7328_v44, inf  ;;  %v3091_v20 = vand.u32 2147483648, %v7328_v44 }
 0x3da   :  { %v3096_v24 = vsel %vm3095_vm6, %v7322_v41, %v3094_v39  ;;  %vm3090_vm9 = vcmp.eq.f32.partialorder %v7328_v44, 0.0  ;;  %v2530_v38 = vmax.f32 %v2466_v51, 0.0  ;;  %v3709_v31 = vunpack.c.l.bf16 %v3744_v25  ;;  %v7918_v39 = vld [vmem:[#allocation123_spill] sm:$0xff] }
 0x3db   :  { %v3099_v34 = vsel %vm3097_vm7, %v3098_v47, %v3096_v24  ;;  %v3089_v8 = vsel %vm3088_vm8, %v7328_v44, %v3087_v48  ;;  %v3710_v28 = vunpack.c.h.bf16 %v3744_v25  ;;  %vm2997_vm10 = vcmp.eq.f32.partialorder %v7351_v17, inf  ;;  %v3737_v48 = vld [vmem:[#allocation5 + $0xb8] sm:$0xff]  }
 0x3dc   :  { %v4465_v37 = vpop.eup %4464  ;;  %v3315_v13 = vmul.f32 %v3706_v42, %v3099_v34  ;;  %v3092_v7 = vsel %vm3090_vm9, %v3091_v20, %v3089_v8  ;;  %v7406_v41 = vadd.f32 1e-16, %v2530_v38  ;;  %vm2999_vm11 = vcmp.eq.f32.partialorder %v7351_v17, 0.0 }
 0x3dd   :  { %v3314_v56 = vmul.f32 %v3705_v1, %v3092_v7  ;;  %v2996_v43 = vmul.f32 %v4465_v37, %v7351_v17  ;;  %v3000_v12 = vand.u32 2147483648, %v7351_v17  ;;  %vm3102_vm12 = vcmp.eq.f32.partialorder %v7366_v5, inf }
 0x3de   :  { %v4467_v55 = vpop.eup %4466  ;;  %v3379_v62 = vadd.f32 %v3315_v13, %v2611_v45  ;;  %vm3104_vm13 = vcmp.eq.f32.partialorder %v7366_v5, 0.0  ;;  %4476 = vrsqrt.f32 %v7406_v41  ;;  %v3105_v9 = vand.u32 2147483648, %v7366_v5 }
 0x3df   :  { %v4469_v44 = vpop.eup %4468  ;;  %v3378_v50 = vadd.f32 %v3314_v56, %v2610_v54  ;;  %v2998_v33 = vsel %vm2997_vm10, %v7351_v17, %v2996_v43  ;;  %vm3109_vm14 = vcmp.eq.f32.partialorder %v7371_v18, inf  ;;  %vm3111_vm15 = vcmp.eq.f32.partialorder %v7371_v18, 0.0 }
 0x3e0   :  { %v4471_v57 = vpop.eup %4470  ;;  %v3446_v21 = vsel %vm3386_vm2, %v7257_v59, %v3379_v62  ;;  %v3001_v40 = vsel %vm2999_vm11, %v3000_v12, %v2998_v33  ;;  %v3101_v30 = vmul.f32 %v4469_v44, %v7366_v5  ;;  %v3112_v63 = vand.u32 2147483648, %v7371_v18 }
 0x3e1   :  { %3510 = vst [vmem:[#allocation10 + $0x1d8] sm:$0xff] %v3446_v21  ;;  %v3445_v11 = vsel %vm3386_vm2, %v7260_v49, %v3378_v50  ;;  %v3301_v17 = vmul.f32 %v3678_v10, %v3001_v40  ;;  %v3108_v27 = vmul.f32 %v4471_v57, %v7371_v18  ;;  %v4473_v19 = vpop.eup %4472  ;;  %v2217_v60 = vmul.f32 0.6931472, %v4467_v55  ;;  %v7919_v55 = vld [vmem:[#allocation94_spill] sm:$0xff] }
 0x3e2   :  { %3509 = vst [vmem:[#allocation10 + $0x1d0] sm:$0xff] %v3445_v11  ;;  %v3103_v59 = vsel %vm3102_vm12, %v7366_v5, %v3101_v30  ;;  %v4475_v53 = vpop.eup %4474  ;;  %v2187_v16 = vmul.f32 0.6931472, %v4473_v19  ;;  %v2613_v42 = vadd.f32 %v6949_v2, %v7916_v36  ;;  %v3681_v8 = vunpack.c.l.bf16 %v3737_v48 }
 0x3e3   :  { %v3365_v54 = vadd.f32 %v3301_v17, %v7385_v3  ;;  %v3106_v49 = vsel %vm3104_vm13, %v3105_v9, %v3103_v59  ;;  %v3110_v6 = vsel %vm3109_vm14, %v7371_v18, %v3108_v27  ;;  %v7434_v26 = vadd.f32 %v2217_v60, %v7915_v23 }
 0x3e4   :  { %v3316_v45 = vmul.f32 %v3709_v31, %v3106_v49  ;;  %v3113_v61 = vsel %vm3111_vm15, %v3112_v63, %v3110_v6  ;;  %v2219_v4 = vmul.f32 0.6931472, %v4475_v53  ;;  %v7442_v5 = vadd.f32 %v2187_v16, %v7917_v22  ;;  %v7920_v63 = vld [vmem:[#allocation44_spill] sm:$0xff] }
 0x3e5   :  { %v3432_v1 = vsel %vm3386_vm2, %v7263_v29, %v3365_v54  ;;  %v3317_v3 = vmul.f32 %v3710_v28, %v3113_v61  ;;  %v2346_v58 = vsub.f32 0.0, %v7434_v26  ;;  %vm3004_vm0 = vcmp.eq.f32.partialorder %v7406_v41, inf  ;;  %v7921_v61 = vld [vmem:[#allocation95_spill] sm:$0xff] }
 0x3e6   :  { %3496 = vst [vmem:[#allocation10 + $0x168] sm:$0xff] %v3432_v1  ;;  %v3380_v18 = vadd.f32 %v3316_v45, %v7381_v14  ;;  %v7447_v10 = vadd.f32 %v2219_v4, %v7918_v39  ;;  %v2331_v25 = vsub.f32 0.0, %v7442_v5  ;;  %v3007_v13 = vand.u32 2147483648, %v7406_v41 }
 0x3e7   :  { %v3381_v47 = vadd.f32 %v3317_v3, %v2613_v42  ;;  %v2414_v51 = vmul.f32 %v7108_v32, %v2346_v58  ;;  %vm3006_vm1 = vcmp.eq.f32.partialorder %v7406_v41, 0.0  ;;  %v2598_v62 = vadd.f32 %v6949_v2, %v7919_v55 }
 0x3e8   :  { %v3447_v29 = vsel %vm3386_vm2, %v7277_v0, %v3380_v18  ;;  %v2347_v24 = vsub.f32 0.0, %v7447_v10  ;;  %v4477_v20 = vpop.eup %4476  ;;  %v2399_v34 = vmul.f32 %v7108_v32, %v2331_v25  ;;  %v3682_v11 = vunpack.c.h.bf16 %v3737_v48  ;;  %v7922_v18 = vld [vmem:[#allocation46_spill] sm:$0xff] }
 0x3e9   :  { %3511 = vst [vmem:[#allocation10 + $0x1e0] sm:$0xff] %v3447_v29  ;;  %v3448_v14 = vsel %vm3386_vm2, %v7280_v35, %v3381_v47  ;;  %v3003_v38 = vmul.f32 %v4477_v20, %v7406_v41  ;;  %v2482_v37 = vadd.f32 %v7059_v52, %v2414_v51 }
 0x3ea   :  { %3512 = vst [vmem:[#allocation10 + $0x1e8] sm:$0xff] %v3448_v14  ;;  %v2415_v0 = vmul.f32 %v7108_v32, %v2347_v24  ;;  %v2467_v7 = vadd.f32 %v7059_v52, %v2399_v34 }
 0x3eb   :  { %v3005_v31 = vsel %vm3004_vm0, %v7406_v41, %v3003_v38  ;;  %v2546_v35 = vmax.f32 %v2482_v37, 0.0 }
 0x3ec   :  { %v2483_v28 = vadd.f32 %v7059_v52, %v2415_v0  ;;  %v3008_v56 = vsel %vm3006_vm1, %v3007_v13, %v3005_v31  ;;  %v2531_v43 = vmax.f32 %v2467_v7, 0.0  ;;  %v3745_v52 = vld [vmem:[#allocation5 + $0xf8] sm:$0xff]  }
 0x3ed   :  { %v3302_v12 = vmul.f32 %v3681_v8, %v3008_v56  ;;  %v2678_v32 = vadd.f32 1e-16, %v2546_v35  ;;  %v3713_v30 = vunpack.c.l.bf16 %v3745_v52  ;;  %v3714_v16 = vunpack.c.h.bf16 %v3745_v52 }
 0x3ee   :  { %v2547_v44 = vmax.f32 %v2483_v28, 0.0  ;;  %v2663_v50 = vadd.f32 1e-16, %v2531_v43 }
 0x3ef   :  { %v3366_v33 = vadd.f32 %v3302_v12, %v2598_v62  ;;  %4478 = vrsqrt.f32 %v2678_v32  ;;  %vm3116_vm3 = vcmp.eq.f32.partialorder %v2678_v32, inf  ;;  %v3119_v2 = vand.u32 2147483648, %v2678_v32 }
 0x3f0   :  { %4480 = vrsqrt.f32 %v2663_v50  ;;  %v2679_v41 = vadd.f32 1e-16, %v2547_v44  ;;  %vm3118_vm4 = vcmp.eq.f32.partialorder %v2678_v32, 0.0  ;;  %vm3011_vm5 = vcmp.eq.f32.partialorder %v2663_v50, inf }
 0x3f1   :  { %v3433_v57 = vsel %vm3386_vm2, %v7354_v15, %v3366_v33  ;;  %v3014_v19 = vand.u32 2147483648, %v2663_v50  ;;  %v4489_v15 = vld [vmem:[%s7507_s4 + $0x2] ss:$0 sm:$0xff]  ;;  %vm3013_vm6 = vcmp.eq.f32.partialorder %v2663_v50, 0.0  ;;  %s4617_s4 = smov [#allocation10]  }
 0x3f2   :  { %3497 = vst [vmem:[#allocation10 + $0x170] sm:$0xff] %v3433_v57  ;;  %4482 = vrsqrt.f32 %v2679_v41  ;;  %v2614_v60 = vadd.f32 %v4489_v15, %v7920_v63  ;;  %v2599_v23 = vadd.f32 %v4489_v15, %v7921_v61  ;;  %vm3123_vm7 = vcmp.eq.f32.partialorder %v2679_v41, inf  ;;  %s3520_s13 = sshll.u32 %s4617_s4, 4  ;;  %s3521_s13 = int_to_ptr.vmem [resolvable:$true] %s3520_s13 }
 0x3f3   :  { %v3126_v36 = vand.u32 2147483648, %v2679_v41  ;;  %vm3125_vm8 = vcmp.eq.f32.partialorder %v2679_v41, 0.0  ;;  %v2615_v58 = vadd.f32 %v4489_v15, %v7922_v18  ;;  %s4578_s14 = scalar_lea.vmem %s3521_s13, 8192  ;;  %p4583_p5 = scmp.lt.s32.totalorder %s3521_s13, %s3521_s13 }
 0x3f4   :  { %p4579_p4 = scmp.ne.s32.totalorder %s3521_s13, %s4578_s14  ;;  %p4584_p6 = scmp.lt.s32.totalorder %s4578_s14, %s4578_s14 }
 0x3f6   :  { %p4585_p7 = por %p4584_p6, %p4583_p5 }
 0x3f8   :  { %p4586_p8 = pnand %p4585_p7, %p4579_p4 }
 0x3f9   :  { %v4479_v21 = vpop.eup %4478 }
 0x3fa   :  { %v4481_v40 = vpop.eup %4480  ;;  %v3115_v9 = vmul.f32 %v4479_v21, %v2678_v32 }
 0x3fb   :  { %v3010_v17 = vmul.f32 %v4481_v40, %v2663_v50 }
 0x3fc   :  { %v3117_v27 = vsel %vm3116_vm3, %v2678_v32, %v3115_v9  ;;  %v4483_v59 = vpop.eup %4482 }
 0x3fd   :  { %v3120_v53 = vsel %vm3118_vm4, %v3119_v2, %v3117_v27  ;;  %v3012_v54 = vsel %vm3011_vm5, %v2663_v50, %v3010_v17  ;;  %v3122_v45 = vmul.f32 %v4483_v59, %v2679_v41 }
 0x3fe   :  { %v3318_v49 = vmul.f32 %v3713_v30, %v3120_v53  ;;  %v3015_v6 = vsel %vm3013_vm6, %v3014_v19, %v3012_v54 }
 0x3ff   :  { %v3303_v4 = vmul.f32 %v3682_v11, %v3015_v6  ;;  %v3124_v1 = vsel %vm3123_vm7, %v2679_v41, %v3122_v45 }
 0x400   :  { %v3382_v42 = vadd.f32 %v3318_v49, %v2614_v60  ;;  %v3127_v22 = vsel %vm3125_vm8, %v3126_v36, %v3124_v1 }
 0x401   :  { %v3367_v3 = vadd.f32 %v3303_v4, %v2599_v23  ;;  %v3319_v47 = vmul.f32 %v3714_v16, %v3127_v22 }
 0x402   :  { %v3449_v39 = vsel %vm3386_vm2, %v7434_v26, %v3382_v42 }
 0x403   :  { %3513 = vst [vmem:[#allocation10 + $0x1f0] sm:$0xff] %v3449_v39  ;;  %v3434_v48 = vsel %vm3386_vm2, %v7442_v5, %v3367_v3  ;;  %v3383_v25 = vadd.f32 %v3319_v47, %v2615_v58 }
 0x404   :  { %3498 = vst [vmem:[#allocation10 + $0x178] sm:$0xff] %v3434_v48 }
 0x405   :  { %v3450_v29 = vsel %vm3386_vm2, %v7447_v10, %v3383_v25 }
 0x406   :  { %3514 = vst [vmem:[#allocation10 + $0x1f8] sm:$0xff] %v3450_v29 }
 0x407   :  { %4589 = shalt.err (!%p4586_p8)
}
 0x408   :  { %s4590_s16 = scalar_lea.hbm %s7508_s5, 8192 }
 0x409   :  { %p4591_p9 = scmp.ne.s32.totalorder %s7508_s5, %s4590_s16  ;;  %p4594_p10 = scmp.lt.u32.totalorder %s4590_s16, %s7508_s5 }
 0x40b   :  { %p4596_p11 = pnand %p4594_p10, %p4591_p9 }
 0x40d   :  { %4599 = shalt.err (!%p4596_p11)
}
 0x40e   :  { %3526 = dma.vmem_to_hbm [thread:$0]  %s3521_s13, 8192, %s7508_s5, [#allocation4], %s4613_s0, %s4613_s0, %s4614_s21  }
 0x40f   :  { %4606 = dma.done.wait [#allocation4], 8192  }
 0x410   :  { %4607 = vsyncadd [#allocation4], 4294959104 }
 0x411   :  { %3530 = vsyncpa [#allocation3], 1 }
 0x412   :  { %3531 = vsyncpa [#allocation6], 1 }
 0x413   :  { %3532 = vsyncpa [#allocation9], 1 }
 0x414   :  { %3533 = vsyncpa [#allocation4], 1 }

</bundles_post_ra>
